<compile_context>
chip_gen: v7x
topology: tpu7x:2x2x1
jax: 0.10.0
libtpu: 0.0.40
codegen_flags: <defaults>
</compile_context>

<pallas_src>
import numpy as np
import jax
import jax.numpy as jnp
from jax.experimental import pallas as pl
from jax.experimental.pallas import tpu as pltpu

# ----------------------------- static geometry ----------------------------- #
H_IN, W_IN = 10, 20            # input spatial size (NCHW [B, 4, 10, 20])
HP, WP = H_IN + 2, W_IN + 2    # conv1 has padding=1 -> input is pre-padded once
CONV_IO = [(4, 4), (8, 4), (16, 8), (32, 16)]     # (Cout, Cin) per conv layer
CONV_WIN = [WP, W_IN, W_IN - 2, W_IN - 4]          # input width per conv layer
H4, W4, C4 = 4, 14, 32
FEAT = H4 * W4 * C4            # 1792 == linear_CNN_1 input features
LC_SLICE = W4 * C4             # 448 activation columns per conv4 H-row
N_PAD = 128                    # lane-padded head output width (real width = 3)

PARAM_ORDER = ('c1_m', 'c1_b', 'c2_m', 'c2_b', 'c3_m', 'c3_b', 'c4_m', 'c4_b',
               'lc_w', 'lc_b', 'l1_w', 'l1_b', 'l2_w', 'l2_b',
               'l4x_w', 'l4y_w', 'l4_b')


# ------------------------------ Pallas kernel ------------------------------ #

def _make_kernel(batch):
    h_outs = [H_IN, H_IN - 2, H_IN - 4, H_IN - 6]     # 10, 8, 6, 4

    def kernel(x_ref, act_ref,
               m1_ref, cb1_ref, m2_ref, cb2_ref, m3_ref, cb3_ref, m4_ref, cb4_ref,
               lcw_ref, lcb_ref, w1_ref, b1_ref, w2_ref, b2_ref,
               w4x_ref, w4y_ref, b4_ref, out_ref):
        f32, bf16 = jnp.float32, jnp.bfloat16

        def mm(a, w):                       # bf16 MXU matmul, f32 accumulation
            return jnp.dot(a.astype(bf16), w, preferred_element_type=f32)

        def conv(a, m_ref, brow, h_out):    # 3x3 conv == 3 banded matmuls (one per ky)
            acc = brow + mm(a[0:h_out, :], m_ref[0])
            acc = acc + mm(a[1:1 + h_out, :], m_ref[1])
            acc = acc + mm(a[2:2 + h_out, :], m_ref[2])
            return jnp.maximum(acc, 0.0)

        # action MLP (linear_1 -> linear_2): shared input, per-branch weights,
        # computed once (batch-wide) per branch.
        y = jnp.maximum(mm(act_ref[...], w1_ref[...]) + b1_ref[...], 0.0)
        y = jnp.maximum(mm(y, w2_ref[...]) + b2_ref[...], 0.0)          # [B, 128]

        cb1, cb2, cb3, cb4 = cb1_ref[...], cb2_ref[...], cb3_ref[...], cb4_ref[...]
        lcb = lcb_ref[...]
        w4x, w4y, b4 = w4x_ref[...], w4y_ref[...], b4_ref[...]

        for b in range(batch):              # tiny static batch loop
            a = x_ref[b * HP:(b + 1) * HP, :]           # [12, 88]  (H, W*C) layout
            a = conv(a, m1_ref, cb1, h_outs[0])         # [10, 80]
            a = conv(a, m2_ref, cb2, h_outs[1])         # [8, 144]
            a = conv(a, m3_ref, cb3, h_outs[2])         # [6, 256]
            a = conv(a, m4_ref, cb4, h_outs[3])         # [4, 448]
            # linear_CNN_1: relu(flatten(a) @ Wc + bc) without reshaping --
            # accumulate one [1,448]x[448,128] matmul per H row.
            xb = lcb
            for h in range(H4):
                xb = xb + mm(a[h:h + 1, :],
                             lcw_ref[h * LC_SLICE:(h + 1) * LC_SLICE, :])
            xb = jnp.maximum(xb, 0.0)                   # [1, 128]
            # linear_4(cat(x, y)) -> tanh, lane-padded to 128 output lanes.
            ob = jnp.tanh(mm(xb, w4x) + mm(y[b:b + 1, :], w4y) + b4)    # [1, 128]
            out_ref[b:b + 1, :] = ob

    return kernel


# ------------------------------- JAX wrapper -------------------------------- #

def _branch_spec(arr):
    block = (None,) + arr.shape[1:]
    if arr.ndim == 4:
        return pl.BlockSpec(block, lambda i: (i, 0, 0, 0))
    return pl.BlockSpec(block, lambda i: (i, 0, 0))


@jax.jit
def critic_forward(tensor_cv, action_batch, params):
    """tensor_cv: [B, 4, 10, 20] (NCHW); action_batch: [B, 1, 12] or [B, 12]."""
    B = tensor_cv.shape[0]
    x = jnp.transpose(tensor_cv, (0, 2, 3, 1)).astype(jnp.float32)    # NHWC
    x = jnp.pad(x, ((0, 0), (1, 1), (1, 1), (0, 0)))                  # conv1 padding=1
    x2d = x.reshape(B * HP, WP * 4)                                   # [B*H, W*C]
    act = action_batch.reshape(B, 12).astype(jnp.float32)

    weights = [params[name] for name in PARAM_ORDER]
    in_specs = ([pl.BlockSpec((B * HP, WP * 4), lambda i: (0, 0)),    # shared image
                 pl.BlockSpec((B, 12), lambda i: (0, 0))]             # shared action
                + [_branch_spec(w) for w in weights])                 # per-branch params

    out = pl.pallas_call(
        _make_kernel(B),
        out_shape=jax.ShapeDtypeStruct((2, B, N_PAD), jnp.float32),
        grid_spec=pltpu.PrefetchScalarGridSpec(
            num_scalar_prefetch=0,
            grid=(2,),                                   # one grid step per critic branch
            in_specs=in_specs,
            out_specs=pl.BlockSpec((None, B, N_PAD), lambda i: (i, 0, 0)),
        ),
        compiler_params=pltpu.CompilerParams(
            dimension_semantics=("parallel",)),          # branches -> 2 TCs on v7x
    )(x2d, act, *weights)

    out_1 = out[0, :, :3].reshape(B, 3, 1)
    out_2 = out[1, :, :3].reshape(B, 3, 1)
    return out_1, out_2


# --------------------------- parameter construction ------------------------- #

def _uniform(key, shape, fan_in):
    bound = 1.0 / np.sqrt(float(fan_in))
    return np.asarray(jax.random.uniform(key, shape, jnp.float32, -bound, bound))


def _banded_conv(w, win):
    """[Cout, Cin, 3, 3] torch conv weight -> [3, win*Cin, (win-2)*Cout] banded matrices.

    M[ky, (wo+kx)*Cin + ci, wo*Cout + co] = w[co, ci, ky, kx], so that on the 2-D
    [H, W*C] activation layout a 3x3 valid conv is sum_ky  A[ky:ky+Hout, :] @ M[ky].
    """
    cout, cin = w.shape[0], w.shape[1]
    wout = win - 2
    wt = np.transpose(w, (2, 3, 1, 0))                  # [ky, kx, Cin, Cout]
    m = np.zeros((3, win * cin, wout * cout), np.float32)
    for ky in range(3):
        for kx in range(3):
            for wo in range(wout):
                m[ky, (wo + kx) * cin:(wo + kx + 1) * cin,
                      wo * cout:(wo + 1) * cout] = wt[ky, kx]
    return m


def make_branch_raw(key):
    """PyTorch-layout parameters (what the nn.Module would hold)."""
    ks = jax.random.split(key, 16)
    raw = {}
    for li, (cout, cin) in enumerate(CONV_IO):
        raw[f'c{li+1}_w'] = _uniform(ks[2 * li], (cout, cin, 3, 3), cin * 9)
        raw[f'c{li+1}_b'] = _uniform(ks[2 * li + 1], (cout,), cin * 9)
    raw['lc_w'] = _uniform(ks[8], (128, FEAT), FEAT)
    raw['lc_b'] = _uniform(ks[9], (128,), FEAT)
    raw['l1_w'] = _uniform(ks[10], (32, 12), 12)
    raw['l1_b'] = _uniform(ks[11], (32,), 12)
    raw['l2_w'] = _uniform(ks[12], (128, 32), 32)
    raw['l2_b'] = _uniform(ks[13], (128,), 32)
    raw['l4_w'] = _uniform(ks[14], (3, 256), 256)
    raw['l4_b'] = _uniform(ks[15], (3,), 256)
    return raw


def pack_branch(raw):
    """Torch-layout params -> kernel layout (banded convs, permuted/padded linears)."""
    p = {}
    for li in range(4):
        win = CONV_WIN[li]
        p[f'c{li+1}_m'] = _banded_conv(raw[f'c{li+1}_w'], win)
        p[f'c{li+1}_b'] = np.tile(raw[f'c{li+1}_b'], win - 2)[None, :]   # [1, Wout*Cout]
    # linear_CNN_1: reorder the 1792 input rows from torch CHW-flatten to (h, w, c).
    p['lc_w'] = (raw['lc_w'].reshape(128, C4, H4, W4)
                 .transpose(2, 3, 1, 0).reshape(FEAT, 128))
    p['lc_b'] = raw['lc_b'][None, :]
    p['l1_w'] = raw['l1_w'].T
    p['l1_b'] = raw['l1_b'][None, :]
    p['l2_w'] = raw['l2_w'].T
    p['l2_b'] = raw['l2_b'][None, :]
    # linear_4: split the concat input into CNN / action parts, lane-pad N 3 -> 128.
    w4x = np.zeros((128, N_PAD), np.float32); w4x[:, :3] = raw['l4_w'][:, :128].T
    w4y = np.zeros((128, N_PAD), np.float32); w4y[:, :3] = raw['l4_w'][:, 128:].T
    b4 = np.zeros((1, N_PAD), np.float32);    b4[0, :3] = raw['l4_b']
    p['l4x_w'] = w4x
    p['l4y_w'] = w4y
    p['l4_b'] = b4
    return p


def make_params(key):
    k1, k2 = jax.random.split(key)
    raw1, raw2 = make_branch_raw(k1), make_branch_raw(k2)
    p1, p2 = pack_branch(raw1), pack_branch(raw2)
    params = {}
    for name in PARAM_ORDER:
        arr = np.stack([p1[name], p2[name]], axis=0)     # leading branch axis (size 2)
        dtype = jnp.float32 if name.endswith('_b') else jnp.bfloat16
        params[name] = jnp.asarray(arr, dtype=dtype)
    return params, raw1, raw2


# ------------------------- pure-JAX f32 reference --------------------------- #

def reference_forward(tensor_cv, action_batch, raw1, raw2):
    hp = jax.lax.Precision.HIGHEST
    B = tensor_cv.shape[0]
    x0 = tensor_cv.astype(jnp.float32)
    act = action_batch.reshape(B, 12).astype(jnp.float32)
    pads = [((1, 1), (1, 1)), ((0, 0), (0, 0)), ((0, 0), (0, 0)), ((0, 0), (0, 0))]
    outs = []
    for raw in (raw1, raw2):
        x = x0
        for li in range(4):
            w = jnp.asarray(raw[f'c{li+1}_w'])
            b = jnp.asarray(raw[f'c{li+1}_b'])
            x = jax.lax.conv_general_dilated(
                x, w, (1, 1), pads[li],
                dimension_numbers=('NCHW', 'OIHW', 'NCHW'), precision=hp)
            x = jax.nn.relu(x + b.reshape(1, -1, 1, 1))
        feat = x.reshape(B, FEAT)                                    # CHW flatten
        xf = jax.nn.relu(jnp.dot(feat, jnp.asarray(raw['lc_w']).T, precision=hp)
                         + jnp.asarray(raw['lc_b']))
        y = jax.nn.relu(jnp.dot(act, jnp.asarray(raw['l1_w']).T, precision=hp)
                        + jnp.asarray(raw['l1_b']))
        y = jax.nn.relu(jnp.dot(y, jnp.asarray(raw['l2_w']).T, precision=hp)
                        + jnp.asarray(raw['l2_b']))
        z = jnp.concatenate([xf, y], axis=-1)
        o = jnp.tanh(jnp.dot(z, jnp.asarray(raw['l4_w']).T, precision=hp)
                     + jnp.asarray(raw['l4_b']))
        outs.append(o.reshape(B, 3, 1))
    return outs[0], outs[1]


# ----------------------------------- main ------------------------------------ #

if __name__ == "__main__":
    B = 2
    key = jax.random.PRNGKey(0)
    k_params, k_x, k_a = jax.random.split(key, 3)

    params, raw1, raw2 = make_params(k_params)
    tensor_cv = jax.random.normal(k_x, (B, 4, H_IN, W_IN), jnp.float32)
    action_batch = jax.random.normal(k_a, (B, 1, 12), jnp.float32)

    out_1, out_2 = critic_forward(tensor_cv, action_batch, params)
    jax.block_until_ready((out_1, out_2))

    assert out_1.shape == (B, 3, 1) and out_2.shape == (B, 3, 1)
    assert bool(jnp.all(jnp.isfinite(out_1))) and bool(jnp.all(jnp.isfinite(out_2)))

    # correctness vs. a pure-JAX f32 reference of the PyTorch module (bf16-weight kernel)
    ref_1, ref_2 = reference_forward(tensor_cv, action_batch, raw1, raw2)
    err = max(float(jnp.max(jnp.abs(out_1 - ref_1))),
              float(jnp.max(jnp.abs(out_2 - ref_2))))
    assert err < 5e-2, f"kernel/reference mismatch: max abs err {err}"

    print("KERNEL_OK")
</pallas_src>

<mosaic_0001>
module attributes {stable_mosaic.version = 11 : i64} {
  func.func @kernel(%arg0: i32, %arg1: memref<24x88xf32, #tpu.memory_space<vmem>>, %arg2: memref<2x12xf32, #tpu.memory_space<vmem>>, %arg3: memref<1x3x88x80xbf16, #tpu.memory_space<vmem>>, %arg4: memref<1x1x80xf32, #tpu.memory_space<vmem>>, %arg5: memref<1x3x80x144xbf16, #tpu.memory_space<vmem>>, %arg6: memref<1x1x144xf32, #tpu.memory_space<vmem>>, %arg7: memref<1x3x144x256xbf16, #tpu.memory_space<vmem>>, %arg8: memref<1x1x256xf32, #tpu.memory_space<vmem>>, %arg9: memref<1x3x256x448xbf16, #tpu.memory_space<vmem>>, %arg10: memref<1x1x448xf32, #tpu.memory_space<vmem>>, %arg11: memref<1x1792x128xbf16, #tpu.memory_space<vmem>>, %arg12: memref<1x1x128xf32, #tpu.memory_space<vmem>>, %arg13: memref<1x12x32xbf16, #tpu.memory_space<vmem>>, %arg14: memref<1x1x32xf32, #tpu.memory_space<vmem>>, %arg15: memref<1x32x128xbf16, #tpu.memory_space<vmem>>, %arg16: memref<1x1x128xf32, #tpu.memory_space<vmem>>, %arg17: memref<1x128x128xbf16, #tpu.memory_space<vmem>>, %arg18: memref<1x128x128xbf16, #tpu.memory_space<vmem>>, %arg19: memref<1x1x128xf32, #tpu.memory_space<vmem>>, %arg20: memref<1x2x128xf32, #tpu.memory_space<vmem>>) attributes {dimension_semantics = [#tpu.dimension_semantics<parallel>], iteration_bounds = array<i64: 2>, scalar_prefetch = 0 : i64, scratch_operands = 0 : i64, tpu.core_type = #tpu.core_type<tc>, window_params = [{pipeline_mode = #tpu.pipeline_mode<synchronous>, transform_indices = @transform_0, window_bounds = array<i64: 24, 88>}, {pipeline_mode = #tpu.pipeline_mode<synchronous>, transform_indices = @transform_1, window_bounds = array<i64: 2, 12>}, {transform_indices = @transform_2, window_bounds = array<i64: 1, 3, 88, 80>}, {transform_indices = @transform_3, window_bounds = array<i64: 1, 1, 80>}, {transform_indices = @transform_4, window_bounds = array<i64: 1, 3, 80, 144>}, {transform_indices = @transform_5, window_bounds = array<i64: 1, 1, 144>}, {transform_indices = @transform_6, window_bounds = array<i64: 1, 3, 144, 256>}, {transform_indices = @transform_7, window_bounds = array<i64: 1, 1, 256>}, {transform_indices = @transform_8, window_bounds = array<i64: 1, 3, 256, 448>}, {transform_indices = @transform_9, window_bounds = array<i64: 1, 1, 448>}, {transform_indices = @transform_10, window_bounds = array<i64: 1, 1792, 128>}, {transform_indices = @transform_11, window_bounds = array<i64: 1, 1, 128>}, {transform_indices = @transform_12, window_bounds = array<i64: 1, 12, 32>}, {transform_indices = @transform_13, window_bounds = array<i64: 1, 1, 32>}, {transform_indices = @transform_14, window_bounds = array<i64: 1, 32, 128>}, {transform_indices = @transform_15, window_bounds = array<i64: 1, 1, 128>}, {transform_indices = @transform_16, window_bounds = array<i64: 1, 128, 128>}, {transform_indices = @transform_17, window_bounds = array<i64: 1, 128, 128>}, {transform_indices = @transform_18, window_bounds = array<i64: 1, 1, 128>}, {transform_indices = @transform_19, window_bounds = array<i64: 1, 2, 128>}]} {
    %c0 = arith.constant 0 : index
    %c0_0 = arith.constant 0 : index
    %0 = vector.load %arg2[%c0, %c0_0] : memref<2x12xf32, #tpu.memory_space<vmem>>, vector<2x12xf32>
    %c0_1 = arith.constant 0 : index
    %c0_2 = arith.constant 0 : index
    %c0_3 = arith.constant 0 : index
    %1 = vector.load %arg13[%c0_1, %c0_2, %c0_3] : memref<1x12x32xbf16, #tpu.memory_space<vmem>>, vector<1x12x32xbf16>
    %2 = vector.shape_cast %1 : vector<1x12x32xbf16> to vector<12x32xbf16>
    %3 = arith.truncf %0 : vector<2x12xf32> to vector<2x12xbf16>
    %cst = arith.constant dense<0.000000e+00> : vector<2x32xf32>
    %4 = tpu.matmul %3, %2, %cst {dimension_numbers = #tpu.dot_dimension_numbers<[1], [0], [0], [1], [0, 0, 1, 1], [], []>} : vector<2x12xbf16>, vector<12x32xbf16>, vector<2x32xf32> -> vector<2x32xf32>
    %c0_4 = arith.constant 0 : index
    %c0_5 = arith.constant 0 : index
    %c0_6 = arith.constant 0 : index
    %5 = vector.load %arg14[%c0_4, %c0_5, %c0_6] : memref<1x1x32xf32, #tpu.memory_space<vmem>>, vector<1x1x32xf32>
    %6 = vector.shape_cast %5 : vector<1x1x32xf32> to vector<1x32xf32>
    %7 = vector.broadcast %6 : vector<1x32xf32> to vector<2x32xf32>
    %8 = arith.addf %4, %7 : vector<2x32xf32>
    %cst_7 = arith.constant 0.000000e+00 : f32
    %9 = vector.broadcast %cst_7 : f32 to vector<2x32xf32>
    %10 = arith.maximumf %8, %9 : vector<2x32xf32>
    %c0_8 = arith.constant 0 : index
    %c0_9 = arith.constant 0 : index
    %c0_10 = arith.constant 0 : index
    %11 = vector.load %arg15[%c0_8, %c0_9, %c0_10] : memref<1x32x128xbf16, #tpu.memory_space<vmem>>, vector<1x32x128xbf16>
    %12 = vector.shape_cast %11 : vector<1x32x128xbf16> to vector<32x128xbf16>
    %13 = arith.truncf %10 : vector<2x32xf32> to vector<2x32xbf16>
    %cst_11 = arith.constant dense<0.000000e+00> : vector<2x128xf32>
    %14 = tpu.matmul %13, %12, %cst_11 {dimension_numbers = #tpu.dot_dimension_numbers<[1], [0], [0], [1], [0, 0, 1, 1], [], []>} : vector<2x32xbf16>, vector<32x128xbf16>, vector<2x128xf32> -> vector<2x128xf32>
    %c0_12 = arith.constant 0 : index
    %c0_13 = arith.constant 0 : index
    %c0_14 = arith.constant 0 : index
    %15 = vector.load %arg16[%c0_12, %c0_13, %c0_14] : memref<1x1x128xf32, #tpu.memory_space<vmem>>, vector<1x1x128xf32>
    %16 = vector.shape_cast %15 : vector<1x1x128xf32> to vector<1x128xf32>
    %17 = vector.broadcast %16 : vector<1x128xf32> to vector<2x128xf32>
    %18 = arith.addf %14, %17 : vector<2x128xf32>
    %cst_15 = arith.constant 0.000000e+00 : f32
    %19 = vector.broadcast %cst_15 : f32 to vector<2x128xf32>
    %20 = arith.maximumf %18, %19 : vector<2x128xf32>
    %c0_16 = arith.constant 0 : index
    %c0_17 = arith.constant 0 : index
    %c0_18 = arith.constant 0 : index
    %21 = vector.load %arg4[%c0_16, %c0_17, %c0_18] : memref<1x1x80xf32, #tpu.memory_space<vmem>>, vector<1x1x80xf32>
    %22 = vector.shape_cast %21 : vector<1x1x80xf32> to vector<1x80xf32>
    %c0_19 = arith.constant 0 : index
    %c0_20 = arith.constant 0 : index
    %c0_21 = arith.constant 0 : index
    %23 = vector.load %arg6[%c0_19, %c0_20, %c0_21] : memref<1x1x144xf32, #tpu.memory_space<vmem>>, vector<1x1x144xf32>
    %24 = vector.shape_cast %23 : vector<1x1x144xf32> to vector<1x144xf32>
    %c0_22 = arith.constant 0 : index
    %c0_23 = arith.constant 0 : index
    %c0_24 = arith.constant 0 : index
    %25 = vector.load %arg8[%c0_22, %c0_23, %c0_24] : memref<1x1x256xf32, #tpu.memory_space<vmem>>, vector<1x1x256xf32>
    %26 = vector.shape_cast %25 : vector<1x1x256xf32> to vector<1x256xf32>
    %c0_25 = arith.constant 0 : index
    %c0_26 = arith.constant 0 : index
    %c0_27 = arith.constant 0 : index
    %27 = vector.load %arg10[%c0_25, %c0_26, %c0_27] : memref<1x1x448xf32, #tpu.memory_space<vmem>>, vector<1x1x448xf32>
    %28 = vector.shape_cast %27 : vector<1x1x448xf32> to vector<1x448xf32>
    %c0_28 = arith.constant 0 : index
    %c0_29 = arith.constant 0 : index
    %c0_30 = arith.constant 0 : index
    %29 = vector.load %arg12[%c0_28, %c0_29, %c0_30] : memref<1x1x128xf32, #tpu.memory_space<vmem>>, vector<1x1x128xf32>
    %30 = vector.shape_cast %29 : vector<1x1x128xf32> to vector<1x128xf32>
    %c0_31 = arith.constant 0 : index
    %c0_32 = arith.constant 0 : index
    %c0_33 = arith.constant 0 : index
    %31 = vector.load %arg17[%c0_31, %c0_32, %c0_33] : memref<1x128x128xbf16, #tpu.memory_space<vmem>>, vector<1x128x128xbf16>
    %32 = vector.shape_cast %31 : vector<1x128x128xbf16> to vector<128x128xbf16>
    %c0_34 = arith.constant 0 : index
    %c0_35 = arith.constant 0 : index
    %c0_36 = arith.constant 0 : index
    %33 = vector.load %arg18[%c0_34, %c0_35, %c0_36] : memref<1x128x128xbf16, #tpu.memory_space<vmem>>, vector<1x128x128xbf16>
    %34 = vector.shape_cast %33 : vector<1x128x128xbf16> to vector<128x128xbf16>
    %c0_37 = arith.constant 0 : index
    %c0_38 = arith.constant 0 : index
    %c0_39 = arith.constant 0 : index
    %35 = vector.load %arg19[%c0_37, %c0_38, %c0_39] : memref<1x1x128xf32, #tpu.memory_space<vmem>>, vector<1x1x128xf32>
    %36 = vector.shape_cast %35 : vector<1x1x128xf32> to vector<1x128xf32>
    %c0_40 = arith.constant 0 : index
    %c0_41 = arith.constant 0 : index
    %37 = vector.load %arg1[%c0_40, %c0_41] : memref<24x88xf32, #tpu.memory_space<vmem>>, vector<12x88xf32>
    %38 = vector.extract_strided_slice %37 {offsets = [0, 0], sizes = [10, 88], strides = [1, 1]} : vector<12x88xf32> to vector<10x88xf32>
    %c0_42 = arith.constant 0 : index
    %c0_43 = arith.constant 0 : index
    %c0_44 = arith.constant 0 : index
    %c0_45 = arith.constant 0 : index
    %39 = vector.load %arg3[%c0_42, %c0_43, %c0_44, %c0_45] : memref<1x3x88x80xbf16, #tpu.memory_space<vmem>>, vector<1x1x88x80xbf16>
    %40 = vector.shape_cast %39 : vector<1x1x88x80xbf16> to vector<88x80xbf16>
    %41 = arith.truncf %38 : vector<10x88xf32> to vector<10x88xbf16>
    %cst_46 = arith.constant dense<0.000000e+00> : vector<10x80xf32>
    %42 = tpu.matmul %41, %40, %cst_46 {dimension_numbers = #tpu.dot_dimension_numbers<[1], [0], [0], [1], [0, 0, 1, 1], [], []>} : vector<10x88xbf16>, vector<88x80xbf16>, vector<10x80xf32> -> vector<10x80xf32>
    %43 = vector.broadcast %22 : vector<1x80xf32> to vector<10x80xf32>
    %44 = arith.addf %43, %42 : vector<10x80xf32>
    %45 = vector.extract_strided_slice %37 {offsets = [1, 0], sizes = [10, 88], strides = [1, 1]} : vector<12x88xf32> to vector<10x88xf32>
    %c0_47 = arith.constant 0 : index
    %c1 = arith.constant 1 : index
    %c0_48 = arith.constant 0 : index
    %c0_49 = arith.constant 0 : index
    %46 = vector.load %arg3[%c0_47, %c1, %c0_48, %c0_49] : memref<1x3x88x80xbf16, #tpu.memory_space<vmem>>, vector<1x1x88x80xbf16>
    %47 = vector.shape_cast %46 : vector<1x1x88x80xbf16> to vector<88x80xbf16>
    %48 = arith.truncf %45 : vector<10x88xf32> to vector<10x88xbf16>
    %cst_50 = arith.constant dense<0.000000e+00> : vector<10x80xf32>
    %49 = tpu.matmul %48, %47, %cst_50 {dimension_numbers = #tpu.dot_dimension_numbers<[1], [0], [0], [1], [0, 0, 1, 1], [], []>} : vector<10x88xbf16>, vector<88x80xbf16>, vector<10x80xf32> -> vector<10x80xf32>
    %50 = arith.addf %44, %49 : vector<10x80xf32>
    %51 = vector.extract_strided_slice %37 {offsets = [2, 0], sizes = [10, 88], strides = [1, 1]} : vector<12x88xf32> to vector<10x88xf32>
    %c0_51 = arith.constant 0 : index
    %c2 = arith.constant 2 : index
    %c0_52 = arith.constant 0 : index
    %c0_53 = arith.constant 0 : index
    %52 = vector.load %arg3[%c0_51, %c2, %c0_52, %c0_53] : memref<1x3x88x80xbf16, #tpu.memory_space<vmem>>, vector<1x1x88x80xbf16>
    %53 = vector.shape_cast %52 : vector<1x1x88x80xbf16> to vector<88x80xbf16>
    %54 = arith.truncf %51 : vector<10x88xf32> to vector<10x88xbf16>
    %cst_54 = arith.constant dense<0.000000e+00> : vector<10x80xf32>
    %55 = tpu.matmul %54, %53, %cst_54 {dimension_numbers = #tpu.dot_dimension_numbers<[1], [0], [0], [1], [0, 0, 1, 1], [], []>} : vector<10x88xbf16>, vector<88x80xbf16>, vector<10x80xf32> -> vector<10x80xf32>
    %56 = arith.addf %50, %55 : vector<10x80xf32>
    %cst_55 = arith.constant 0.000000e+00 : f32
    %57 = vector.broadcast %cst_55 : f32 to vector<10x80xf32>
    %58 = arith.maximumf %56, %57 : vector<10x80xf32>
    %59 = vector.extract_strided_slice %58 {offsets = [0, 0], sizes = [8, 80], strides = [1, 1]} : vector<10x80xf32> to vector<8x80xf32>
    %c0_56 = arith.constant 0 : index
    %c0_57 = arith.constant 0 : index
    %c0_58 = arith.constant 0 : index
    %c0_59 = arith.constant 0 : index
    %60 = vector.load %arg5[%c0_56, %c0_57, %c0_58, %c0_59] : memref<1x3x80x144xbf16, #tpu.memory_space<vmem>>, vector<1x1x80x144xbf16>
    %61 = vector.shape_cast %60 : vector<1x1x80x144xbf16> to vector<80x144xbf16>
    %62 = arith.truncf %59 : vector<8x80xf32> to vector<8x80xbf16>
    %cst_60 = arith.constant dense<0.000000e+00> : vector<8x144xf32>
    %63 = tpu.matmul %62, %61, %cst_60 {dimension_numbers = #tpu.dot_dimension_numbers<[1], [0], [0], [1], [0, 0, 1, 1], [], []>} : vector<8x80xbf16>, vector<80x144xbf16>, vector<8x144xf32> -> vector<8x144xf32>
    %64 = vector.broadcast %24 : vector<1x144xf32> to vector<8x144xf32>
    %65 = arith.addf %64, %63 : vector<8x144xf32>
    %66 = vector.extract_strided_slice %58 {offsets = [1, 0], sizes = [8, 80], strides = [1, 1]} : vector<10x80xf32> to vector<8x80xf32>
    %c0_61 = arith.constant 0 : index
    %c1_62 = arith.constant 1 : index
    %c0_63 = arith.constant 0 : index
    %c0_64 = arith.constant 0 : index
    %67 = vector.load %arg5[%c0_61, %c1_62, %c0_63, %c0_64] : memref<1x3x80x144xbf16, #tpu.memory_space<vmem>>, vector<1x1x80x144xbf16>
    %68 = vector.shape_cast %67 : vector<1x1x80x144xbf16> to vector<80x144xbf16>
    %69 = arith.truncf %66 : vector<8x80xf32> to vector<8x80xbf16>
    %cst_65 = arith.constant dense<0.000000e+00> : vector<8x144xf32>
    %70 = tpu.matmul %69, %68, %cst_65 {dimension_numbers = #tpu.dot_dimension_numbers<[1], [0], [0], [1], [0, 0, 1, 1], [], []>} : vector<8x80xbf16>, vector<80x144xbf16>, vector<8x144xf32> -> vector<8x144xf32>
    %71 = arith.addf %65, %70 : vector<8x144xf32>
    %72 = vector.extract_strided_slice %58 {offsets = [2, 0], sizes = [8, 80], strides = [1, 1]} : vector<10x80xf32> to vector<8x80xf32>
    %c0_66 = arith.constant 0 : index
    %c2_67 = arith.constant 2 : index
    %c0_68 = arith.constant 0 : index
    %c0_69 = arith.constant 0 : index
    %73 = vector.load %arg5[%c0_66, %c2_67, %c0_68, %c0_69] : memref<1x3x80x144xbf16, #tpu.memory_space<vmem>>, vector<1x1x80x144xbf16>
    %74 = vector.shape_cast %73 : vector<1x1x80x144xbf16> to vector<80x144xbf16>
    %75 = arith.truncf %72 : vector<8x80xf32> to vector<8x80xbf16>
    %cst_70 = arith.constant dense<0.000000e+00> : vector<8x144xf32>
    %76 = tpu.matmul %75, %74, %cst_70 {dimension_numbers = #tpu.dot_dimension_numbers<[1], [0], [0], [1], [0, 0, 1, 1], [], []>} : vector<8x80xbf16>, vector<80x144xbf16>, vector<8x144xf32> -> vector<8x144xf32>
    %77 = arith.addf %71, %76 : vector<8x144xf32>
    %cst_71 = arith.constant 0.000000e+00 : f32
    %78 = vector.broadcast %cst_71 : f32 to vector<8x144xf32>
    %79 = arith.maximumf %77, %78 : vector<8x144xf32>
    %80 = vector.extract_strided_slice %79 {offsets = [0, 0], sizes = [6, 144], strides = [1, 1]} : vector<8x144xf32> to vector<6x144xf32>
    %c0_72 = arith.constant 0 : index
    %c0_73 = arith.constant 0 : index
    %c0_74 = arith.constant 0 : index
    %c0_75 = arith.constant 0 : index
    %81 = vector.load %arg7[%c0_72, %c0_73, %c0_74, %c0_75] : memref<1x3x144x256xbf16, #tpu.memory_space<vmem>>, vector<1x1x144x256xbf16>
    %82 = vector.shape_cast %81 : vector<1x1x144x256xbf16> to vector<144x256xbf16>
    %83 = arith.truncf %80 : vector<6x144xf32> to vector<6x144xbf16>
    %cst_76 = arith.constant dense<0.000000e+00> : vector<6x256xf32>
    %84 = tpu.matmul %83, %82, %cst_76 {dimension_numbers = #tpu.dot_dimension_numbers<[1], [0], [0], [1], [0, 0, 1, 1], [], []>} : vector<6x144xbf16>, vector<144x256xbf16>, vector<6x256xf32> -> vector<6x256xf32>
    %85 = vector.broadcast %26 : vector<1x256xf32> to vector<6x256xf32>
    %86 = arith.addf %85, %84 : vector<6x256xf32>
    %87 = vector.extract_strided_slice %79 {offsets = [1, 0], sizes = [6, 144], strides = [1, 1]} : vector<8x144xf32> to vector<6x144xf32>
    %c0_77 = arith.constant 0 : index
    %c1_78 = arith.constant 1 : index
    %c0_79 = arith.constant 0 : index
    %c0_80 = arith.constant 0 : index
    %88 = vector.load %arg7[%c0_77, %c1_78, %c0_79, %c0_80] : memref<1x3x144x256xbf16, #tpu.memory_space<vmem>>, vector<1x1x144x256xbf16>
    %89 = vector.shape_cast %88 : vector<1x1x144x256xbf16> to vector<144x256xbf16>
    %90 = arith.truncf %87 : vector<6x144xf32> to vector<6x144xbf16>
    %cst_81 = arith.constant dense<0.000000e+00> : vector<6x256xf32>
    %91 = tpu.matmul %90, %89, %cst_81 {dimension_numbers = #tpu.dot_dimension_numbers<[1], [0], [0], [1], [0, 0, 1, 1], [], []>} : vector<6x144xbf16>, vector<144x256xbf16>, vector<6x256xf32> -> vector<6x256xf32>
    %92 = arith.addf %86, %91 : vector<6x256xf32>
    %93 = vector.extract_strided_slice %79 {offsets = [2, 0], sizes = [6, 144], strides = [1, 1]} : vector<8x144xf32> to vector<6x144xf32>
    %c0_82 = arith.constant 0 : index
    %c2_83 = arith.constant 2 : index
    %c0_84 = arith.constant 0 : index
    %c0_85 = arith.constant 0 : index
    %94 = vector.load %arg7[%c0_82, %c2_83, %c0_84, %c0_85] : memref<1x3x144x256xbf16, #tpu.memory_space<vmem>>, vector<1x1x144x256xbf16>
    %95 = vector.shape_cast %94 : vector<1x1x144x256xbf16> to vector<144x256xbf16>
    %96 = arith.truncf %93 : vector<6x144xf32> to vector<6x144xbf16>
    %cst_86 = arith.constant dense<0.000000e+00> : vector<6x256xf32>
    %97 = tpu.matmul %96, %95, %cst_86 {dimension_numbers = #tpu.dot_dimension_numbers<[1], [0], [0], [1], [0, 0, 1, 1], [], []>} : vector<6x144xbf16>, vector<144x256xbf16>, vector<6x256xf32> -> vector<6x256xf32>
    %98 = arith.addf %92, %97 : vector<6x256xf32>
    %cst_87 = arith.constant 0.000000e+00 : f32
    %99 = vector.broadcast %cst_87 : f32 to vector<6x256xf32>
    %100 = arith.maximumf %98, %99 : vector<6x256xf32>
    %101 = vector.extract_strided_slice %100 {offsets = [0, 0], sizes = [4, 256], strides = [1, 1]} : vector<6x256xf32> to vector<4x256xf32>
    %c0_88 = arith.constant 0 : index
    %c0_89 = arith.constant 0 : index
    %c0_90 = arith.constant 0 : index
    %c0_91 = arith.constant 0 : index
    %102 = vector.load %arg9[%c0_88, %c0_89, %c0_90, %c0_91] : memref<1x3x256x448xbf16, #tpu.memory_space<vmem>>, vector<1x1x256x448xbf16>
    %103 = vector.shape_cast %102 : vector<1x1x256x448xbf16> to vector<256x448xbf16>
    %104 = arith.truncf %101 : vector<4x256xf32> to vector<4x256xbf16>
    %cst_92 = arith.constant dense<0.000000e+00> : vector<4x448xf32>
    %105 = tpu.matmul %104, %103, %cst_92 {dimension_numbers = #tpu.dot_dimension_numbers<[1], [0], [0], [1], [0, 0, 1, 1], [], []>} : vector<4x256xbf16>, vector<256x448xbf16>, vector<4x448xf32> -> vector<4x448xf32>
    %106 = vector.broadcast %28 : vector<1x448xf32> to vector<4x448xf32>
    %107 = arith.addf %106, %105 : vector<4x448xf32>
    %108 = vector.extract_strided_slice %100 {offsets = [1, 0], sizes = [4, 256], strides = [1, 1]} : vector<6x256xf32> to vector<4x256xf32>
    %c0_93 = arith.constant 0 : index
    %c1_94 = arith.constant 1 : index
    %c0_95 = arith.constant 0 : index
    %c0_96 = arith.constant 0 : index
    %109 = vector.load %arg9[%c0_93, %c1_94, %c0_95, %c0_96] : memref<1x3x256x448xbf16, #tpu.memory_space<vmem>>, vector<1x1x256x448xbf16>
    %110 = vector.shape_cast %109 : vector<1x1x256x448xbf16> to vector<256x448xbf16>
    %111 = arith.truncf %108 : vector<4x256xf32> to vector<4x256xbf16>
    %cst_97 = arith.constant dense<0.000000e+00> : vector<4x448xf32>
    %112 = tpu.matmul %111, %110, %cst_97 {dimension_numbers = #tpu.dot_dimension_numbers<[1], [0], [0], [1], [0, 0, 1, 1], [], []>} : vector<4x256xbf16>, vector<256x448xbf16>, vector<4x448xf32> -> vector<4x448xf32>
    %113 = arith.addf %107, %112 : vector<4x448xf32>
    %114 = vector.extract_strided_slice %100 {offsets = [2, 0], sizes = [4, 256], strides = [1, 1]} : vector<6x256xf32> to vector<4x256xf32>
    %c0_98 = arith.constant 0 : index
    %c2_99 = arith.constant 2 : index
    %c0_100 = arith.constant 0 : index
    %c0_101 = arith.constant 0 : index
    %115 = vector.load %arg9[%c0_98, %c2_99, %c0_100, %c0_101] : memref<1x3x256x448xbf16, #tpu.memory_space<vmem>>, vector<1x1x256x448xbf16>
    %116 = vector.shape_cast %115 : vector<1x1x256x448xbf16> to vector<256x448xbf16>
    %117 = arith.truncf %114 : vector<4x256xf32> to vector<4x256xbf16>
    %cst_102 = arith.constant dense<0.000000e+00> : vector<4x448xf32>
    %118 = tpu.matmul %117, %116, %cst_102 {dimension_numbers = #tpu.dot_dimension_numbers<[1], [0], [0], [1], [0, 0, 1, 1], [], []>} : vector<4x256xbf16>, vector<256x448xbf16>, vector<4x448xf32> -> vector<4x448xf32>
    %119 = arith.addf %113, %118 : vector<4x448xf32>
    %cst_103 = arith.constant 0.000000e+00 : f32
    %120 = vector.broadcast %cst_103 : f32 to vector<4x448xf32>
    %121 = arith.maximumf %119, %120 : vector<4x448xf32>
    %122 = vector.extract_strided_slice %121 {offsets = [0, 0], sizes = [1, 448], strides = [1, 1]} : vector<4x448xf32> to vector<1x448xf32>
    %c0_104 = arith.constant 0 : index
    %c0_105 = arith.constant 0 : index
    %c0_106 = arith.constant 0 : index
    %123 = vector.load %arg11[%c0_104, %c0_105, %c0_106] : memref<1x1792x128xbf16, #tpu.memory_space<vmem>>, vector<1x448x128xbf16>
    %124 = vector.shape_cast %123 : vector<1x448x128xbf16> to vector<448x128xbf16>
    %125 = arith.truncf %122 : vector<1x448xf32> to vector<1x448xbf16>
    %cst_107 = arith.constant dense<0.000000e+00> : vector<1x128xf32>
    %126 = tpu.matmul %125, %124, %cst_107 {dimension_numbers = #tpu.dot_dimension_numbers<[1], [0], [0], [1], [0, 0, 1, 1], [], []>} : vector<1x448xbf16>, vector<448x128xbf16>, vector<1x128xf32> -> vector<1x128xf32>
    %127 = arith.addf %30, %126 : vector<1x128xf32>
    %128 = vector.extract_strided_slice %121 {offsets = [1, 0], sizes = [1, 448], strides = [1, 1]} : vector<4x448xf32> to vector<1x448xf32>
    %c0_108 = arith.constant 0 : index
    %c448 = arith.constant 448 : index
    %c0_109 = arith.constant 0 : index
    %129 = vector.load %arg11[%c0_108, %c448, %c0_109] : memref<1x1792x128xbf16, #tpu.memory_space<vmem>>, vector<1x448x128xbf16>
    %130 = vector.shape_cast %129 : vector<1x448x128xbf16> to vector<448x128xbf16>
    %131 = arith.truncf %128 : vector<1x448xf32> to vector<1x448xbf16>
    %cst_110 = arith.constant dense<0.000000e+00> : vector<1x128xf32>
    %132 = tpu.matmul %131, %130, %cst_110 {dimension_numbers = #tpu.dot_dimension_numbers<[1], [0], [0], [1], [0, 0, 1, 1], [], []>} : vector<1x448xbf16>, vector<448x128xbf16>, vector<1x128xf32> -> vector<1x128xf32>
    %133 = arith.addf %127, %132 : vector<1x128xf32>
    %134 = vector.extract_strided_slice %121 {offsets = [2, 0], sizes = [1, 448], strides = [1, 1]} : vector<4x448xf32> to vector<1x448xf32>
    %c0_111 = arith.constant 0 : index
    %c896 = arith.constant 896 : index
    %c0_112 = arith.constant 0 : index
    %135 = vector.load %arg11[%c0_111, %c896, %c0_112] : memref<1x1792x128xbf16, #tpu.memory_space<vmem>>, vector<1x448x128xbf16>
    %136 = vector.shape_cast %135 : vector<1x448x128xbf16> to vector<448x128xbf16>
    %137 = arith.truncf %134 : vector<1x448xf32> to vector<1x448xbf16>
    %cst_113 = arith.constant dense<0.000000e+00> : vector<1x128xf32>
    %138 = tpu.matmul %137, %136, %cst_113 {dimension_numbers = #tpu.dot_dimension_numbers<[1], [0], [0], [1], [0, 0, 1, 1], [], []>} : vector<1x448xbf16>, vector<448x128xbf16>, vector<1x128xf32> -> vector<1x128xf32>
    %139 = arith.addf %133, %138 : vector<1x128xf32>
    %140 = vector.extract_strided_slice %121 {offsets = [3, 0], sizes = [1, 448], strides = [1, 1]} : vector<4x448xf32> to vector<1x448xf32>
    %c0_114 = arith.constant 0 : index
    %c1344 = arith.constant 1344 : index
    %c0_115 = arith.constant 0 : index
    %141 = vector.load %arg11[%c0_114, %c1344, %c0_115] : memref<1x1792x128xbf16, #tpu.memory_space<vmem>>, vector<1x448x128xbf16>
    %142 = vector.shape_cast %141 : vector<1x448x128xbf16> to vector<448x128xbf16>
    %143 = arith.truncf %140 : vector<1x448xf32> to vector<1x448xbf16>
    %cst_116 = arith.constant dense<0.000000e+00> : vector<1x128xf32>
    %144 = tpu.matmul %143, %142, %cst_116 {dimension_numbers = #tpu.dot_dimension_numbers<[1], [0], [0], [1], [0, 0, 1, 1], [], []>} : vector<1x448xbf16>, vector<448x128xbf16>, vector<1x128xf32> -> vector<1x128xf32>
    %145 = arith.addf %139, %144 : vector<1x128xf32>
    %cst_117 = arith.constant 0.000000e+00 : f32
    %146 = vector.broadcast %cst_117 : f32 to vector<1x128xf32>
    %147 = arith.maximumf %145, %146 : vector<1x128xf32>
    %148 = arith.truncf %147 : vector<1x128xf32> to vector<1x128xbf16>
    %cst_118 = arith.constant dense<0.000000e+00> : vector<1x128xf32>
    %149 = tpu.matmul %148, %32, %cst_118 {dimension_numbers = #tpu.dot_dimension_numbers<[1], [0], [0], [1], [0, 0, 1, 1], [], []>} : vector<1x128xbf16>, vector<128x128xbf16>, vector<1x128xf32> -> vector<1x128xf32>
    %150 = vector.extract_strided_slice %20 {offsets = [0, 0], sizes = [1, 128], strides = [1, 1]} : vector<2x128xf32> to vector<1x128xf32>
    %151 = arith.truncf %150 : vector<1x128xf32> to vector<1x128xbf16>
    %cst_119 = arith.constant dense<0.000000e+00> : vector<1x128xf32>
    %152 = tpu.matmul %151, %34, %cst_119 {dimension_numbers = #tpu.dot_dimension_numbers<[1], [0], [0], [1], [0, 0, 1, 1], [], []>} : vector<1x128xbf16>, vector<128x128xbf16>, vector<1x128xf32> -> vector<1x128xf32>
    %153 = arith.addf %149, %152 : vector<1x128xf32>
    %154 = arith.addf %153, %36 : vector<1x128xf32>
    %155 = math.tanh %154 : vector<1x128xf32>
    %c0_120 = arith.constant 0 : index
    %c0_121 = arith.constant 0 : index
    %c0_122 = arith.constant 0 : index
    %156 = vector.load %arg20[%c0_120, %c0_121, %c0_122] : memref<1x2x128xf32, #tpu.memory_space<vmem>>, vector<1x1x128xf32>
    %157 = vector.shape_cast %156 : vector<1x1x128xf32> to vector<1x128xf32>
    %158 = vector.shape_cast %155 : vector<1x128xf32> to vector<1x1x128xf32>
    tpu.vector_store %arg20[%c0_120, %c0_121, %c0_122], %158 {strides = array<i32>} : memref<1x2x128xf32, #tpu.memory_space<vmem>>, vector<1x1x128xf32>,
    %c12 = arith.constant 12 : index
    %c0_123 = arith.constant 0 : index
    %159 = vector.load %arg1[%c12, %c0_123] : memref<24x88xf32, #tpu.memory_space<vmem>>, vector<12x88xf32>
    %160 = vector.extract_strided_slice %159 {offsets = [0, 0], sizes = [10, 88], strides = [1, 1]} : vector<12x88xf32> to vector<10x88xf32>
    %c0_124 = arith.constant 0 : index
    %c0_125 = arith.constant 0 : index
    %c0_126 = arith.constant 0 : index
    %c0_127 = arith.constant 0 : index
    %161 = vector.load %arg3[%c0_124, %c0_125, %c0_126, %c0_127] : memref<1x3x88x80xbf16, #tpu.memory_space<vmem>>, vector<1x1x88x80xbf16>
    %162 = vector.shape_cast %161 : vector<1x1x88x80xbf16> to vector<88x80xbf16>
    %163 = arith.truncf %160 : vector<10x88xf32> to vector<10x88xbf16>
    %cst_128 = arith.constant dense<0.000000e+00> : vector<10x80xf32>
    %164 = tpu.matmul %163, %162, %cst_128 {dimension_numbers = #tpu.dot_dimension_numbers<[1], [0], [0], [1], [0, 0, 1, 1], [], []>} : vector<10x88xbf16>, vector<88x80xbf16>, vector<10x80xf32> -> vector<10x80xf32>
    %165 = vector.broadcast %22 : vector<1x80xf32> to vector<10x80xf32>
    %166 = arith.addf %165, %164 : vector<10x80xf32>
    %167 = vector.extract_strided_slice %159 {offsets = [1, 0], sizes = [10, 88], strides = [1, 1]} : vector<12x88xf32> to vector<10x88xf32>
    %c0_129 = arith.constant 0 : index
    %c1_130 = arith.constant 1 : index
    %c0_131 = arith.constant 0 : index
    %c0_132 = arith.constant 0 : index
    %168 = vector.load %arg3[%c0_129, %c1_130, %c0_131, %c0_132] : memref<1x3x88x80xbf16, #tpu.memory_space<vmem>>, vector<1x1x88x80xbf16>
    %169 = vector.shape_cast %168 : vector<1x1x88x80xbf16> to vector<88x80xbf16>
    %170 = arith.truncf %167 : vector<10x88xf32> to vector<10x88xbf16>
    %cst_133 = arith.constant dense<0.000000e+00> : vector<10x80xf32>
    %171 = tpu.matmul %170, %169, %cst_133 {dimension_numbers = #tpu.dot_dimension_numbers<[1], [0], [0], [1], [0, 0, 1, 1], [], []>} : vector<10x88xbf16>, vector<88x80xbf16>, vector<10x80xf32> -> vector<10x80xf32>
    %172 = arith.addf %166, %171 : vector<10x80xf32>
    %173 = vector.extract_strided_slice %159 {offsets = [2, 0], sizes = [10, 88], strides = [1, 1]} : vector<12x88xf32> to vector<10x88xf32>
    %c0_134 = arith.constant 0 : index
    %c2_135 = arith.constant 2 : index
    %c0_136 = arith.constant 0 : index
    %c0_137 = arith.constant 0 : index
    %174 = vector.load %arg3[%c0_134, %c2_135, %c0_136, %c0_137] : memref<1x3x88x80xbf16, #tpu.memory_space<vmem>>, vector<1x1x88x80xbf16>
    %175 = vector.shape_cast %174 : vector<1x1x88x80xbf16> to vector<88x80xbf16>
    %176 = arith.truncf %173 : vector<10x88xf32> to vector<10x88xbf16>
    %cst_138 = arith.constant dense<0.000000e+00> : vector<10x80xf32>
    %177 = tpu.matmul %176, %175, %cst_138 {dimension_numbers = #tpu.dot_dimension_numbers<[1], [0], [0], [1], [0, 0, 1, 1], [], []>} : vector<10x88xbf16>, vector<88x80xbf16>, vector<10x80xf32> -> vector<10x80xf32>
    %178 = arith.addf %172, %177 : vector<10x80xf32>
    %cst_139 = arith.constant 0.000000e+00 : f32
    %179 = vector.broadcast %cst_139 : f32 to vector<10x80xf32>
    %180 = arith.maximumf %178, %179 : vector<10x80xf32>
    %181 = vector.extract_strided_slice %180 {offsets = [0, 0], sizes = [8, 80], strides = [1, 1]} : vector<10x80xf32> to vector<8x80xf32>
    %c0_140 = arith.constant 0 : index
    %c0_141 = arith.constant 0 : index
    %c0_142 = arith.constant 0 : index
    %c0_143 = arith.constant 0 : index
    %182 = vector.load %arg5[%c0_140, %c0_141, %c0_142, %c0_143] : memref<1x3x80x144xbf16, #tpu.memory_space<vmem>>, vector<1x1x80x144xbf16>
    %183 = vector.shape_cast %182 : vector<1x1x80x144xbf16> to vector<80x144xbf16>
    %184 = arith.truncf %181 : vector<8x80xf32> to vector<8x80xbf16>
    %cst_144 = arith.constant dense<0.000000e+00> : vector<8x144xf32>
    %185 = tpu.matmul %184, %183, %cst_144 {dimension_numbers = #tpu.dot_dimension_numbers<[1], [0], [0], [1], [0, 0, 1, 1], [], []>} : vector<8x80xbf16>, vector<80x144xbf16>, vector<8x144xf32> -> vector<8x144xf32>
    %186 = vector.broadcast %24 : vector<1x144xf32> to vector<8x144xf32>
    %187 = arith.addf %186, %185 : vector<8x144xf32>
    %188 = vector.extract_strided_slice %180 {offsets = [1, 0], sizes = [8, 80], strides = [1, 1]} : vector<10x80xf32> to vector<8x80xf32>
    %c0_145 = arith.constant 0 : index
    %c1_146 = arith.constant 1 : index
    %c0_147 = arith.constant 0 : index
    %c0_148 = arith.constant 0 : index
    %189 = vector.load %arg5[%c0_145, %c1_146, %c0_147, %c0_148] : memref<1x3x80x144xbf16, #tpu.memory_space<vmem>>, vector<1x1x80x144xbf16>
    %190 = vector.shape_cast %189 : vector<1x1x80x144xbf16> to vector<80x144xbf16>
    %191 = arith.truncf %188 : vector<8x80xf32> to vector<8x80xbf16>
    %cst_149 = arith.constant dense<0.000000e+00> : vector<8x144xf32>
    %192 = tpu.matmul %191, %190, %cst_149 {dimension_numbers = #tpu.dot_dimension_numbers<[1], [0], [0], [1], [0, 0, 1, 1], [], []>} : vector<8x80xbf16>, vector<80x144xbf16>, vector<8x144xf32> -> vector<8x144xf32>
    %193 = arith.addf %187, %192 : vector<8x144xf32>
    %194 = vector.extract_strided_slice %180 {offsets = [2, 0], sizes = [8, 80], strides = [1, 1]} : vector<10x80xf32> to vector<8x80xf32>
    %c0_150 = arith.constant 0 : index
    %c2_151 = arith.constant 2 : index
    %c0_152 = arith.constant 0 : index
    %c0_153 = arith.constant 0 : index
    %195 = vector.load %arg5[%c0_150, %c2_151, %c0_152, %c0_153] : memref<1x3x80x144xbf16, #tpu.memory_space<vmem>>, vector<1x1x80x144xbf16>
    %196 = vector.shape_cast %195 : vector<1x1x80x144xbf16> to vector<80x144xbf16>
    %197 = arith.truncf %194 : vector<8x80xf32> to vector<8x80xbf16>
    %cst_154 = arith.constant dense<0.000000e+00> : vector<8x144xf32>
    %198 = tpu.matmul %197, %196, %cst_154 {dimension_numbers = #tpu.dot_dimension_numbers<[1], [0], [0], [1], [0, 0, 1, 1], [], []>} : vector<8x80xbf16>, vector<80x144xbf16>, vector<8x144xf32> -> vector<8x144xf32>
    %199 = arith.addf %193, %198 : vector<8x144xf32>
    %cst_155 = arith.constant 0.000000e+00 : f32
    %200 = vector.broadcast %cst_155 : f32 to vector<8x144xf32>
    %201 = arith.maximumf %199, %200 : vector<8x144xf32>
    %202 = vector.extract_strided_slice %201 {offsets = [0, 0], sizes = [6, 144], strides = [1, 1]} : vector<8x144xf32> to vector<6x144xf32>
    %c0_156 = arith.constant 0 : index
    %c0_157 = arith.constant 0 : index
    %c0_158 = arith.constant 0 : index
    %c0_159 = arith.constant 0 : index
    %203 = vector.load %arg7[%c0_156, %c0_157, %c0_158, %c0_159] : memref<1x3x144x256xbf16, #tpu.memory_space<vmem>>, vector<1x1x144x256xbf16>
    %204 = vector.shape_cast %203 : vector<1x1x144x256xbf16> to vector<144x256xbf16>
    %205 = arith.truncf %202 : vector<6x144xf32> to vector<6x144xbf16>
    %cst_160 = arith.constant dense<0.000000e+00> : vector<6x256xf32>
    %206 = tpu.matmul %205, %204, %cst_160 {dimension_numbers = #tpu.dot_dimension_numbers<[1], [0], [0], [1], [0, 0, 1, 1], [], []>} : vector<6x144xbf16>, vector<144x256xbf16>, vector<6x256xf32> -> vector<6x256xf32>
    %207 = vector.broadcast %26 : vector<1x256xf32> to vector<6x256xf32>
    %208 = arith.addf %207, %206 : vector<6x256xf32>
    %209 = vector.extract_strided_slice %201 {offsets = [1, 0], sizes = [6, 144], strides = [1, 1]} : vector<8x144xf32> to vector<6x144xf32>
    %c0_161 = arith.constant 0 : index
    %c1_162 = arith.constant 1 : index
    %c0_163 = arith.constant 0 : index
    %c0_164 = arith.constant 0 : index
    %210 = vector.load %arg7[%c0_161, %c1_162, %c0_163, %c0_164] : memref<1x3x144x256xbf16, #tpu.memory_space<vmem>>, vector<1x1x144x256xbf16>
    %211 = vector.shape_cast %210 : vector<1x1x144x256xbf16> to vector<144x256xbf16>
    %212 = arith.truncf %209 : vector<6x144xf32> to vector<6x144xbf16>
    %cst_165 = arith.constant dense<0.000000e+00> : vector<6x256xf32>
    %213 = tpu.matmul %212, %211, %cst_165 {dimension_numbers = #tpu.dot_dimension_numbers<[1], [0], [0], [1], [0, 0, 1, 1], [], []>} : vector<6x144xbf16>, vector<144x256xbf16>, vector<6x256xf32> -> vector<6x256xf32>
    %214 = arith.addf %208, %213 : vector<6x256xf32>
    %215 = vector.extract_strided_slice %201 {offsets = [2, 0], sizes = [6, 144], strides = [1, 1]} : vector<8x144xf32> to vector<6x144xf32>
    %c0_166 = arith.constant 0 : index
    %c2_167 = arith.constant 2 : index
    %c0_168 = arith.constant 0 : index
    %c0_169 = arith.constant 0 : index
    %216 = vector.load %arg7[%c0_166, %c2_167, %c0_168, %c0_169] : memref<1x3x144x256xbf16, #tpu.memory_space<vmem>>, vector<1x1x144x256xbf16>
    %217 = vector.shape_cast %216 : vector<1x1x144x256xbf16> to vector<144x256xbf16>
    %218 = arith.truncf %215 : vector<6x144xf32> to vector<6x144xbf16>
    %cst_170 = arith.constant dense<0.000000e+00> : vector<6x256xf32>
    %219 = tpu.matmul %218, %217, %cst_170 {dimension_numbers = #tpu.dot_dimension_numbers<[1], [0], [0], [1], [0, 0, 1, 1], [], []>} : vector<6x144xbf16>, vector<144x256xbf16>, vector<6x256xf32> -> vector<6x256xf32>
    %220 = arith.addf %214, %219 : vector<6x256xf32>
    %cst_171 = arith.constant 0.000000e+00 : f32
    %221 = vector.broadcast %cst_171 : f32 to vector<6x256xf32>
    %222 = arith.maximumf %220, %221 : vector<6x256xf32>
    %223 = vector.extract_strided_slice %222 {offsets = [0, 0], sizes = [4, 256], strides = [1, 1]} : vector<6x256xf32> to vector<4x256xf32>
    %c0_172 = arith.constant 0 : index
    %c0_173 = arith.constant 0 : index
    %c0_174 = arith.constant 0 : index
    %c0_175 = arith.constant 0 : index
    %224 = vector.load %arg9[%c0_172, %c0_173, %c0_174, %c0_175] : memref<1x3x256x448xbf16, #tpu.memory_space<vmem>>, vector<1x1x256x448xbf16>
    %225 = vector.shape_cast %224 : vector<1x1x256x448xbf16> to vector<256x448xbf16>
    %226 = arith.truncf %223 : vector<4x256xf32> to vector<4x256xbf16>
    %cst_176 = arith.constant dense<0.000000e+00> : vector<4x448xf32>
    %227 = tpu.matmul %226, %225, %cst_176 {dimension_numbers = #tpu.dot_dimension_numbers<[1], [0], [0], [1], [0, 0, 1, 1], [], []>} : vector<4x256xbf16>, vector<256x448xbf16>, vector<4x448xf32> -> vector<4x448xf32>
    %228 = vector.broadcast %28 : vector<1x448xf32> to vector<4x448xf32>
    %229 = arith.addf %228, %227 : vector<4x448xf32>
    %230 = vector.extract_strided_slice %222 {offsets = [1, 0], sizes = [4, 256], strides = [1, 1]} : vector<6x256xf32> to vector<4x256xf32>
    %c0_177 = arith.constant 0 : index
    %c1_178 = arith.constant 1 : index
    %c0_179 = arith.constant 0 : index
    %c0_180 = arith.constant 0 : index
    %231 = vector.load %arg9[%c0_177, %c1_178, %c0_179, %c0_180] : memref<1x3x256x448xbf16, #tpu.memory_space<vmem>>, vector<1x1x256x448xbf16>
    %232 = vector.shape_cast %231 : vector<1x1x256x448xbf16> to vector<256x448xbf16>
    %233 = arith.truncf %230 : vector<4x256xf32> to vector<4x256xbf16>
    %cst_181 = arith.constant dense<0.000000e+00> : vector<4x448xf32>
    %234 = tpu.matmul %233, %232, %cst_181 {dimension_numbers = #tpu.dot_dimension_numbers<[1], [0], [0], [1], [0, 0, 1, 1], [], []>} : vector<4x256xbf16>, vector<256x448xbf16>, vector<4x448xf32> -> vector<4x448xf32>
    %235 = arith.addf %229, %234 : vector<4x448xf32>
    %236 = vector.extract_strided_slice %222 {offsets = [2, 0], sizes = [4, 256], strides = [1, 1]} : vector<6x256xf32> to vector<4x256xf32>
    %c0_182 = arith.constant 0 : index
    %c2_183 = arith.constant 2 : index
    %c0_184 = arith.constant 0 : index
    %c0_185 = arith.constant 0 : index
    %237 = vector.load %arg9[%c0_182, %c2_183, %c0_184, %c0_185] : memref<1x3x256x448xbf16, #tpu.memory_space<vmem>>, vector<1x1x256x448xbf16>
    %238 = vector.shape_cast %237 : vector<1x1x256x448xbf16> to vector<256x448xbf16>
    %239 = arith.truncf %236 : vector<4x256xf32> to vector<4x256xbf16>
    %cst_186 = arith.constant dense<0.000000e+00> : vector<4x448xf32>
    %240 = tpu.matmul %239, %238, %cst_186 {dimension_numbers = #tpu.dot_dimension_numbers<[1], [0], [0], [1], [0, 0, 1, 1], [], []>} : vector<4x256xbf16>, vector<256x448xbf16>, vector<4x448xf32> -> vector<4x448xf32>
    %241 = arith.addf %235, %240 : vector<4x448xf32>
    %cst_187 = arith.constant 0.000000e+00 : f32
    %242 = vector.broadcast %cst_187 : f32 to vector<4x448xf32>
    %243 = arith.maximumf %241, %242 : vector<4x448xf32>
    %244 = vector.extract_strided_slice %243 {offsets = [0, 0], sizes = [1, 448], strides = [1, 1]} : vector<4x448xf32> to vector<1x448xf32>
    %c0_188 = arith.constant 0 : index
    %c0_189 = arith.constant 0 : index
    %c0_190 = arith.constant 0 : index
    %245 = vector.load %arg11[%c0_188, %c0_189, %c0_190] : memref<1x1792x128xbf16, #tpu.memory_space<vmem>>, vector<1x448x128xbf16>
    %246 = vector.shape_cast %245 : vector<1x448x128xbf16> to vector<448x128xbf16>
    %247 = arith.truncf %244 : vector<1x448xf32> to vector<1x448xbf16>
    %cst_191 = arith.constant dense<0.000000e+00> : vector<1x128xf32>
    %248 = tpu.matmul %247, %246, %cst_191 {dimension_numbers = #tpu.dot_dimension_numbers<[1], [0], [0], [1], [0, 0, 1, 1], [], []>} : vector<1x448xbf16>, vector<448x128xbf16>, vector<1x128xf32> -> vector<1x128xf32>
    %249 = arith.addf %30, %248 : vector<1x128xf32>
    %250 = vector.extract_strided_slice %243 {offsets = [1, 0], sizes = [1, 448], strides = [1, 1]} : vector<4x448xf32> to vector<1x448xf32>
    %c0_192 = arith.constant 0 : index
    %c448_193 = arith.constant 448 : index
    %c0_194 = arith.constant 0 : index
    %251 = vector.load %arg11[%c0_192, %c448_193, %c0_194] : memref<1x1792x128xbf16, #tpu.memory_space<vmem>>, vector<1x448x128xbf16>
    %252 = vector.shape_cast %251 : vector<1x448x128xbf16> to vector<448x128xbf16>
    %253 = arith.truncf %250 : vector<1x448xf32> to vector<1x448xbf16>
    %cst_195 = arith.constant dense<0.000000e+00> : vector<1x128xf32>
    %254 = tpu.matmul %253, %252, %cst_195 {dimension_numbers = #tpu.dot_dimension_numbers<[1], [0], [0], [1], [0, 0, 1, 1], [], []>} : vector<1x448xbf16>, vector<448x128xbf16>, vector<1x128xf32> -> vector<1x128xf32>
    %255 = arith.addf %249, %254 : vector<1x128xf32>
    %256 = vector.extract_strided_slice %243 {offsets = [2, 0], sizes = [1, 448], strides = [1, 1]} : vector<4x448xf32> to vector<1x448xf32>
    %c0_196 = arith.constant 0 : index
    %c896_197 = arith.constant 896 : index
    %c0_198 = arith.constant 0 : index
    %257 = vector.load %arg11[%c0_196, %c896_197, %c0_198] : memref<1x1792x128xbf16, #tpu.memory_space<vmem>>, vector<1x448x128xbf16>
    %258 = vector.shape_cast %257 : vector<1x448x128xbf16> to vector<448x128xbf16>
    %259 = arith.truncf %256 : vector<1x448xf32> to vector<1x448xbf16>
    %cst_199 = arith.constant dense<0.000000e+00> : vector<1x128xf32>
    %260 = tpu.matmul %259, %258, %cst_199 {dimension_numbers = #tpu.dot_dimension_numbers<[1], [0], [0], [1], [0, 0, 1, 1], [], []>} : vector<1x448xbf16>, vector<448x128xbf16>, vector<1x128xf32> -> vector<1x128xf32>
    %261 = arith.addf %255, %260 : vector<1x128xf32>
    %262 = vector.extract_strided_slice %243 {offsets = [3, 0], sizes = [1, 448], strides = [1, 1]} : vector<4x448xf32> to vector<1x448xf32>
    %c0_200 = arith.constant 0 : index
    %c1344_201 = arith.constant 1344 : index
    %c0_202 = arith.constant 0 : index
    %263 = vector.load %arg11[%c0_200, %c1344_201, %c0_202] : memref<1x1792x128xbf16, #tpu.memory_space<vmem>>, vector<1x448x128xbf16>
    %264 = vector.shape_cast %263 : vector<1x448x128xbf16> to vector<448x128xbf16>
    %265 = arith.truncf %262 : vector<1x448xf32> to vector<1x448xbf16>
    %cst_203 = arith.constant dense<0.000000e+00> : vector<1x128xf32>
    %266 = tpu.matmul %265, %264, %cst_203 {dimension_numbers = #tpu.dot_dimension_numbers<[1], [0], [0], [1], [0, 0, 1, 1], [], []>} : vector<1x448xbf16>, vector<448x128xbf16>, vector<1x128xf32> -> vector<1x128xf32>
    %267 = arith.addf %261, %266 : vector<1x128xf32>
    %cst_204 = arith.constant 0.000000e+00 : f32
    %268 = vector.broadcast %cst_204 : f32 to vector<1x128xf32>
    %269 = arith.maximumf %267, %268 : vector<1x128xf32>
    %270 = arith.truncf %269 : vector<1x128xf32> to vector<1x128xbf16>
    %cst_205 = arith.constant dense<0.000000e+00> : vector<1x128xf32>
    %271 = tpu.matmul %270, %32, %cst_205 {dimension_numbers = #tpu.dot_dimension_numbers<[1], [0], [0], [1], [0, 0, 1, 1], [], []>} : vector<1x128xbf16>, vector<128x128xbf16>, vector<1x128xf32> -> vector<1x128xf32>
    %272 = vector.extract_strided_slice %20 {offsets = [1, 0], sizes = [1, 128], strides = [1, 1]} : vector<2x128xf32> to vector<1x128xf32>
    %273 = arith.truncf %272 : vector<1x128xf32> to vector<1x128xbf16>
    %cst_206 = arith.constant dense<0.000000e+00> : vector<1x128xf32>
    %274 = tpu.matmul %273, %34, %cst_206 {dimension_numbers = #tpu.dot_dimension_numbers<[1], [0], [0], [1], [0, 0, 1, 1], [], []>} : vector<1x128xbf16>, vector<128x128xbf16>, vector<1x128xf32> -> vector<1x128xf32>
    %275 = arith.addf %271, %274 : vector<1x128xf32>
    %276 = arith.addf %275, %36 : vector<1x128xf32>
    %277 = math.tanh %276 : vector<1x128xf32>
    %c0_207 = arith.constant 0 : index
    %c1_208 = arith.constant 1 : index
    %c0_209 = arith.constant 0 : index
    %278 = vector.load %arg20[%c0_207, %c1_208, %c0_209] : memref<1x2x128xf32, #tpu.memory_space<vmem>>, vector<1x1x128xf32>
    %279 = vector.shape_cast %278 : vector<1x1x128xf32> to vector<1x128xf32>
    %280 = vector.shape_cast %277 : vector<1x128xf32> to vector<1x1x128xf32>
    tpu.vector_store %arg20[%c0_207, %c1_208, %c0_209], %280 {strides = array<i32>} : memref<1x2x128xf32, #tpu.memory_space<vmem>>, vector<1x1x128xf32>,
    return
  }
  func.func @transform_0(%arg0: i32) -> (i32, i32) {
    %c0_i32 = arith.constant 0 : i32
    %c0_i32_0 = arith.constant 0 : i32
    %c0_i32_1 = arith.constant 0 : i32
    return %c0_i32, %c0_i32_0 : i32, i32
  }
  func.func @transform_1(%arg0: i32) -> (i32, i32) {
    %c0_i32 = arith.constant 0 : i32
    %c0_i32_0 = arith.constant 0 : i32
    %c0_i32_1 = arith.constant 0 : i32
    return %c0_i32, %c0_i32_0 : i32, i32
  }
  func.func @transform_2(%arg0: i32) -> (i32, i32, i32, i32) {
    %c0_i32 = arith.constant 0 : i32
    %c0_i32_0 = arith.constant 0 : i32
    %c0_i32_1 = arith.constant 0 : i32
    %c0_i32_2 = arith.constant 0 : i32
    return %arg0, %c0_i32, %c0_i32_0, %c0_i32_1 : i32, i32, i32, i32
  }
  func.func @transform_3(%arg0: i32) -> (i32, i32, i32) {
    %c0_i32 = arith.constant 0 : i32
    %c0_i32_0 = arith.constant 0 : i32
    %c0_i32_1 = arith.constant 0 : i32
    return %arg0, %c0_i32, %c0_i32_0 : i32, i32, i32
  }
  func.func @transform_4(%arg0: i32) -> (i32, i32, i32, i32) {
    %c0_i32 = arith.constant 0 : i32
    %c0_i32_0 = arith.constant 0 : i32
    %c0_i32_1 = arith.constant 0 : i32
    %c0_i32_2 = arith.constant 0 : i32
    return %arg0, %c0_i32, %c0_i32_0, %c0_i32_1 : i32, i32, i32, i32
  }
  func.func @transform_5(%arg0: i32) -> (i32, i32, i32) {
    %c0_i32 = arith.constant 0 : i32
    %c0_i32_0 = arith.constant 0 : i32
    %c0_i32_1 = arith.constant 0 : i32
    return %arg0, %c0_i32, %c0_i32_0 : i32, i32, i32
  }
  func.func @transform_6(%arg0: i32) -> (i32, i32, i32, i32) {
    %c0_i32 = arith.constant 0 : i32
    %c0_i32_0 = arith.constant 0 : i32
    %c0_i32_1 = arith.constant 0 : i32
    %c0_i32_2 = arith.constant 0 : i32
    return %arg0, %c0_i32, %c0_i32_0, %c0_i32_1 : i32, i32, i32, i32
  }
  func.func @transform_7(%arg0: i32) -> (i32, i32, i32) {
    %c0_i32 = arith.constant 0 : i32
    %c0_i32_0 = arith.constant 0 : i32
    %c0_i32_1 = arith.constant 0 : i32
    return %arg0, %c0_i32, %c0_i32_0 : i32, i32, i32
  }
  func.func @transform_8(%arg0: i32) -> (i32, i32, i32, i32) {
    %c0_i32 = arith.constant 0 : i32
    %c0_i32_0 = arith.constant 0 : i32
    %c0_i32_1 = arith.constant 0 : i32
    %c0_i32_2 = arith.constant 0 : i32
    return %arg0, %c0_i32, %c0_i32_0, %c0_i32_1 : i32, i32, i32, i32
  }
  func.func @transform_9(%arg0: i32) -> (i32, i32, i32) {
    %c0_i32 = arith.constant 0 : i32
    %c0_i32_0 = arith.constant 0 : i32
    %c0_i32_1 = arith.constant 0 : i32
    return %arg0, %c0_i32, %c0_i32_0 : i32, i32, i32
  }
  func.func @transform_10(%arg0: i32) -> (i32, i32, i32) {
    %c0_i32 = arith.constant 0 : i32
    %c0_i32_0 = arith.constant 0 : i32
    %c0_i32_1 = arith.constant 0 : i32
    return %arg0, %c0_i32, %c0_i32_0 : i32, i32, i32
  }
  func.func @transform_11(%arg0: i32) -> (i32, i32, i32) {
    %c0_i32 = arith.constant 0 : i32
    %c0_i32_0 = arith.constant 0 : i32
    %c0_i32_1 = arith.constant 0 : i32
    return %arg0, %c0_i32, %c0_i32_0 : i32, i32, i32
  }
  func.func @transform_12(%arg0: i32) -> (i32, i32, i32) {
    %c0_i32 = arith.constant 0 : i32
    %c0_i32_0 = arith.constant 0 : i32
    %c0_i32_1 = arith.constant 0 : i32
    return %arg0, %c0_i32, %c0_i32_0 : i32, i32, i32
  }
  func.func @transform_13(%arg0: i32) -> (i32, i32, i32) {
    %c0_i32 = arith.constant 0 : i32
    %c0_i32_0 = arith.constant 0 : i32
    %c0_i32_1 = arith.constant 0 : i32
    return %arg0, %c0_i32, %c0_i32_0 : i32, i32, i32
  }
  func.func @transform_14(%arg0: i32) -> (i32, i32, i32) {
    %c0_i32 = arith.constant 0 : i32
    %c0_i32_0 = arith.constant 0 : i32
    %c0_i32_1 = arith.constant 0 : i32
    return %arg0, %c0_i32, %c0_i32_0 : i32, i32, i32
  }
  func.func @transform_15(%arg0: i32) -> (i32, i32, i32) {
    %c0_i32 = arith.constant 0 : i32
    %c0_i32_0 = arith.constant 0 : i32
    %c0_i32_1 = arith.constant 0 : i32
    return %arg0, %c0_i32, %c0_i32_0 : i32, i32, i32
  }
  func.func @transform_16(%arg0: i32) -> (i32, i32, i32) {
    %c0_i32 = arith.constant 0 : i32
    %c0_i32_0 = arith.constant 0 : i32
    %c0_i32_1 = arith.constant 0 : i32
    return %arg0, %c0_i32, %c0_i32_0 : i32, i32, i32
  }
  func.func @transform_17(%arg0: i32) -> (i32, i32, i32) {
    %c0_i32 = arith.constant 0 : i32
    %c0_i32_0 = arith.constant 0 : i32
    %c0_i32_1 = arith.constant 0 : i32
    return %arg0, %c0_i32, %c0_i32_0 : i32, i32, i32
  }
  func.func @transform_18(%arg0: i32) -> (i32, i32, i32) {
    %c0_i32 = arith.constant 0 : i32
    %c0_i32_0 = arith.constant 0 : i32
    %c0_i32_1 = arith.constant 0 : i32
    return %arg0, %c0_i32, %c0_i32_0 : i32, i32, i32
  }
  func.func @transform_19(%arg0: i32) -> (i32, i32, i32) {
    %c0_i32 = arith.constant 0 : i32
    %c0_i32_0 = arith.constant 0 : i32
    %c0_i32_1 = arith.constant 0 : i32
    return %arg0, %c0_i32, %c0_i32_0 : i32, i32, i32
  }
}

</mosaic_0001>

<bundles_post_ra>
// kernel: critic_forward.1
= control target key start
LH: loop header
LB: loop body
LE: loop exit
PB: predicated region body
PF: predicated region fallthrough
CT: control target
= control target key end

     0   :  { %s13822_s0 = inlined_call_operand.vmem [shape: f32[24,88], index: 0, kind: input, shape index: {}]   ;;  %s13823_s1 = inlined_call_operand.vmem [shape: f32[2,12], index: 1, kind: input, shape index: {}]   ;;  %s13824_s2 = inlined_call_operand.vmem [shape: bf16[2,3,88,80], index: 2, kind: input, shape index: {}]   ;;  %s13825_s3 = inlined_call_operand.vmem [shape: f32[2,1,80], index: 3, kind: input, shape index: {}]   ;;  %s13826_s4 = inlined_call_operand.vmem [shape: bf16[2,3,80,144], index: 4, kind: input, shape index: {}]   ;;  %s13827_s5 = inlined_call_operand.vmem [shape: f32[2,1,144], index: 5, kind: input, shape index: {}]   ;;  %s13828_s6 = inlined_call_operand.vmem [shape: bf16[2,3,144,256], index: 6, kind: input, shape index: {}]   ;;  %s13829_s7 = inlined_call_operand.vmem [shape: f32[2,1,256], index: 7, kind: input, shape index: {}]   ;;  %s13830_s8 = inlined_call_operand.vmem [shape: bf16[2,3,256,448], index: 8, kind: input, shape index: {}]   ;;  %s13831_s9 = inlined_call_operand.vmem [shape: f32[2,1,448], index: 9, kind: input, shape index: {}]   ;;  %s13832_s10 = inlined_call_operand.vmem [shape: bf16[2,1792,128], index: 10, kind: input, shape index: {}]   ;;  %s13833_s11 = inlined_call_operand.vmem [shape: f32[2,1,128], index: 11, kind: input, shape index: {}]   ;;  %s13834_s12 = inlined_call_operand.vmem [shape: bf16[2,12,32], index: 12, kind: input, shape index: {}]   ;;  %s13835_s13 = inlined_call_operand.vmem [shape: f32[2,1,32], index: 13, kind: input, shape index: {}]   ;;  %s13836_s14 = inlined_call_operand.vmem [shape: bf16[2,32,128], index: 14, kind: input, shape index: {}]   ;;  %s13837_s15 = inlined_call_operand.vmem [shape: f32[2,1,128], index: 15, kind: input, shape index: {}]   ;;  %s13838_s16 = inlined_call_operand.vmem [shape: bf16[2,128,128], index: 16, kind: input, shape index: {}]   ;;  %s13839_s17 = inlined_call_operand.vmem [shape: bf16[2,128,128], index: 17, kind: input, shape index: {}]   ;;  %s13840_s18 = inlined_call_operand.vmem [shape: f32[2,1,128], index: 18, kind: input, shape index: {}]   ;;  %s13841_s19 = inlined_call_operand.vmem [shape: f32[2,2,128], index: 19, kind: output, shape index: {}]  }
   0x1   :  { %13844 = sst [smem:[#allocation3_spill]] %s13822_s0  ;;  %s12388_s0 = smov 0  }
   0x2   :  { %13845 = sst [smem:[#allocation4_spill]] %s13823_s1 }
   0x3   :  { %13846 = sst [smem:[#allocation5_spill]] %s13824_s2 }
   0x4   :  { %13847 = sst [smem:[#allocation6_spill]] %s13825_s3 }
   0x5   :  { %13848 = sst [smem:[#allocation7_spill]] %s13840_s18 }
   0x6   :  { %13849 = sst [smem:[#allocation8_spill]] %s13841_s19 }
   0x7 LB: > { %13850 = sst [smem:[#allocation2_spill]] %s12283_s0  ;;  %s9246_s30 = sadd.s32 4294967295, %s12283_s0   ;;  %s12283_s0 = sphi %s12388_s0, %s29_s0  }
   0x8   : > { %p9250_p0 = scmp.ge.s32.totalorder %s12283_s0, 1  ;;  %p684_p1 = scmp.lt.s32.totalorder %s12283_s0, 3 }
   0xa   : > { %p685_p2 = pnand %p9250_p0, %p684_p1 }
   0xb   : > { %p806_p3 = scmp.lt.s32.totalorder (!%p685_p2), %s9246_s30, 1  ;;  %v12285_v0 = vmov (!%p685_p2), 0.0   ;;  %vm12286_vm0 = vmmov (!%p685_p2), 0   ;;  %vm903_vm1 = vcmask (!%p685_p2), 1045504   ;;  %s13851_s3 = sld [smem:[#allocation5_spill]] (!%p685_p2)  ;;  %vm899_vm2 = vcmask (!%p685_p2), 97280  }
   0xc   : > { %688 = sbr.rel (%p685_p2) target bundleno = 3935 (0xf5f), region = 96  ;;  %10807 = vmatprep.subr.bf16.mxu0 (!%p685_p2), %v12285_v0  ;;  %10809 = vmatprep.mubr.msk.bf16.mxu0 (!%p685_p2), %vm12286_vm0, %v12285_v0  ;;  %s13852_s29 = sld [smem:[#allocation4_spill]] (!%p685_p2)  ;;  %vm972_vm3 = vcmask (!%p685_p2), 261120   ;;  %vm1106_vm4 = vcmask (!%p685_p2), 1043456   ;;  %vm1102_vm5 = vcmask (!%p685_p2), 719872   ;;  %v12287_v55 = vmov (!%p685_p2), 0  }
   0xd   : > { %1454 = vmatprep.mubr.bf16.mxu1 (!%p685_p2), %v12287_v55  ;;  %vm1418_vm6 = vcmask (!%p685_p2), 654336   ;;  %vm1812_vm7 = vcmask (!%p685_p2), 130048   ;;  %vm3890_vm8 = vcmask (!%p685_p2), 523264  }
  0x12   : > { %v883_v1 = vld [vmem:[%s13852_s29] sm:$0x3] (!%p685_p2) }
  0x13   : > { %s13859_s30 = smov (!%p806_p3, %s9246_s30), 1  ;;  %v886_v4 = vpack.c.bf16 %v883_v1, %v883_v1 }
  0x14   : > { %s11131_s20 = smul.u32 132, %s13859_s30  ;;  %s10544_s21 = sshll.u32 %s13859_s30, 3 }
  0x15   : > { %s11132_s1 = smul.u32 240, %s13859_s30  ;;  %s853_s23 = scalar_lea.vmem %s13834_s12, %s10544_s21 }
  0x16   : > { %s12410_s26 = scalar_lea.vmem %s13851_s3, %s11131_s20  ;;  %v11147_v2 = vld [vmem:[%s853_s23] sm:$0x3f]   ;;  %s10545_s21 = sshll.u32 %s13859_s30, 4 }
  0x17   : > { %s12418_s18 = scalar_lea.vmem %s13826_s4, %s11132_s1  ;;  %v905_v3 = vsel %vm903_vm1, %v11147_v2, 0  ;;  %s861_s2 = scalar_lea.vmem %s13836_s14, %s10545_s21  ;;  %v11150_v12 = vld [vmem:[%s12410_s26] sm:$0xff]   ;;  %v11151_v16 = vld [vmem:[%s12410_s26 + $0x8] sm:$0xff]   ;;  %v11152_v17 = vld [vmem:[%s12410_s26 + $0x10] sm:$0xff]  }
  0x18   : > { %10808 = vmatpush3.bf16.msra.mxu0 %v905_v3  ;;  %v11148_v5 = vld [vmem:[%s861_s2] sm:$0xff]   ;;  %s11133_s19 = smul.u32 432, %s13859_s30  ;;  %v11149_v6 = vld [vmem:[%s861_s2 + $0x8] sm:$0xff]   ;;  %s856_s0 = scalar_lea.vmem %s13835_s13, %s13859_s30  ;;  %v11153_v18 = vld [vmem:[%s12410_s26 + $0x18] sm:$0xff]  }
  0x19   : > { %10813 = vmatprep.subr.bf16.mxu0 %v12285_v0  ;;  %s11134_s24 = smul.u32 1536, %s13859_s30  ;;  %v9268_v7 = vld [vmem:[%s856_s0] ss:$0 sm:$0xff]  ;;  %v11155_v20 = vld [vmem:[%s12410_s26 + $0x28] ss:$0 sps:$4 sm:$0xff]   ;;  %v11156_v24 = vld [vmem:[%s12410_s26 + $0x2c] sm:$0xff]   ;;  %s864_s3 = scalar_lea.vmem %s13837_s15, %s13859_s30 }
  0x1a   : > { %s12432_s23 = scalar_lea.vmem %s13828_s6, %s11133_s19  ;;  %s11135_s28 = smul.u32 896, %s13859_s30  ;;  %v11154_v19 = vld [vmem:[%s12410_s26 + $0x20] sm:$0xff]   ;;  %v1108_v23 = vsel %vm1106_vm4, %v11155_v20, 0  ;;  %v11157_v26 = vld [vmem:[%s12410_s26 + $0x34] sm:$0xff]   ;;  %v11160_v29 = vld [vmem:[%s12410_s26 + $0x4c] sm:$0xff]  }
  0x1b   : > { %10810 = vmatmul.mubr.msk.bf16.vlgmr.msra.gmra.mrb[0].mxu0 %vm899_vm2, %v886_v4  ;;  %s12438_s27 = scalar_lea.vmem %s13830_s8, %s11134_s24  ;;  %s13853_s24 = sld [smem:[#allocation3_spill]]  ;;  %v11158_v27 = vld [vmem:[%s12410_s26 + $0x3c] sm:$0xff]   ;;  %v11159_v28 = vld [vmem:[%s12410_s26 + $0x44] sm:$0xff]   ;;  %v11161_v30 = vld [vmem:[%s12410_s26 + $0x54] ss:$0 sps:$4 sm:$0xff]  }
  0x1c   : > { %10814 = vmatpush3.bf16.msra.mxu0 %v11148_v5  ;;  %10817 = vmatprep.mubr.msk.bf16.mxu0 %vm12286_vm0, %v12285_v0  ;;  %s12445_s20 = scalar_lea.vmem %s13832_s10, %s11135_s28  ;;  %v1214_v34 = vsel %vm1106_vm4, %v11161_v30, 0  ;;  %v11162_v35 = vld [vmem:[%s12410_s26 + $0x58] sm:$0xff]   ;;  %v11163_v37 = vld [vmem:[%s12410_s26 + $0x60] sm:$0xff]   ;;  %v11164_v38 = vld [vmem:[%s12410_s26 + $0x68] sm:$0xff]   ;;  %s13854_s21 = sld [smem:[#allocation6_spill]] }
  0x1d   : > { %10815 = vmatprep.subr.bf16.mxu0 %v12285_v0  ;;  %v11165_v39 = vld [vmem:[%s12410_s26 + $0x70] sm:$0xff]   ;;  %v11166_v40 = vld [vmem:[%s12410_s26 + $0x78] sm:$0xff]   ;;  %v11167_v41 = vld [vmem:[%s12410_s26 + $0x80] ss:$0 sps:$4 sm:$0xff]   ;;  %s12588_s19 = sshll.u32 %s13859_s30, 1  ;;  %s10546_s29 = sshll.u32 %s13859_s30, 6 }
  0x1e   : > { %v1310_v42 = vsel %vm1106_vm4, %v11167_v41, 0  ;;  %v11168_v44 = vld [vmem:[%s12418_s18 + $0x4] ss:$8 sps:$4 sm:$0xff]   ;;  %v11170_v45 = vld [vmem:[%s12418_s18] ss:$8 sps:$4 sm:$0xff]   ;;  %s822_s1 = scalar_lea.vmem %s13827_s5, %s12588_s19  ;;  %s831_s28 = scalar_lea.vmem %s13829_s7, %s12588_s19 }
  0x1f   : > { %v11171_v46 = vld [vmem:[%s12418_s18 + $0x14] ss:$8 sps:$4 sm:$0xff]   ;;  %1422 = vmatprep.subr.bf16.mxu1 %v11168_v44  ;;  %v11173_v47 = vld [vmem:[%s12418_s18 + $0x10] ss:$8 sps:$4 sm:$0xff]   ;;  %v11174_v48 = vld [vmem:[%s12418_s18 + $0x24] ss:$8 sps:$4 sm:$0xff]   ;;  %s12804_s2 = scalar_lea.vmem %s13839_s17, %s10546_s29  ;;  %s13184_s0 = scalar_lea.vmem %s13838_s16, %s10546_s29 }
  0x20   : > { %10816 = vmatpush3.bf16.msra.mxu0 %v11149_v6  ;;  %1423 = vmatpush1.bf16.msra.mxu1 %v11170_v45  ;;  %v11176_v49 = vld [vmem:[%s12418_s18 + $0x20] ss:$8 sps:$4 sm:$0xff]   ;;  %v11177_v50 = vld [vmem:[%s12418_s18 + $0x34] ss:$8 sps:$4 sm:$0xff]   ;;  %v11179_v51 = vld [vmem:[%s12418_s18 + $0x30] ss:$8 sps:$4 sm:$0xff]  }
  0x21   : > { %10821 = vmatprep.subr.bf16.mxu0 %v12285_v0  ;;  %v1055_v21 = vld [vmem:[%s13853_s24] sm:$0xff]  ;;  %v1056_v22 = vld [vmem:[%s13853_s24 + $0x8] sm:$0xf]  ;;  %1424 = vmatprep.subr.bf16.mxu1 %v11171_v46  ;;  %v11185_v54 = vld [vmem:[%s12418_s18 + $0x54] ss:$8 sps:$4 sm:$0xff]  }
  0x22   : > { %v1068_v25 = vpack.c.bf16 %v1056_v22, %v1055_v21  ;;  %v11180_v52 = vld [vmem:[%s12418_s18 + $0x44] ss:$8 sps:$4 sm:$0xff]   ;;  %v11182_v53 = vld [vmem:[%s12418_s18 + $0x40] ss:$8 sps:$4 sm:$0xff]   ;;  %s12522_s22 = scalar_lea.vmem %s13854_s21, %s13859_s30  ;;  %v11183_v5 = vld [vmem:[%s12418_s18 + $0x50] ss:$8 sps:$4 sm:$0xff]  }
  0x23   : > { %v9282_v60 = vld [vmem:[%s12522_s22] ss:$0 sm:$0xff]  ;;  %v11233_v44 = vld [vmem:[%s12432_s23 + $0x64] ss:$8 sps:$4 sm:$0xff]   ;;  %v11236_v46 = vld [vmem:[%s12432_s23 + $0x74] ss:$8 sps:$4 sm:$0xff]  }
  0x24   : > { %v1173_v31 = vshll.u32 %v1068_v25, 16  ;;  %v1171_v32 = vshrl.u32 %v1068_v25, 16  ;;  %v1272_v43 = vrot.slane %v1068_v25, 1  ;;  %1425 = vmatpush1.bf16.msra.mxu1 %v11173_v47  ;;  %v11198_v21 = vld [vmem:[%s12418_s18 + $0xa0] ss:$8 sps:$4 sm:$0xff]  }
  0x25   : > { %1426 = vmatprep.subr.bf16.mxu1 %v11174_v48  ;;  %v11210_v30 = vld [vmem:[%s12418_s18 + $0xe0] ss:$8 sps:$4 sm:$0xff]   ;;  %v11234_v47 = vld [vmem:[%s12432_s23 + $0x70] ss:$8 sps:$4 sm:$0xff]   ;;  %v11239_v48 = vld [vmem:[%s12432_s23 + $0x84] ss:$8 sps:$4 sm:$0xff]  }
  0x26   : > { %v1175_v33 = vrot.slane %v1173_v31, 1  ;;  %v11215_v31 = vld [vmem:[%s12432_s23 + $0x4] ss:$8 sps:$4 sm:$0xff]   ;;  %v11225_v41 = vld [vmem:[%s12432_s23 + $0x40] ss:$8 sps:$4 sm:$0xff]  }
  0x27   : > { %v11231_v45 = vld [vmem:[%s12432_s23 + $0x60] ss:$8 sps:$4 sm:$0xff]  }
  0x28   : > { %v1176_v36 = vor.u32 %v1175_v33, %v1171_v32  ;;  %1427 = vmatpush1.bf16.msra.mxu1 %v11176_v49  ;;  %v11213_v32 = vld [vmem:[%s12432_s23] ss:$8 sps:$4 sm:$0xff]  }
  0x29   : > { %1428 = vmatprep.subr.bf16.mxu1 %v11177_v50  ;;  %v11237_v49 = vld [vmem:[%s12432_s23 + $0x80] ss:$8 sps:$4 sm:$0xff]   ;;  %v11242_v50 = vld [vmem:[%s12432_s23 + $0x94] ss:$8 sps:$4 sm:$0xff]  }
  0x2c   : > { %1429 = vmatpush1.bf16.msra.mxu1 %v11179_v51  ;;  %v11294_v51 = vld [vmem:[%s12438_s27] ss:$16 sps:$4 sm:$0xff]  }
  0x2d   : > { %1430 = vmatprep.subr.bf16.mxu1 %v11180_v52  ;;  %v11296_v52 = vld [vmem:[%s12438_s27 + $0x4] ss:$16 sps:$4 sm:$0xff]  }
  0x30   : > { %1431 = vmatpush1.bf16.msra.mxu1 %v11182_v53  ;;  %v11299_v53 = vld [vmem:[%s12438_s27 + $0x24] ss:$16 sps:$4 sm:$0xff]  }
  0x31   : > { %1548 = vmatprep.subr.bf16.mxu1 %v11185_v54  ;;  %v11297_v54 = vld [vmem:[%s12438_s27 + $0x20] ss:$16 sps:$4 sm:$0xff]  }
  0xee   : > { %v941_v8 = vpop.f32.mrb[0].mxu0 }
  0xef   : > { %v942_v9 = vadd.f32 %v9268_v7, %v941_v8  ;;  %v10811_v10 = vpop.f32.mrb[1].mxu0  ;;  %v11188_v8 = vld [vmem:[%s12418_s18 + $0x64] ss:$8 sps:$4 sm:$0xff]  }
  0xf0   : > { %v944_v11 = vpop.f32.mrb[2].mxu0  ;;  %v11186_v10 = vld [vmem:[%s12418_s18 + $0x60] ss:$8 sps:$4 sm:$0xff]  }
  0xf1   : > { %v947_v13 = vmax.f32 %v942_v9, 0.0  ;;  %v10812_v14 = vpop.f32.mrb[3].mxu0  ;;  %v11191_v11 = vld [vmem:[%s12418_s18 + $0x74] ss:$8 sps:$4 sm:$0xff]  }
  0xf2   : > { %v11192_v14 = vld [vmem:[%s12418_s18 + $0x80] ss:$8 sps:$4 sm:$0xff]  }
  0xf3   : > { %v952_v15 = vpack.c.bf16 %v947_v13, %v947_v13  ;;  %v11194_v13 = vld [vmem:[%s12418_s18 + $0x84] ss:$8 sps:$4 sm:$0xff]  }
  0xf5   : > { %10818 = vmatmul.mubr.msk.bf16.vlgmr.msra.gmra.mrb[4].mxu0 %vm972_vm3, %v952_v15 }
  0xf6   : > { %10822 = vmatpush3.bf16.msra.mxu0 %v11150_v12  ;;  %10833 = vmatprep.mubr.msk.bf16.mxu0 %vm12286_vm0, %v12285_v0  ;;  %v11189_v12 = vld [vmem:[%s12418_s18 + $0x70] ss:$8 sps:$4 sm:$0xff]  }
  0xf7   : > { %10823 = vmatprep.subr.bf16.mxu0 %v12285_v0 }
  0xfa   : > { %10824 = vmatpush3.bf16.msra.mxu0 %v11151_v16  ;;  %v11197_v16 = vld [vmem:[%s12418_s18 + $0x94] ss:$8 sps:$4 sm:$0xff]  }
  0xfb   : > { %10825 = vmatprep.subr.bf16.mxu0 %v12285_v0 }
  0xfe   : > { %10826 = vmatpush3.bf16.msra.mxu0 %v11152_v17  ;;  %v11195_v17 = vld [vmem:[%s12418_s18 + $0x90] ss:$8 sps:$4 sm:$0xff]  }
  0xff   : > { %10827 = vmatprep.subr.bf16.mxu0 %v12285_v0 }
 0x102   : > { %10828 = vmatpush3.bf16.msra.mxu0 %v11153_v18 }
 0x103   : > { %10829 = vmatprep.subr.bf16.mxu0 %v12285_v0 }
 0x106   : > { %10830 = vmatpush3.bf16.msra.mxu0 %v11154_v19  ;;  %v11200_v19 = vld [vmem:[%s12418_s18 + $0xa4] ss:$8 sps:$4 sm:$0xff]  }
 0x107   : > { %10831 = vmatprep.subr.bf16.mxu0 %v12285_v0 }
 0x10a   : > { %10832 = vmatpush3.bf16.msra.mxu0 %v1108_v23  ;;  %v11203_v23 = vld [vmem:[%s12418_s18 + $0xb4] ss:$8 sps:$4 sm:$0xff]  }
 0x10b   : > { %10837 = vmatprep.subr.bf16.mxu0 %v12285_v0 }
 0x10d   : > { %10834 = vmatmul.mubr.msk.bf16.vlgmr.msra.gmra.mrb[8].mxu0 %vm1102_vm5, %v1068_v25  ;;  %v11206_v25 = vld [vmem:[%s12418_s18 + $0xc4] ss:$8 sps:$4 sm:$0xff]  }
 0x10e   : > { %10838 = vmatpush3.bf16.msra.mxu0 %v11156_v24  ;;  %10849 = vmatprep.mubr.msk.bf16.mxu0 %vm12286_vm0, %v12285_v0  ;;  %v11201_v24 = vld [vmem:[%s12418_s18 + $0xb0] ss:$8 sps:$4 sm:$0xff]  }
 0x10f   : > { %10839 = vmatprep.subr.bf16.mxu0 %v12285_v0 }
 0x112   : > { %10840 = vmatpush3.bf16.msra.mxu0 %v11157_v26  ;;  %v11204_v26 = vld [vmem:[%s12418_s18 + $0xc0] ss:$8 sps:$4 sm:$0xff]  }
 0x113   : > { %10841 = vmatprep.subr.bf16.mxu0 %v12285_v0 }
 0x116   : > { %10842 = vmatpush3.bf16.msra.mxu0 %v11158_v27  ;;  %v11209_v27 = vld [vmem:[%s12418_s18 + $0xd4] ss:$8 sps:$4 sm:$0xff]  }
 0x117   : > { %10843 = vmatprep.subr.bf16.mxu0 %v12285_v0 }
 0x11a   : > { %10844 = vmatpush3.bf16.msra.mxu0 %v11159_v28  ;;  %v11207_v28 = vld [vmem:[%s12418_s18 + $0xd0] ss:$8 sps:$4 sm:$0xff]  }
 0x11b   : > { %10845 = vmatprep.subr.bf16.mxu0 %v12285_v0 }
 0x11e   : > { %10846 = vmatpush3.bf16.msra.mxu0 %v11160_v29  ;;  %v11212_v29 = vld [vmem:[%s12418_s18 + $0xe4] ss:$8 sps:$4 sm:$0xff]  }
 0x11f   : > { %10847 = vmatprep.subr.bf16.mxu0 %v12285_v0 }
 0x122   : > { %10848 = vmatpush3.bf16.msra.mxu0 %v1214_v34  ;;  %v11218_v34 = vld [vmem:[%s12432_s23 + $0x14] ss:$8 sps:$4 sm:$0xff]  }
 0x123   : > { %10853 = vmatprep.subr.bf16.mxu0 %v12285_v0 }
 0x125   : > { %10850 = vmatmul.mubr.msk.bf16.vlgmr.msra.gmra.mrb[8].mxu0 %vm1102_vm5, %v1176_v36  ;;  %v11221_v36 = vld [vmem:[%s12432_s23 + $0x24] ss:$8 sps:$4 sm:$0xff]  }
 0x126   : > { %10854 = vmatpush3.bf16.msra.mxu0 %v11162_v35  ;;  %10865 = vmatprep.mubr.msk.bf16.mxu0 %vm12286_vm0, %v12285_v0  ;;  %v11216_v35 = vld [vmem:[%s12432_s23 + $0x10] ss:$8 sps:$4 sm:$0xff]  }
 0x127   : > { %10855 = vmatprep.subr.bf16.mxu0 %v12285_v0 }
 0x12a   : > { %10856 = vmatpush3.bf16.msra.mxu0 %v11163_v37  ;;  %v11219_v37 = vld [vmem:[%s12432_s23 + $0x20] ss:$8 sps:$4 sm:$0xff]  }
 0x12b   : > { %10857 = vmatprep.subr.bf16.mxu0 %v12285_v0 }
 0x12e   : > { %10858 = vmatpush3.bf16.msra.mxu0 %v11164_v38  ;;  %v11224_v38 = vld [vmem:[%s12432_s23 + $0x34] ss:$8 sps:$4 sm:$0xff]  }
 0x12f   : > { %10859 = vmatprep.subr.bf16.mxu0 %v12285_v0 }
 0x132   : > { %10860 = vmatpush3.bf16.msra.mxu0 %v11165_v39  ;;  %v11222_v39 = vld [vmem:[%s12432_s23 + $0x30] ss:$8 sps:$4 sm:$0xff]  }
 0x133   : > { %10861 = vmatprep.subr.bf16.mxu0 %v12285_v0 }
 0x136   : > { %10862 = vmatpush3.bf16.msra.mxu0 %v11166_v40  ;;  %v11227_v40 = vld [vmem:[%s12432_s23 + $0x44] ss:$8 sps:$4 sm:$0xff]  }
 0x137   : > { %10863 = vmatprep.subr.bf16.mxu0 %v12285_v0 }
 0x13a   : > { %10864 = vmatpush3.bf16.msra.mxu0 %v1310_v42  ;;  %v11230_v42 = vld [vmem:[%s12432_s23 + $0x54] ss:$8 sps:$4 sm:$0xff]  }
 0x13b   : > { %2587 = vmatprep.subr.bf16.mxu0 %v11296_v52  ;;  %v11263_v52 = vld [vmem:[%s12432_s23 + $0x104] ss:$8 sps:$4 sm:$0xff]  }
 0x13d   : > { %10866 = vmatmul.mubr.msk.bf16.vlgmr.msra.gmra.mrb[8].mxu0 %vm1102_vm5, %v1272_v43  ;;  %v11228_v43 = vld [vmem:[%s12432_s23 + $0x50] ss:$8 sps:$4 sm:$0xff]  }
 0x13e   : > { %2588 = vmatpush1.bf16.msra.mxu0 %v11294_v51  ;;  %v11258_v51 = vld [vmem:[%s12432_s23 + $0xf0] ss:$8 sps:$4 sm:$0xff]  }
 0x13f   : > { %2589 = vmatprep.subr.bf16.mxu0 %v11299_v53  ;;  %v11261_v53 = vld [vmem:[%s12432_s23 + $0x100] ss:$8 sps:$4 sm:$0xff]  }
 0x142   : > { %2590 = vmatpush1.bf16.msra.mxu0 %v11297_v54 }
 0x1c8   : > { %v12516_v56 = vpop.f32.mrb[4].mxu0 }
 0x1c9   : > { %v10819_v57 = vpop.f32.mrb[5].mxu0 }
 0x1ca   : > { %v1013_v58 = vpop.f32.mrb[6].mxu0  ;;  %v11302_v57 = vld [vmem:[%s12438_s27 + $0x44] ss:$16 sps:$4 sm:$0xff]  }
 0x1cb   : > { %v10820_v59 = vpop.f32.mrb[7].mxu0  ;;  %v11300_v58 = vld [vmem:[%s12438_s27 + $0x40] ss:$16 sps:$4 sm:$0xff]   ;;  %2591 = vmatprep.subr.bf16.mxu0 %v11302_v57  ;;  %v11266_v57 = vld [vmem:[%s12432_s23 + $0x114] ss:$8 sps:$4 sm:$0xff]  }
 0x1cc   : > { %v11305_v59 = vld [vmem:[%s12438_s27 + $0x64] ss:$16 sps:$4 sm:$0xff]   ;;  %2592 = vmatpush1.bf16.msra.mxu0 %v11300_v58  ;;  %v11264_v58 = vld [vmem:[%s12432_s23 + $0x110] ss:$8 sps:$4 sm:$0xff]  }
 0x1cd   : > { %2593 = vmatprep.subr.bf16.mxu0 %v11305_v59 }
 0x210   : > { %v1346_v61 = vpop.f32.mrb[8].mxu0 }
 0x211   : > { %v10997_v62 = vadd.f32 %v9282_v60, %v1346_v61  ;;  %v10867_v63 = vpop.f32.mrb[9].mxu0  ;;  %v11308_v61 = vld [vmem:[%s12438_s27 + $0x84] ss:$16 sps:$4 sm:$0xff]  }
 0x212   : > { %v1349_v1 = vpop.f32.mrb[10].mxu0  ;;  %v11311_v63 = vld [vmem:[%s12438_s27 + $0xa4] ss:$16 sps:$4 sm:$0xff]  }
 0x213   : > { %v1355_v2 = vmax.f32 %v10997_v62, 0.0  ;;  %v10998_v3 = vadd.f32 %v9282_v60, %v1349_v1  ;;  %v10868_v4 = vpop.f32.mrb[11].mxu0  ;;  %v11303_v60 = vld [vmem:[%s12438_s27 + $0x60] ss:$16 sps:$4 sm:$0xff]  }
 0x214   : > { %2594 = vmatpush1.bf16.msra.mxu0 %v11303_v60  ;;  %v11306_v62 = vld [vmem:[%s12438_s27 + $0x80] ss:$16 sps:$4 sm:$0xff]   ;;  %v11317_v4 = vld [vmem:[%s12438_s27 + $0xe4] ss:$16 sps:$4 sm:$0xff]  }
 0x215   : > { %v1367_v6 = vpack.c.bf16 %v1355_v2, %v1355_v2  ;;  %v1356_v7 = vmax.f32 %v10998_v3, 0.0  ;;  %2595 = vmatprep.subr.bf16.mxu0 %v11308_v61  ;;  %v11309_v1 = vld [vmem:[%s12438_s27 + $0xa0] ss:$16 sps:$4 sm:$0xff]   ;;  %v11269_v60 = vld [vmem:[%s12432_s23 + $0x124] ss:$8 sps:$4 sm:$0xff]  }
 0x216   : > { %v11312_v3 = vld [vmem:[%s12438_s27 + $0xc0] ss:$16 sps:$4 sm:$0xff]  }
 0x217   : > { %v1487_v9 = vpack.c.bf16 %v1356_v7, %v1355_v2  ;;  %9329 = vmatmul.mubr.msk.bf16.vlgmr.msra.gmra.mrb[0].mxu1 %vm1418_vm6, %v1367_v6  ;;  %v11314_v2 = vld [vmem:[%s12438_s27 + $0xc4] ss:$16 sps:$4 sm:$0xff]   ;;  %v11318_v7 = vld [vmem:[%s12438_s27 + $0x100] ss:$16 sps:$4 sm:$0xff]  }
 0x218   : > { %1549 = vmatpush1.bf16.msra.mxu1 %v11183_v5  ;;  %1580 = vmatprep.mubr.bf16.mxu1 %v12287_v55  ;;  %v11315_v5 = vld [vmem:[%s12438_s27 + $0xe0] ss:$16 sps:$4 sm:$0xff]   ;;  %v11320_v6 = vld [vmem:[%s12438_s27 + $0x104] ss:$16 sps:$4 sm:$0xff]  }
 0x219   : > { %1550 = vmatprep.subr.bf16.mxu1 %v11188_v8  ;;  %v1491_v15 = vshll.u32 %v1487_v9, 16  ;;  %v1489_v20 = vshrl.u32 %v1487_v9, 16  ;;  %v1603_v33 = vrot.slane %v1487_v9, 1  ;;  %2596 = vmatpush1.bf16.msra.mxu0 %v11306_v62  ;;  %v1464_v8 = vlaneseq  ;;  %v11323_v9 = vld [vmem:[%s12438_s27 + $0x124] ss:$16 sps:$4 sm:$0xff]  }
 0x21a   : > { %2597 = vmatprep.subr.bf16.mxu0 %v11311_v63  ;;  %v11267_v62 = vld [vmem:[%s12432_s23 + $0x120] ss:$8 sps:$4 sm:$0xff]  }
 0x21b   : > { %v1493_v18 = vrot.slane %v1491_v15, 1  ;;  %v11329_v15 = vld [vmem:[%s12438_s27 + $0x164] ss:$16 sps:$4 sm:$0xff]  }
 0x21c   : > { %1551 = vmatpush1.bf16.msra.mxu1 %v11186_v10  ;;  %v11321_v10 = vld [vmem:[%s12438_s27 + $0x120] ss:$16 sps:$4 sm:$0xff]  }
 0x21d   : > { %1552 = vmatprep.subr.bf16.mxu1 %v11191_v11  ;;  %v1494_v22 = vor.u32 %v1493_v18, %v1489_v20  ;;  %2598 = vmatpush1.bf16.msra.mxu0 %v11309_v1  ;;  %v12591_v11 = vshrl.u32 %v1464_v8, 7  ;;  %v11327_v18 = vld [vmem:[%s12438_s27 + $0x160] ss:$16 sps:$4 sm:$0xff]   ;;  %v11332_v20 = vld [vmem:[%s12438_s27 + $0x184] ss:$16 sps:$4 sm:$0xff]  }
 0x21e   : > { %2599 = vmatprep.subr.bf16.mxu0 %v11314_v2  ;;  %v11272_v1 = vld [vmem:[%s12432_s23 + $0x134] ss:$8 sps:$4 sm:$0xff]   ;;  %v11281_v8 = vld [vmem:[%s12432_s23 + $0x164] ss:$8 sps:$4 sm:$0xff]  }
 0x220   : > { %1553 = vmatpush1.bf16.msra.mxu1 %v11189_v12  ;;  %v11326_v12 = vld [vmem:[%s12438_s27 + $0x144] ss:$16 sps:$4 sm:$0xff]  }
 0x221   : > { %1554 = vmatprep.subr.bf16.mxu1 %v11194_v13  ;;  %2600 = vmatpush1.bf16.msra.mxu0 %v11312_v3  ;;  %v11324_v13 = vld [vmem:[%s12438_s27 + $0x140] ss:$16 sps:$4 sm:$0xff]  }
 0x222   : > { %2601 = vmatprep.subr.bf16.mxu0 %v11317_v4  ;;  %v11270_v3 = vld [vmem:[%s12432_s23 + $0x130] ss:$8 sps:$4 sm:$0xff]   ;;  %v11275_v4 = vld [vmem:[%s12432_s23 + $0x144] ss:$8 sps:$4 sm:$0xff]  }
 0x224   : > { %1555 = vmatpush1.bf16.msra.mxu1 %v11192_v14  ;;  %v12600_v14 = vsub.s32 0, %v12591_v11 }
 0x225   : > { %1556 = vmatprep.subr.bf16.mxu1 %v11197_v16  ;;  %2602 = vmatpush1.bf16.msra.mxu0 %v11315_v5  ;;  %v1018_v16 = vld [vmem:[%s822_s1] sm:$0x3] }
 0x226   : > { %2603 = vmatprep.subr.bf16.mxu0 %v11320_v6  ;;  %v11273_v5 = vld [vmem:[%s12432_s23 + $0x140] ss:$8 sps:$4 sm:$0xff]   ;;  %v11278_v6 = vld [vmem:[%s12432_s23 + $0x154] ss:$8 sps:$4 sm:$0xff]  }
 0x228   : > { %1557 = vmatpush1.bf16.msra.mxu1 %v11195_v17  ;;  %v12604_v17 = vsub.s32 1, %v12591_v11 }
 0x229   : > { %1657 = vmatprep.subr.bf16.mxu1 %v11200_v19  ;;  %2604 = vmatpush1.bf16.msra.mxu0 %v11318_v7  ;;  %v12608_v19 = vrot.slane %v1018_v16, %v12600_v14  ;;  %v11276_v7 = vld [vmem:[%s12432_s23 + $0x150] ss:$8 sps:$4 sm:$0xff]  }
 0x22a   : > { %2605 = vmatprep.subr.bf16.mxu0 %v11323_v9  ;;  %v11279_v9 = vld [vmem:[%s12432_s23 + $0x160] ss:$8 sps:$4 sm:$0xff]  }
 0x22b   : > { %9350 = vmatmul.mubr.msk.bf16.vlgmr.msra.gmra.mrb[0].mxu1 %vm1418_vm6, %v1494_v22 }
 0x22c   : > { %1658 = vmatpush1.bf16.msra.mxu1 %v11198_v21  ;;  %1689 = vmatprep.mubr.bf16.mxu1 %v12287_v55  ;;  %v12612_v21 = vrot.slane %v1018_v16, %v12604_v17  ;;  %v11290_v16 = vld [vmem:[%s12432_s23 + $0x194] ss:$8 sps:$4 sm:$0xff]  }
 0x22d   : > { %1659 = vmatprep.subr.bf16.mxu1 %v11203_v23  ;;  %2606 = vmatpush1.bf16.msra.mxu0 %v11321_v10  ;;  %v11330_v23 = vld [vmem:[%s12438_s27 + $0x180] ss:$16 sps:$4 sm:$0xff]   ;;  %v11284_v10 = vld [vmem:[%s12432_s23 + $0x174] ss:$8 sps:$4 sm:$0xff]  }
 0x22e   : > { %2607 = vmatprep.subr.bf16.mxu0 %v11326_v12  ;;  %v11282_v12 = vld [vmem:[%s12432_s23 + $0x170] ss:$8 sps:$4 sm:$0xff]  }
 0x230   : > { %1660 = vmatpush1.bf16.msra.mxu1 %v11201_v24 }
 0x231   : > { %1661 = vmatprep.subr.bf16.mxu1 %v11206_v25  ;;  %2608 = vmatpush1.bf16.msra.mxu0 %v11324_v13  ;;  %v11287_v13 = vld [vmem:[%s12432_s23 + $0x184] ss:$8 sps:$4 sm:$0xff]  }
 0x232   : > { %2609 = vmatprep.subr.bf16.mxu0 %v11329_v15  ;;  %v11285_v15 = vld [vmem:[%s12432_s23 + $0x180] ss:$8 sps:$4 sm:$0xff]  }
 0x234   : > { %1662 = vmatpush1.bf16.msra.mxu1 %v11204_v26  ;;  %v11335_v26 = vld [vmem:[%s12438_s27 + $0x1a4] ss:$16 sps:$4 sm:$0xff]  }
 0x235   : > { %1663 = vmatprep.subr.bf16.mxu1 %v11209_v27  ;;  %2610 = vmatpush1.bf16.msra.mxu0 %v11327_v18  ;;  %v11288_v18 = vld [vmem:[%s12432_s23 + $0x190] ss:$8 sps:$4 sm:$0xff]  }
 0x236   : > { %2611 = vmatprep.subr.bf16.mxu0 %v11332_v20  ;;  %v11293_v20 = vld [vmem:[%s12432_s23 + $0x1a4] ss:$8 sps:$4 sm:$0xff]  }
 0x238   : > { %1664 = vmatpush1.bf16.msra.mxu1 %v11207_v28 }
 0x239   : > { %1665 = vmatprep.subr.bf16.mxu1 %v11212_v29  ;;  %2612 = vmatpush1.bf16.msra.mxu0 %v11330_v23 }
 0x23a   : > { %2613 = vmatprep.subr.bf16.mxu0 %v11335_v26  ;;  %v11341_v26 = vld [vmem:[%s12438_s27 + $0x1e4] ss:$16 sps:$4 sm:$0xff]  }
 0x23c   : > { %1666 = vmatpush1.bf16.msra.mxu1 %v11210_v30 }
 0x23d   : > { %1816 = vmatprep.subr.bf16.mxu1 %v11215_v31 }
 0x23f   : > { %9371 = vmatmul.mubr.msk.bf16.vlgmr.msra.gmra.mrb[0].mxu1 %vm1418_vm6, %v1603_v33 }
 0x240   : > { %1817 = vmatpush1.bf16.msra.mxu1 %v11213_v32  ;;  %v11333_v32 = vld [vmem:[%s12438_s27 + $0x1a0] ss:$16 sps:$4 sm:$0xff]  }
 0x241   : > { %1818 = vmatprep.subr.bf16.mxu1 %v11218_v34  ;;  %v11240_v34 = vld [vmem:[%s12432_s23 + $0x90] ss:$8 sps:$4 sm:$0xff]   ;;  %2614 = vmatpush1.bf16.msra.mxu0 %v11333_v32 }
 0x244   : > { %1819 = vmatpush1.bf16.msra.mxu1 %v11216_v35 }
 0x245   : > { %1820 = vmatprep.subr.bf16.mxu1 %v11221_v36  ;;  %v11245_v36 = vld [vmem:[%s12432_s23 + $0xa4] ss:$8 sps:$4 sm:$0xff]  }
 0x248   : > { %1821 = vmatpush1.bf16.msra.mxu1 %v11219_v37 }
 0x249   : > { %1822 = vmatprep.subr.bf16.mxu1 %v11224_v38  ;;  %v11243_v38 = vld [vmem:[%s12432_s23 + $0xa0] ss:$8 sps:$4 sm:$0xff]  }
 0x24c   : > { %1823 = vmatpush1.bf16.msra.mxu1 %v11222_v39 }
 0x24d   : > { %1824 = vmatprep.subr.bf16.mxu1 %v11227_v40 }
 0x250   : > { %1825 = vmatpush1.bf16.msra.mxu1 %v11225_v41  ;;  %v11248_v41 = vld [vmem:[%s12432_s23 + $0xb4] ss:$8 sps:$4 sm:$0xff]  }
 0x251   : > { %1826 = vmatprep.subr.bf16.mxu1 %v11230_v42 }
 0x254   : > { %1827 = vmatpush1.bf16.msra.mxu1 %v11228_v43  ;;  %v11246_v43 = vld [vmem:[%s12432_s23 + $0xb0] ss:$8 sps:$4 sm:$0xff]  }
 0x255   : > { %1828 = vmatprep.subr.bf16.mxu1 %v11233_v44  ;;  %v11251_v44 = vld [vmem:[%s12432_s23 + $0xc4] ss:$8 sps:$4 sm:$0xff]  }
 0x258   : > { %1829 = vmatpush1.bf16.msra.mxu1 %v11231_v45  ;;  %v11249_v45 = vld [vmem:[%s12432_s23 + $0xc0] ss:$8 sps:$4 sm:$0xff]  }
 0x259   : > { %1830 = vmatprep.subr.bf16.mxu1 %v11236_v46  ;;  %v11254_v46 = vld [vmem:[%s12432_s23 + $0xd4] ss:$8 sps:$4 sm:$0xff]  }
 0x25c   : > { %1831 = vmatpush1.bf16.msra.mxu1 %v11234_v47  ;;  %v11252_v47 = vld [vmem:[%s12432_s23 + $0xd0] ss:$8 sps:$4 sm:$0xff]  }
 0x25d   : > { %1832 = vmatprep.subr.bf16.mxu1 %v11239_v48  ;;  %v11257_v48 = vld [vmem:[%s12432_s23 + $0xe4] ss:$8 sps:$4 sm:$0xff]  }
 0x260   : > { %1833 = vmatpush1.bf16.msra.mxu1 %v11237_v49  ;;  %v11255_v49 = vld [vmem:[%s12432_s23 + $0xe0] ss:$8 sps:$4 sm:$0xff]  }
 0x261   : > { %1996 = vmatprep.subr.bf16.mxu1 %v11242_v50  ;;  %v11260_v50 = vld [vmem:[%s12432_s23 + $0xf4] ss:$8 sps:$4 sm:$0xff]  }
 0x312   : > { %v1691_v22 = vpop.f32.mrb[0].mxu1 }
 0x313   : > { %v10999_v24 = vadd.f32 %v1691_v22, %v12608_v19  ;;  %v1693_v25 = vpop.f32.mrb[1].mxu1  ;;  %v11291_v22 = vld [vmem:[%s12432_s23 + $0x1a0] ss:$8 sps:$4 sm:$0xff]  }
 0x314   : > { %v11000_v27 = vadd.f32 %v1693_v25, %v12612_v21  ;;  %v1695_v28 = vpop.f32.mrb[2].mxu1  ;;  %v11336_v25 = vld [vmem:[%s12438_s27 + $0x1c0] ss:$16 sps:$4 sm:$0xff]  }
 0x315   : > { %v1700_v29 = vmax.f32 %v10999_v24, 0.0  ;;  %v1696_v30 = vpop.f32.mrb[3].mxu1  ;;  %v11338_v24 = vld [vmem:[%s12438_s27 + $0x1c4] ss:$16 sps:$4 sm:$0xff]   ;;  %v11344_v28 = vld [vmem:[%s12438_s27 + $0xc] ss:$16 sps:$4 sm:$0xff]  }
 0x316   : > { %v1701_v31 = vmax.f32 %v11000_v27, 0.0  ;;  %2615 = vmatprep.subr.bf16.mxu0 %v11338_v24  ;;  %v11339_v27 = vld [vmem:[%s12438_s27 + $0x1e0] ss:$16 sps:$4 sm:$0xff]  }
 0x317   : > { %v12620_v35 = vpack.c.bf16 %v1700_v29, %v1700_v29  ;;  %2616 = vmatpush1.bf16.msra.mxu0 %v11336_v25  ;;  %v1019_v29 = vld [vmem:[%s831_s28] sm:$0x3]  ;;  %v11398_v25 = vld [vmem:[%s12438_s27 + $0x244] ss:$16 sps:$4 sm:$0xff]   ;;  %s9257_s28 = sshll.u32 %s13859_s30, 2 }
 0x318   : > { %v1721_v33 = vpack.c.bf16 %v1701_v31, %v1701_v31  ;;  %2617 = vmatprep.subr.bf16.mxu0 %v11341_v26  ;;  %v12673_v30 = vrot.slane %v1019_v29, %v12600_v14  ;;  %v12676_v31 = vrot.slane %v1019_v29, %v12604_v17  ;;  %v11393_v24 = vld [vmem:[%s12438_s27 + $0x220] ss:$16 sps:$4 sm:$0xff]   ;;  %v11404_v29 = vld [vmem:[%s12438_s27 + $0x284] ss:$16 sps:$4 sm:$0xff]   ;;  %s840_s1 = scalar_lea.vmem %s13831_s9, %s9257_s28  ;;  %s13136_s28 = scalar_lea.vmem %s13833_s11, %s13859_s30 }
 0x319   : > { %v1892_v54 = vshll.u32 %v12620_v35, 16  ;;  %v1890_v61 = vshrl.u32 %v12620_v35, 16  ;;  %v2060_v23 = vrot.slane %v12620_v35, 1  ;;  %v11396_v26 = vld [vmem:[%s12438_s27 + $0x240] ss:$16 sps:$4 sm:$0xff]  }
 0x31a   : > { %v1898_v37 = vshll.u32 %v1721_v33, 16  ;;  %9390 = vmatprep.mubr.msk.bf16.mxu1 %vm1812_vm7, %v1721_v33  ;;  %v1896_v39 = vshrl.u32 %v1721_v33, 16  ;;  %v2061_v2 = vrot.slane %v1721_v33, 1 }
 0x31b   : > { %1849 = vmatmul.mubr.bf16.vlgmr.msra.gmra.mrb[4].mxu1 %v12620_v35  ;;  %v1894_v59 = vrot.slane %v1892_v54, 1  ;;  %2618 = vmatpush1.bf16.msra.mxu0 %v11339_v27  ;;  %v11360_v54 = vld [vmem:[%s12438_s27 + $0xc8] ss:$16 sps:$4 sm:$0xff]   ;;  %v11401_v27 = vld [vmem:[%s12438_s27 + $0x264] ss:$16 sps:$4 sm:$0xff]  }
 0x31c   : > { %1997 = vmatpush1.bf16.msra.mxu1 %v11240_v34  ;;  %v1900_v40 = vrot.slane %v1898_v37, 1  ;;  %2628 = vmatprep.subr.bf16.mxu0 %v11344_v28  ;;  %v11399_v28 = vld [vmem:[%s12438_s27 + $0x260] ss:$16 sps:$4 sm:$0xff]  }
 0x31d   : > { %1998 = vmatprep.subr.bf16.mxu1 %v11245_v36  ;;  %v1895_v63 = vor.u32 %v1894_v59, %v1890_v61  ;;  %v11368_v59 = vld [vmem:[%s12438_s27 + $0x10c] ss:$16 sps:$4 sm:$0xff]  }
 0x31e   : > { %v1901_v42 = vor.u32 %v1900_v40, %v1896_v39  ;;  %v11371_v61 = vld [vmem:[%s12438_s27 + $0x12c] ss:$16 sps:$4 sm:$0xff]  }
 0x320   : > { %1999 = vmatpush1.bf16.msra.mxu1 %v11243_v38  ;;  %9427 = vmatprep.mubr.msk.bf16.mxu1 %vm1812_vm7, %v1901_v42 }
 0x321   : > { %2000 = vmatprep.subr.bf16.mxu1 %v11248_v41  ;;  %v11342_v41 = vld [vmem:[%s12438_s27 + $0x8] ss:$16 sps:$4 sm:$0xff]  }
 0x324   : > { %2001 = vmatpush1.bf16.msra.mxu1 %v11246_v43  ;;  %v11347_v43 = vld [vmem:[%s12438_s27 + $0x2c] ss:$16 sps:$4 sm:$0xff]  }
 0x325   : > { %2002 = vmatprep.subr.bf16.mxu1 %v11251_v44  ;;  %v11345_v44 = vld [vmem:[%s12438_s27 + $0x28] ss:$16 sps:$4 sm:$0xff]  }
 0x328   : > { %2003 = vmatpush1.bf16.msra.mxu1 %v11249_v45  ;;  %v11350_v45 = vld [vmem:[%s12438_s27 + $0x4c] ss:$16 sps:$4 sm:$0xff]  }
 0x329   : > { %2004 = vmatprep.subr.bf16.mxu1 %v11254_v46  ;;  %v11348_v46 = vld [vmem:[%s12438_s27 + $0x48] ss:$16 sps:$4 sm:$0xff]  }
 0x32c   : > { %2005 = vmatpush1.bf16.msra.mxu1 %v11252_v47  ;;  %v11353_v47 = vld [vmem:[%s12438_s27 + $0x6c] ss:$16 sps:$4 sm:$0xff]  }
 0x32d   : > { %2006 = vmatprep.subr.bf16.mxu1 %v11257_v48  ;;  %v11351_v48 = vld [vmem:[%s12438_s27 + $0x68] ss:$16 sps:$4 sm:$0xff]  }
 0x330   : > { %2007 = vmatpush1.bf16.msra.mxu1 %v11255_v49  ;;  %v11356_v49 = vld [vmem:[%s12438_s27 + $0x8c] ss:$16 sps:$4 sm:$0xff]  }
 0x331   : > { %2008 = vmatprep.subr.bf16.mxu1 %v11260_v50  ;;  %v11354_v50 = vld [vmem:[%s12438_s27 + $0x88] ss:$16 sps:$4 sm:$0xff]  }
 0x334   : > { %2009 = vmatpush1.bf16.msra.mxu1 %v11258_v51  ;;  %v11359_v51 = vld [vmem:[%s12438_s27 + $0xac] ss:$16 sps:$4 sm:$0xff]  }
 0x335   : > { %2010 = vmatprep.subr.bf16.mxu1 %v11263_v52  ;;  %v11357_v52 = vld [vmem:[%s12438_s27 + $0xa8] ss:$16 sps:$4 sm:$0xff]  }
 0x338   : > { %2011 = vmatpush1.bf16.msra.mxu1 %v11261_v53  ;;  %v11362_v53 = vld [vmem:[%s12438_s27 + $0xcc] ss:$16 sps:$4 sm:$0xff]  }
 0x339   : > { %2012 = vmatprep.subr.bf16.mxu1 %v11266_v57  ;;  %v11365_v57 = vld [vmem:[%s12438_s27 + $0xec] ss:$16 sps:$4 sm:$0xff]  }
 0x33c   : > { %2013 = vmatpush1.bf16.msra.mxu1 %v11264_v58  ;;  %v11363_v58 = vld [vmem:[%s12438_s27 + $0xe8] ss:$16 sps:$4 sm:$0xff]  }
 0x33d   : > { %2156 = vmatprep.subr.bf16.mxu1 %v11269_v60  ;;  %v11366_v60 = vld [vmem:[%s12438_s27 + $0x108] ss:$16 sps:$4 sm:$0xff]  }
 0x33f   : > { %2029 = vmatmul.mubr.bf16.vlgmr.msra.gmra.mrb[4].mxu1 %v1895_v63  ;;  %v11374_v63 = vld [vmem:[%s12438_s27 + $0x14c] ss:$16 sps:$4 sm:$0xff]  }
 0x340   : > { %2157 = vmatpush1.bf16.msra.mxu1 %v11267_v62  ;;  %9464 = vmatprep.mubr.msk.bf16.mxu1 %vm1812_vm7, %v2061_v2  ;;  %v11369_v62 = vld [vmem:[%s12438_s27 + $0x128] ss:$16 sps:$4 sm:$0xff]   ;;  %v11377_v2 = vld [vmem:[%s12438_s27 + $0x16c] ss:$16 sps:$4 sm:$0xff]  }
 0x341   : > { %2158 = vmatprep.subr.bf16.mxu1 %v11272_v1  ;;  %v11372_v1 = vld [vmem:[%s12438_s27 + $0x148] ss:$16 sps:$4 sm:$0xff]  }
 0x344   : > { %2159 = vmatpush1.bf16.msra.mxu1 %v11270_v3  ;;  %v11375_v3 = vld [vmem:[%s12438_s27 + $0x168] ss:$16 sps:$4 sm:$0xff]  }
 0x345   : > { %2160 = vmatprep.subr.bf16.mxu1 %v11275_v4  ;;  %v11380_v4 = vld [vmem:[%s12438_s27 + $0x18c] ss:$16 sps:$4 sm:$0xff]  }
 0x348   : > { %2161 = vmatpush1.bf16.msra.mxu1 %v11273_v5  ;;  %v11378_v5 = vld [vmem:[%s12438_s27 + $0x188] ss:$16 sps:$4 sm:$0xff]  }
 0x349   : > { %2162 = vmatprep.subr.bf16.mxu1 %v11278_v6  ;;  %v11383_v6 = vld [vmem:[%s12438_s27 + $0x1ac] ss:$16 sps:$4 sm:$0xff]  }
 0x34c   : > { %2163 = vmatpush1.bf16.msra.mxu1 %v11276_v7  ;;  %v11381_v7 = vld [vmem:[%s12438_s27 + $0x1a8] ss:$16 sps:$4 sm:$0xff]  }
 0x34d   : > { %2164 = vmatprep.subr.bf16.mxu1 %v11281_v8  ;;  %v11386_v8 = vld [vmem:[%s12438_s27 + $0x1cc] ss:$16 sps:$4 sm:$0xff]  }
 0x350   : > { %2165 = vmatpush1.bf16.msra.mxu1 %v11279_v9  ;;  %v11384_v9 = vld [vmem:[%s12438_s27 + $0x1c8] ss:$16 sps:$4 sm:$0xff]  }
 0x351   : > { %2166 = vmatprep.subr.bf16.mxu1 %v11284_v10  ;;  %v11389_v10 = vld [vmem:[%s12438_s27 + $0x1ec] ss:$16 sps:$4 sm:$0xff]  }
 0x354   : > { %2167 = vmatpush1.bf16.msra.mxu1 %v11282_v12 }
 0x355   : > { %2168 = vmatprep.subr.bf16.mxu1 %v11287_v13  ;;  %v11387_v13 = vld [vmem:[%s12438_s27 + $0x1e8] ss:$16 sps:$4 sm:$0xff]  }
 0x358   : > { %2169 = vmatpush1.bf16.msra.mxu1 %v11285_v15  ;;  %v11392_v15 = vld [vmem:[%s12438_s27 + $0x204] ss:$16 sps:$4 sm:$0xff]  }
 0x359   : > { %2170 = vmatprep.subr.bf16.mxu1 %v11290_v16 }
 0x35c   : > { %2171 = vmatpush1.bf16.msra.mxu1 %v11288_v18  ;;  %v11390_v18 = vld [vmem:[%s12438_s27 + $0x200] ss:$16 sps:$4 sm:$0xff]  }
 0x35d   : > { %2172 = vmatprep.subr.bf16.mxu1 %v11293_v20 }
 0x360   : > { %2173 = vmatpush1.bf16.msra.mxu1 %v11291_v22  ;;  %v11395_v22 = vld [vmem:[%s12438_s27 + $0x224] ss:$16 sps:$4 sm:$0xff]  }
 0x363   : > { %2189 = vmatmul.mubr.bf16.vlgmr.msra.gmra.mrb[4].mxu1 %v2060_v23 }
 0x436   : > { %v2190_v32 = vpop.f32.mrb[4].mxu1 }
 0x437   : > { %v11001_v33 = vadd.f32 %v2190_v32, %v12673_v30  ;;  %v2192_v34 = vpop.f32.mrb[5].mxu1  ;;  %v11402_v32 = vld [vmem:[%s12438_s27 + $0x280] ss:$16 sps:$4 sm:$0xff]  }
 0x438   : > { %v11002_v35 = vadd.f32 %v2192_v34, %v12676_v31  ;;  %v2194_v36 = vpop.f32.mrb[6].mxu1  ;;  %v11405_v34 = vld [vmem:[%s12438_s27 + $0x2a0] ss:$16 sps:$4 sm:$0xff]  }
 0x439   : > { %v2199_v37 = vmax.f32 %v11001_v33, 0.0  ;;  %v2195_v38 = vpop.f32.mrb[7].mxu1  ;;  %v11407_v33 = vld [vmem:[%s12438_s27 + $0x2a4] ss:$16 sps:$4 sm:$0xff]   ;;  %v11408_v36 = vld [vmem:[%s12438_s27 + $0x2c0] ss:$16 sps:$4 sm:$0xff]  }
 0x43a   : > { %v2200_v39 = vmax.f32 %v11002_v35, 0.0  ;;  %v11410_v35 = vld [vmem:[%s12438_s27 + $0x2c4] ss:$16 sps:$4 sm:$0xff]   ;;  %v11411_v38 = vld [vmem:[%s12438_s27 + $0x2e0] ss:$16 sps:$4 sm:$0xff]  }
 0x43b   : > { %v12683_v42 = vpack.c.bf16 %v2199_v37, %v2199_v37  ;;  %v11413_v37 = vld [vmem:[%s12438_s27 + $0x2e4] ss:$16 sps:$4 sm:$0xff]  }
 0x43c   : > { %v12680_v40 = vpack.c.bf16 %v2200_v39, %v2200_v39  ;;  %v11416_v39 = vld [vmem:[%s12438_s27 + $0x304] ss:$16 sps:$4 sm:$0xff]  }
 0x43e   : > { %2619 = vmatprep.mubr.bf16.mxu0 %v12680_v40  ;;  %v2769_v12 = vshll.u32 %v12680_v40, 16  ;;  %v2767_v20 = vshrl.u32 %v12680_v40, 16 }
 0x43f   : > { %2620 = vmatmul.mubr.bf16.vlgmr.msra.gmra.mrb[12].mxu0 %v12683_v42 }
 0x440   : > { %2629 = vmatpush1.bf16.msra.mxu0 %v11342_v41  ;;  %2660 = vmatprep.mubr.bf16.mxu0 %v12680_v40  ;;  %v2771_v16 = vrot.slane %v2769_v12, 1  ;;  %v11414_v41 = vld [vmem:[%s12438_s27 + $0x300] ss:$16 sps:$4 sm:$0xff]   ;;  %v11453_v12 = vld [vmem:[%s12438_s27 + $0x2a8] ss:$16 sps:$4 sm:$0xff]  }
 0x441   : > { %2630 = vmatprep.subr.bf16.mxu0 %v11347_v43  ;;  %v11419_v43 = vld [vmem:[%s12438_s27 + $0x324] ss:$16 sps:$4 sm:$0xff]  }
 0x442   : > { %v12723_v23 = vor.u32 %v2771_v16, %v2767_v20  ;;  %v11461_v16 = vld [vmem:[%s12438_s27 + $0x2ec] ss:$16 sps:$4 sm:$0xff]  }
 0x443   : > { %v11464_v20 = vld [vmem:[%s12438_s27 + $0x30c] ss:$16 sps:$4 sm:$0xff]  }
 0x444   : > { %2631 = vmatpush1.bf16.msra.mxu0 %v11345_v44  ;;  %v11417_v44 = vld [vmem:[%s12438_s27 + $0x320] ss:$16 sps:$4 sm:$0xff]  }
 0x445   : > { %2632 = vmatprep.subr.bf16.mxu0 %v11350_v45  ;;  %v11422_v45 = vld [vmem:[%s12438_s27 + $0x344] ss:$16 sps:$4 sm:$0xff]  }
 0x448   : > { %2633 = vmatpush1.bf16.msra.mxu0 %v11348_v46  ;;  %v11420_v46 = vld [vmem:[%s12438_s27 + $0x340] ss:$16 sps:$4 sm:$0xff]  }
 0x449   : > { %2634 = vmatprep.subr.bf16.mxu0 %v11353_v47  ;;  %v11425_v47 = vld [vmem:[%s12438_s27 + $0x364] ss:$16 sps:$4 sm:$0xff]  }
 0x44c   : > { %2635 = vmatpush1.bf16.msra.mxu0 %v11351_v48  ;;  %v11423_v48 = vld [vmem:[%s12438_s27 + $0x360] ss:$16 sps:$4 sm:$0xff]  }
 0x44d   : > { %2636 = vmatprep.subr.bf16.mxu0 %v11356_v49  ;;  %v11428_v49 = vld [vmem:[%s12438_s27 + $0x384] ss:$16 sps:$4 sm:$0xff]  }
 0x450   : > { %2637 = vmatpush1.bf16.msra.mxu0 %v11354_v50  ;;  %v11426_v50 = vld [vmem:[%s12438_s27 + $0x380] ss:$16 sps:$4 sm:$0xff]  }
 0x451   : > { %2638 = vmatprep.subr.bf16.mxu0 %v11359_v51  ;;  %v11431_v51 = vld [vmem:[%s12438_s27 + $0x3a4] ss:$16 sps:$4 sm:$0xff]  }
 0x454   : > { %2639 = vmatpush1.bf16.msra.mxu0 %v11357_v52  ;;  %v11429_v52 = vld [vmem:[%s12438_s27 + $0x3a0] ss:$16 sps:$4 sm:$0xff]  }
 0x455   : > { %2640 = vmatprep.subr.bf16.mxu0 %v11362_v53  ;;  %v11434_v53 = vld [vmem:[%s12438_s27 + $0x3c4] ss:$16 sps:$4 sm:$0xff]  }
 0x458   : > { %2641 = vmatpush1.bf16.msra.mxu0 %v11360_v54  ;;  %v11432_v54 = vld [vmem:[%s12438_s27 + $0x3c0] ss:$16 sps:$4 sm:$0xff]  }
 0x459   : > { %2642 = vmatprep.subr.bf16.mxu0 %v11365_v57  ;;  %v11437_v57 = vld [vmem:[%s12438_s27 + $0x3e4] ss:$16 sps:$4 sm:$0xff]  }
 0x45c   : > { %2643 = vmatpush1.bf16.msra.mxu0 %v11363_v58  ;;  %v2762_v58 = vshll.u32 %v12683_v42, 16 }
 0x45d   : > { %2644 = vmatprep.subr.bf16.mxu0 %v11368_v59  ;;  %v11435_v59 = vld [vmem:[%s12438_s27 + $0x3e0] ss:$16 sps:$4 sm:$0xff]  }
 0x460   : > { %2645 = vmatpush1.bf16.msra.mxu0 %v11366_v60  ;;  %v2764_v60 = vrot.slane %v2762_v58, 1  ;;  %v11509_v58 = vld [vmem:[%s12438_s27 + $0x4e4] ss:$16 sps:$4 sm:$0xff]  }
 0x461   : > { %2646 = vmatprep.subr.bf16.mxu0 %v11371_v61  ;;  %v11440_v61 = vld [vmem:[%s12438_s27 + $0x20c] ss:$16 sps:$4 sm:$0xff]  }
 0x464   : > { %2647 = vmatpush1.bf16.msra.mxu0 %v11369_v62  ;;  %v2760_v62 = vshrl.u32 %v12683_v42, 16 }
 0x465   : > { %2648 = vmatprep.subr.bf16.mxu0 %v11374_v63  ;;  %v11438_v63 = vld [vmem:[%s12438_s27 + $0x208] ss:$16 sps:$4 sm:$0xff]  }
 0x468   : > { %2649 = vmatpush1.bf16.msra.mxu0 %v11372_v1  ;;  %v12760_v1 = vor.u32 %v2764_v60, %v2760_v62  ;;  %v11512_v60 = vld [vmem:[%s12438_s27 + $0x504] ss:$16 sps:$4 sm:$0xff]  }
 0x469   : > { %2650 = vmatprep.subr.bf16.mxu0 %v11377_v2  ;;  %v11443_v2 = vld [vmem:[%s12438_s27 + $0x22c] ss:$16 sps:$4 sm:$0xff]   ;;  %v11515_v62 = vld [vmem:[%s12438_s27 + $0x524] ss:$16 sps:$4 sm:$0xff]  }
 0x46c   : > { %2651 = vmatpush1.bf16.msra.mxu0 %v11375_v3  ;;  %v11441_v3 = vld [vmem:[%s12438_s27 + $0x228] ss:$16 sps:$4 sm:$0xff]  }
 0x46d   : > { %2652 = vmatprep.subr.bf16.mxu0 %v11380_v4  ;;  %v11446_v4 = vld [vmem:[%s12438_s27 + $0x24c] ss:$16 sps:$4 sm:$0xff]  }
 0x470   : > { %2653 = vmatpush1.bf16.msra.mxu0 %v11378_v5  ;;  %v11444_v5 = vld [vmem:[%s12438_s27 + $0x248] ss:$16 sps:$4 sm:$0xff]  }
 0x471   : > { %2654 = vmatprep.subr.bf16.mxu0 %v11383_v6  ;;  %v11449_v6 = vld [vmem:[%s12438_s27 + $0x26c] ss:$16 sps:$4 sm:$0xff]  }
 0x474   : > { %2655 = vmatpush1.bf16.msra.mxu0 %v11381_v7  ;;  %v11447_v7 = vld [vmem:[%s12438_s27 + $0x268] ss:$16 sps:$4 sm:$0xff]  }
 0x475   : > { %2656 = vmatprep.subr.bf16.mxu0 %v11386_v8  ;;  %v11452_v8 = vld [vmem:[%s12438_s27 + $0x28c] ss:$16 sps:$4 sm:$0xff]  }
 0x478   : > { %2657 = vmatpush1.bf16.msra.mxu0 %v11384_v9  ;;  %v11450_v9 = vld [vmem:[%s12438_s27 + $0x288] ss:$16 sps:$4 sm:$0xff]  }
 0x479   : > { %2658 = vmatprep.subr.bf16.mxu0 %v11389_v10  ;;  %v11455_v10 = vld [vmem:[%s12438_s27 + $0x2ac] ss:$16 sps:$4 sm:$0xff]  }
 0x47c   : > { %2659 = vmatpush1.bf16.msra.mxu0 %v11387_v13  ;;  %v11458_v13 = vld [vmem:[%s12438_s27 + $0x2cc] ss:$16 sps:$4 sm:$0xff]  }
 0x47d   : > { %3095 = vmatprep.subr.bf16.mxu0 %v11392_v15  ;;  %v11456_v15 = vld [vmem:[%s12438_s27 + $0x2c8] ss:$16 sps:$4 sm:$0xff]  }
 0x47f   : > { %2661 = vmatmul.mubr.bf16.vlgmr.msra.gmra.mrb[16].mxu0 %v12683_v42 }
 0x480   : > { %3096 = vmatpush1.bf16.msra.mxu0 %v11390_v18  ;;  %3127 = vmatprep.mubr.bf16.mxu0 %v12723_v23  ;;  %v11459_v18 = vld [vmem:[%s12438_s27 + $0x2e8] ss:$16 sps:$4 sm:$0xff]  }
 0x481   : > { %3097 = vmatprep.subr.bf16.mxu0 %v11395_v22  ;;  %v11462_v22 = vld [vmem:[%s12438_s27 + $0x308] ss:$16 sps:$4 sm:$0xff]  }
 0x484   : > { %3098 = vmatpush1.bf16.msra.mxu0 %v11393_v24  ;;  %v11465_v24 = vld [vmem:[%s12438_s27 + $0x328] ss:$16 sps:$4 sm:$0xff]  }
 0x485   : > { %3099 = vmatprep.subr.bf16.mxu0 %v11398_v25  ;;  %v11470_v25 = vld [vmem:[%s12438_s27 + $0x34c] ss:$16 sps:$4 sm:$0xff]  }
 0x488   : > { %3100 = vmatpush1.bf16.msra.mxu0 %v11396_v26  ;;  %v11468_v26 = vld [vmem:[%s12438_s27 + $0x348] ss:$16 sps:$4 sm:$0xff]  }
 0x489   : > { %3101 = vmatprep.subr.bf16.mxu0 %v11401_v27  ;;  %v11473_v27 = vld [vmem:[%s12438_s27 + $0x36c] ss:$16 sps:$4 sm:$0xff]  }
 0x48c   : > { %3102 = vmatpush1.bf16.msra.mxu0 %v11399_v28  ;;  %v11471_v28 = vld [vmem:[%s12438_s27 + $0x368] ss:$16 sps:$4 sm:$0xff]  }
 0x48d   : > { %3103 = vmatprep.subr.bf16.mxu0 %v11404_v29  ;;  %v11476_v29 = vld [vmem:[%s12438_s27 + $0x38c] ss:$16 sps:$4 sm:$0xff]  }
 0x490   : > { %3104 = vmatpush1.bf16.msra.mxu0 %v11402_v32  ;;  %v11474_v32 = vld [vmem:[%s12438_s27 + $0x388] ss:$16 sps:$4 sm:$0xff]  }
 0x491   : > { %3105 = vmatprep.subr.bf16.mxu0 %v11407_v33  ;;  %v11479_v33 = vld [vmem:[%s12438_s27 + $0x3ac] ss:$16 sps:$4 sm:$0xff]  }
 0x494   : > { %3106 = vmatpush1.bf16.msra.mxu0 %v11405_v34  ;;  %v11477_v34 = vld [vmem:[%s12438_s27 + $0x3a8] ss:$16 sps:$4 sm:$0xff]  }
 0x495   : > { %3107 = vmatprep.subr.bf16.mxu0 %v11410_v35  ;;  %v11482_v35 = vld [vmem:[%s12438_s27 + $0x3cc] ss:$16 sps:$4 sm:$0xff]  }
 0x498   : > { %3108 = vmatpush1.bf16.msra.mxu0 %v11408_v36  ;;  %v11480_v36 = vld [vmem:[%s12438_s27 + $0x3c8] ss:$16 sps:$4 sm:$0xff]  }
 0x499   : > { %3109 = vmatprep.subr.bf16.mxu0 %v11413_v37  ;;  %v11485_v37 = vld [vmem:[%s12438_s27 + $0x3ec] ss:$16 sps:$4 sm:$0xff]  }
 0x49c   : > { %3110 = vmatpush1.bf16.msra.mxu0 %v11411_v38  ;;  %v11483_v38 = vld [vmem:[%s12438_s27 + $0x3e8] ss:$16 sps:$4 sm:$0xff]  }
 0x49d   : > { %3111 = vmatprep.subr.bf16.mxu0 %v11416_v39  ;;  %v11488_v39 = vld [vmem:[%s12438_s27 + $0x404] ss:$16 sps:$4 sm:$0xff]  }
 0x4a0   : > { %3112 = vmatpush1.bf16.msra.mxu0 %v11414_v41  ;;  %v11486_v41 = vld [vmem:[%s12438_s27 + $0x400] ss:$16 sps:$4 sm:$0xff]  }
 0x4a1   : > { %3113 = vmatprep.subr.bf16.mxu0 %v11419_v43  ;;  %v3249_v43 = vrot.slane %v12680_v40, 1  ;;  %v11546_v40 = vld [vmem:[%s12438_s27 + $0x488] ss:$16 sps:$4 sm:$0xff]  }
 0x4a4   : > { %3114 = vmatpush1.bf16.msra.mxu0 %v11417_v44  ;;  %v11491_v44 = vld [vmem:[%s12438_s27 + $0x424] ss:$16 sps:$4 sm:$0xff]  }
 0x4a5   : > { %3115 = vmatprep.subr.bf16.mxu0 %v11422_v45  ;;  %v11489_v45 = vld [vmem:[%s12438_s27 + $0x420] ss:$16 sps:$4 sm:$0xff]  }
 0x4a8   : > { %3116 = vmatpush1.bf16.msra.mxu0 %v11420_v46  ;;  %v11494_v46 = vld [vmem:[%s12438_s27 + $0x444] ss:$16 sps:$4 sm:$0xff]  }
 0x4a9   : > { %3117 = vmatprep.subr.bf16.mxu0 %v11425_v47  ;;  %v11492_v47 = vld [vmem:[%s12438_s27 + $0x440] ss:$16 sps:$4 sm:$0xff]  }
 0x4ac   : > { %3118 = vmatpush1.bf16.msra.mxu0 %v11423_v48  ;;  %v11497_v48 = vld [vmem:[%s12438_s27 + $0x464] ss:$16 sps:$4 sm:$0xff]  }
 0x4ad   : > { %3119 = vmatprep.subr.bf16.mxu0 %v11428_v49  ;;  %v11495_v49 = vld [vmem:[%s12438_s27 + $0x460] ss:$16 sps:$4 sm:$0xff]  }
 0x4b0   : > { %3120 = vmatpush1.bf16.msra.mxu0 %v11426_v50  ;;  %v11500_v50 = vld [vmem:[%s12438_s27 + $0x484] ss:$16 sps:$4 sm:$0xff]  }
 0x4b1   : > { %3121 = vmatprep.subr.bf16.mxu0 %v11431_v51  ;;  %v11498_v51 = vld [vmem:[%s12438_s27 + $0x480] ss:$16 sps:$4 sm:$0xff]  }
 0x4b4   : > { %3122 = vmatpush1.bf16.msra.mxu0 %v11429_v52  ;;  %v11503_v52 = vld [vmem:[%s12438_s27 + $0x4a4] ss:$16 sps:$4 sm:$0xff]  }
 0x4b5   : > { %3123 = vmatprep.subr.bf16.mxu0 %v11434_v53  ;;  %v11501_v53 = vld [vmem:[%s12438_s27 + $0x4a0] ss:$16 sps:$4 sm:$0xff]  }
 0x4b8   : > { %3124 = vmatpush1.bf16.msra.mxu0 %v11432_v54  ;;  %v11506_v54 = vld [vmem:[%s12438_s27 + $0x4c4] ss:$16 sps:$4 sm:$0xff]  }
 0x4b9   : > { %3125 = vmatprep.subr.bf16.mxu0 %v11437_v57  ;;  %v11504_v57 = vld [vmem:[%s12438_s27 + $0x4c0] ss:$16 sps:$4 sm:$0xff]  }
 0x4bc   : > { %3126 = vmatpush1.bf16.msra.mxu0 %v11435_v59  ;;  %v11507_v59 = vld [vmem:[%s12438_s27 + $0x4e0] ss:$16 sps:$4 sm:$0xff]  }
 0x4bd   : > { %3136 = vmatprep.subr.bf16.mxu0 %v11440_v61  ;;  %v11510_v61 = vld [vmem:[%s12438_s27 + $0x500] ss:$16 sps:$4 sm:$0xff]  }
 0x4bf   : > { %3128 = vmatmul.mubr.bf16.vlgmr.msra.gmra.mrb[12].mxu0 %v12760_v1 }
 0x4c0   : > { %3137 = vmatpush1.bf16.msra.mxu0 %v11438_v63  ;;  %3168 = vmatprep.mubr.bf16.mxu0 %v12723_v23  ;;  %v11467_v23 = vld [vmem:[%s12438_s27 + $0x32c] ss:$16 sps:$4 sm:$0xff]   ;;  %v11590_v63 = vld [vmem:[%s12445_s20 + $0x40] sm:$0xff]  }
 0x4c1   : > { %3138 = vmatprep.subr.bf16.mxu0 %v11443_v2  ;;  %v11592_v2 = vld [vmem:[%s12445_s20 + $0x48] sm:$0xff]   ;;  %10574 = vmatprep.subr.bf16.mxu1 %v11590_v63 }
 0x4c2   : > { %v11573_v63 = vld [vmem:[%s12438_s27 + $0x5a8] ss:$16 sps:$4 sm:$0xff]  }
 0x4c4   : > { %3139 = vmatpush1.bf16.msra.mxu0 %v11441_v3  ;;  %v11513_v3 = vld [vmem:[%s12438_s27 + $0x520] ss:$16 sps:$4 sm:$0xff]  }
 0x4c5   : > { %3140 = vmatprep.subr.bf16.mxu0 %v11446_v4  ;;  %v11518_v4 = vld [vmem:[%s12438_s27 + $0x544] ss:$16 sps:$4 sm:$0xff]  }
 0x4c8   : > { %3141 = vmatpush1.bf16.msra.mxu0 %v11444_v5  ;;  %v11593_v5 = vld [vmem:[%s12445_s20 + $0x8] sm:$0xff]  }
 0x4c9   : > { %3142 = vmatprep.subr.bf16.mxu0 %v11449_v6  ;;  %v11594_v6 = vld [vmem:[%s12445_s20 + $0x50] sm:$0xff]  }
 0x4cc   : > { %3143 = vmatpush1.bf16.msra.mxu0 %v11447_v7  ;;  %v11516_v7 = vld [vmem:[%s12438_s27 + $0x540] ss:$16 sps:$4 sm:$0xff]  }
 0x4cd   : > { %3144 = vmatprep.subr.bf16.mxu0 %v11452_v8  ;;  %v11521_v8 = vld [vmem:[%s12438_s27 + $0x564] ss:$16 sps:$4 sm:$0xff]  }
 0x4d0   : > { %3145 = vmatpush1.bf16.msra.mxu0 %v11450_v9  ;;  %v11595_v9 = vld [vmem:[%s12445_s20 + $0x10] sm:$0xff]  }
 0x4d1   : > { %3146 = vmatprep.subr.bf16.mxu0 %v11455_v10  ;;  %v11596_v10 = vld [vmem:[%s12445_s20 + $0x58] sm:$0xff]  }
 0x4d4   : > { %3147 = vmatpush1.bf16.msra.mxu0 %v11453_v12  ;;  %v11519_v12 = vld [vmem:[%s12438_s27 + $0x560] ss:$16 sps:$4 sm:$0xff]  }
 0x4d5   : > { %3148 = vmatprep.subr.bf16.mxu0 %v11458_v13  ;;  %v11524_v13 = vld [vmem:[%s12438_s27 + $0x584] ss:$16 sps:$4 sm:$0xff]  }
 0x4d8   : > { %3149 = vmatpush1.bf16.msra.mxu0 %v11456_v15  ;;  %v11597_v15 = vld [vmem:[%s12445_s20 + $0x18] sm:$0xff]  }
 0x4d9   : > { %3150 = vmatprep.subr.bf16.mxu0 %v11461_v16  ;;  %v11598_v16 = vld [vmem:[%s12445_s20 + $0x60] sm:$0xff]  }
 0x4dc   : > { %3151 = vmatpush1.bf16.msra.mxu0 %v11459_v18  ;;  %v11522_v18 = vld [vmem:[%s12438_s27 + $0x580] ss:$16 sps:$4 sm:$0xff]  }
 0x4dd   : > { %3152 = vmatprep.subr.bf16.mxu0 %v11464_v20  ;;  %v11527_v20 = vld [vmem:[%s12438_s27 + $0x5a4] ss:$16 sps:$4 sm:$0xff]  }
 0x4e0   : > { %3153 = vmatpush1.bf16.msra.mxu0 %v11462_v22  ;;  %v11599_v22 = vld [vmem:[%s12445_s20 + $0x20] sm:$0xff]  }
 0x4e1   : > { %3154 = vmatprep.subr.bf16.mxu0 %v11467_v23  ;;  %v11600_v23 = vld [vmem:[%s12445_s20 + $0x68] sm:$0xff]  }
 0x4e4   : > { %3155 = vmatpush1.bf16.msra.mxu0 %v11465_v24  ;;  %v11525_v24 = vld [vmem:[%s12438_s27 + $0x5a0] ss:$16 sps:$4 sm:$0xff]  }
 0x4e5   : > { %3156 = vmatprep.subr.bf16.mxu0 %v11470_v25  ;;  %v11530_v25 = vld [vmem:[%s12438_s27 + $0x5c4] ss:$16 sps:$4 sm:$0xff]  }
 0x4e8   : > { %3157 = vmatpush1.bf16.msra.mxu0 %v11468_v26  ;;  %v11601_v26 = vld [vmem:[%s12445_s20 + $0x28] sm:$0xff]  }
 0x4e9   : > { %3158 = vmatprep.subr.bf16.mxu0 %v11473_v27  ;;  %v11528_v27 = vld [vmem:[%s12438_s27 + $0x5c0] ss:$16 sps:$4 sm:$0xff]  }
 0x4ec   : > { %3159 = vmatpush1.bf16.msra.mxu0 %v11471_v28  ;;  %v11533_v28 = vld [vmem:[%s12438_s27 + $0x5e4] ss:$16 sps:$4 sm:$0xff]  }
 0x4ed   : > { %3160 = vmatprep.subr.bf16.mxu0 %v11476_v29  ;;  %v11531_v29 = vld [vmem:[%s12438_s27 + $0x5e0] ss:$16 sps:$4 sm:$0xff]  }
 0x4f0   : > { %3161 = vmatpush1.bf16.msra.mxu0 %v11474_v32  ;;  %v11536_v32 = vld [vmem:[%s12438_s27 + $0x40c] ss:$16 sps:$4 sm:$0xff]  }
 0x4f1   : > { %3162 = vmatprep.subr.bf16.mxu0 %v11479_v33  ;;  %v11534_v33 = vld [vmem:[%s12438_s27 + $0x408] ss:$16 sps:$4 sm:$0xff]  }
 0x4f4   : > { %3163 = vmatpush1.bf16.msra.mxu0 %v11477_v34  ;;  %v3248_v34 = vrot.slane %v12683_v42, 1  ;;  %v11586_v42 = vld [vmem:[%s12804_s2 + $0x20] sm:$0xff]  }
 0x4f5   : > { %3164 = vmatprep.subr.bf16.mxu0 %v11482_v35  ;;  %v11539_v35 = vld [vmem:[%s12438_s27 + $0x42c] ss:$16 sps:$4 sm:$0xff]  }
 0x4f8   : > { %3165 = vmatpush1.bf16.msra.mxu0 %v11480_v36  ;;  %v11537_v36 = vld [vmem:[%s12438_s27 + $0x428] ss:$16 sps:$4 sm:$0xff]  }
 0x4f9   : > { %3166 = vmatprep.subr.bf16.mxu0 %v11485_v37  ;;  %v11542_v37 = vld [vmem:[%s12438_s27 + $0x44c] ss:$16 sps:$4 sm:$0xff]  }
 0x4fc   : > { %3167 = vmatpush1.bf16.msra.mxu0 %v11483_v38  ;;  %v11540_v38 = vld [vmem:[%s12438_s27 + $0x448] ss:$16 sps:$4 sm:$0xff]  }
 0x4fd   : > { %3572 = vmatprep.subr.bf16.mxu0 %v11488_v39  ;;  %v11545_v39 = vld [vmem:[%s12438_s27 + $0x46c] ss:$16 sps:$4 sm:$0xff]  }
 0x4ff   : > { %3169 = vmatmul.mubr.bf16.vlgmr.msra.gmra.mrb[16].mxu0 %v12760_v1  ;;  %v11591_v1 = vld [vmem:[%s12445_s20] sm:$0xff]  }
 0x500   : > { %3573 = vmatpush1.bf16.msra.mxu0 %v11486_v41  ;;  %3604 = vmatprep.mubr.bf16.mxu0 %v3249_v43  ;;  %v11543_v41 = vld [vmem:[%s12438_s27 + $0x468] ss:$16 sps:$4 sm:$0xff]  }
 0x501   : > { %3574 = vmatprep.subr.bf16.mxu0 %v11491_v44  ;;  %10575 = vmatpush3.bf16.msra.mxu1 %v11591_v1  ;;  %v11548_v44 = vld [vmem:[%s12438_s27 + $0x48c] ss:$16 sps:$4 sm:$0xff]  }
 0x502   : > { %10576 = vmatprep.subr.bf16.mxu1 %v11592_v2  ;;  %v11578_v1 = vld [vmem:[%s12438_s27 + $0x5cc] ss:$16 sps:$4 sm:$0xff]   ;;  %v11576_v2 = vld [vmem:[%s12438_s27 + $0x5c8] ss:$16 sps:$4 sm:$0xff]  }
 0x504   : > { %3575 = vmatpush1.bf16.msra.mxu0 %v11489_v45  ;;  %v11549_v45 = vld [vmem:[%s12438_s27 + $0x4a8] ss:$16 sps:$4 sm:$0xff]  }
 0x505   : > { %3576 = vmatprep.subr.bf16.mxu0 %v11494_v46  ;;  %10577 = vmatpush3.bf16.msra.mxu1 %v11593_v5  ;;  %v11554_v46 = vld [vmem:[%s12438_s27 + $0x4cc] ss:$16 sps:$4 sm:$0xff]   ;;  %v11582_v5 = vld [vmem:[%s12804_s2] sm:$0xff]  }
 0x506   : > { %10578 = vmatprep.subr.bf16.mxu1 %v11594_v6  ;;  %v11583_v6 = vld [vmem:[%s12804_s2 + $0x8] sm:$0xff]  }
 0x508   : > { %3577 = vmatpush1.bf16.msra.mxu0 %v11492_v47  ;;  %v11552_v47 = vld [vmem:[%s12438_s27 + $0x4c8] ss:$16 sps:$4 sm:$0xff]  }
 0x509   : > { %3578 = vmatprep.subr.bf16.mxu0 %v11497_v48  ;;  %10579 = vmatpush3.bf16.msra.mxu1 %v11595_v9  ;;  %v11557_v48 = vld [vmem:[%s12438_s27 + $0x4ec] ss:$16 sps:$4 sm:$0xff]  }
 0x50a   : > { %10580 = vmatprep.subr.bf16.mxu1 %v11596_v10  ;;  %v11587_v9 = vld [vmem:[%s12804_s2 + $0x28] sm:$0xff]   ;;  %v11602_v10 = vld [vmem:[%s12445_s20 + $0x70] sm:$0xff]  }
 0x50c   : > { %3579 = vmatpush1.bf16.msra.mxu0 %v11495_v49  ;;  %v11555_v49 = vld [vmem:[%s12438_s27 + $0x4e8] ss:$16 sps:$4 sm:$0xff]  }
 0x50d   : > { %3580 = vmatprep.subr.bf16.mxu0 %v11500_v50  ;;  %10581 = vmatpush3.bf16.msra.mxu1 %v11597_v15  ;;  %v11560_v50 = vld [vmem:[%s12438_s27 + $0x50c] ss:$16 sps:$4 sm:$0xff]   ;;  %v11588_v15 = vld [vmem:[%s12804_s2 + $0x30] sm:$0xff]  }
 0x50e   : > { %10582 = vmatprep.subr.bf16.mxu1 %v11598_v16 }
 0x510   : > { %3581 = vmatpush1.bf16.msra.mxu0 %v11498_v51  ;;  %v11558_v51 = vld [vmem:[%s12438_s27 + $0x508] ss:$16 sps:$4 sm:$0xff]  }
 0x511   : > { %3582 = vmatprep.subr.bf16.mxu0 %v11503_v52  ;;  %10583 = vmatpush3.bf16.msra.mxu1 %v11599_v22  ;;  %v11563_v52 = vld [vmem:[%s12438_s27 + $0x52c] ss:$16 sps:$4 sm:$0xff]  }
 0x512   : > { %10584 = vmatprep.subr.bf16.mxu1 %v11600_v23  ;;  %v11589_v22 = vld [vmem:[%s12804_s2 + $0x38] sm:$0xff]  }
 0x514   : > { %3583 = vmatpush1.bf16.msra.mxu0 %v11501_v53  ;;  %v11561_v53 = vld [vmem:[%s12438_s27 + $0x528] ss:$16 sps:$4 sm:$0xff]  }
 0x515   : > { %3584 = vmatprep.subr.bf16.mxu0 %v11506_v54  ;;  %10585 = vmatpush3.bf16.msra.mxu1 %v11601_v26  ;;  %v11566_v54 = vld [vmem:[%s12438_s27 + $0x54c] ss:$16 sps:$4 sm:$0xff]  }
 0x516   : > { %10586 = vmatprep.subr.bf16.mxu1 %v11602_v10  ;;  %v11626_v10 = vld [vmem:[%s12445_s20 + $0x140] sm:$0xff]  }
 0x518   : > { %3585 = vmatpush1.bf16.msra.mxu0 %v11504_v57  ;;  %v11564_v57 = vld [vmem:[%s12438_s27 + $0x548] ss:$16 sps:$4 sm:$0xff]  }
 0x519   : > { %3586 = vmatprep.subr.bf16.mxu0 %v11509_v58  ;;  %v11569_v58 = vld [vmem:[%s12438_s27 + $0x56c] ss:$16 sps:$4 sm:$0xff]  }
 0x51c   : > { %3587 = vmatpush1.bf16.msra.mxu0 %v11507_v59  ;;  %v11567_v59 = vld [vmem:[%s12438_s27 + $0x568] ss:$16 sps:$4 sm:$0xff]  }
 0x51d   : > { %3588 = vmatprep.subr.bf16.mxu0 %v11512_v60  ;;  %v11572_v60 = vld [vmem:[%s12438_s27 + $0x58c] ss:$16 sps:$4 sm:$0xff]  }
 0x520   : > { %3589 = vmatpush1.bf16.msra.mxu0 %v11510_v61  ;;  %v11570_v61 = vld [vmem:[%s12438_s27 + $0x588] ss:$16 sps:$4 sm:$0xff]  }
 0x521   : > { %3590 = vmatprep.subr.bf16.mxu0 %v11515_v62  ;;  %v11575_v62 = vld [vmem:[%s12438_s27 + $0x5ac] ss:$16 sps:$4 sm:$0xff]  }
 0x524   : > { %3591 = vmatpush1.bf16.msra.mxu0 %v11513_v3  ;;  %v11581_v3 = vld [vmem:[%s12438_s27 + $0x5ec] ss:$16 sps:$4 sm:$0xff]  }
 0x525   : > { %3592 = vmatprep.subr.bf16.mxu0 %v11518_v4  ;;  %v11579_v4 = vld [vmem:[%s12438_s27 + $0x5e8] ss:$16 sps:$4 sm:$0xff]  }
 0x528   : > { %3593 = vmatpush1.bf16.msra.mxu0 %v11516_v7  ;;  %v11584_v7 = vld [vmem:[%s12804_s2 + $0x10] sm:$0xff]  }
 0x529   : > { %3594 = vmatprep.subr.bf16.mxu0 %v11521_v8  ;;  %v11585_v8 = vld [vmem:[%s12804_s2 + $0x18] sm:$0xff]  }
 0x52c   : > { %3595 = vmatpush1.bf16.msra.mxu0 %v11519_v12  ;;  %v9271_v12 = vld [vmem:[%s864_s3] ss:$0 sm:$0xff]  ;;  %s13856_s3 = sld [smem:[#allocation8_spill]] }
 0x52d   : > { %3596 = vmatprep.subr.bf16.mxu0 %v11524_v13  ;;  %v11603_v13 = vld [vmem:[%s12445_s20 + $0x30] sm:$0xff]   ;;  %v1011_v16 = vadd.f32 %v9271_v12, %v12516_v56  ;;  %v1020_v56 = vld [vmem:[%s840_s1] sm:$0xf] }
 0x52e   : > { %10587 = vmatpush3.bf16.msra.mxu1 %v11603_v13  ;;  %v12931_v26 = vrot.slane %v1020_v56, %v12604_v17  ;;  %v11607_v17 = vld [vmem:[%s12445_s20 + $0x88] sm:$0xff]   ;;  %v11627_v12 = vld [vmem:[%s12445_s20 + $0x100] sm:$0xff]  }
 0x52f   : > { %v1016_v23 = vmax.f32 %v1011_v16, 0.0  ;;  %v11628_v13 = vld [vmem:[%s12445_s20 + $0x148] sm:$0xff]   ;;  %v11630_v16 = vld [vmem:[%s12445_s20 + $0x150] sm:$0xff]  }
 0x530   : > { %3597 = vmatpush1.bf16.msra.mxu0 %v11522_v18  ;;  %v11604_v18 = vld [vmem:[%s12445_s20 + $0x78] sm:$0xff]  }
 0x531   : > { %3598 = vmatprep.subr.bf16.mxu0 %v11527_v20  ;;  %v11605_v20 = vld [vmem:[%s12445_s20 + $0x38] sm:$0xff]   ;;  %10588 = vmatprep.subr.bf16.mxu1 %v11604_v18  ;;  %v11631_v18 = vld [vmem:[%s12445_s20 + $0x110] sm:$0xff]  }
 0x532   : > { %10589 = vmatpush3.bf16.msra.mxu1 %v11605_v20  ;;  %v11632_v20 = vld [vmem:[%s12445_s20 + $0x158] sm:$0xff]   ;;  %s13296_s21 = scalar_lea.vmem %s13856_s3, %s12588_s19 }
 0x533   : > { %3934 = vmatprep.subr.bf16.mxu1 %v12287_v55 }
 0x534   : > { %3599 = vmatpush1.bf16.msra.mxu0 %v11525_v24  ;;  %v12917_v24 = vpack.c.bf16 %v1016_v23, %v1016_v23 }
 0x535   : > { %3600 = vmatprep.subr.bf16.mxu0 %v11530_v25  ;;  %v12928_v25 = vrot.slane %v1020_v56, %v12600_v14  ;;  %v11606_v14 = vld [vmem:[%s12445_s20 + $0x80] sm:$0xff]  }
 0x538   : > { %3601 = vmatpush1.bf16.msra.mxu0 %v11528_v27 }
 0x539   : > { %3602 = vmatprep.subr.bf16.mxu0 %v11533_v28 }
 0x53c   : > { %3603 = vmatpush1.bf16.msra.mxu0 %v11531_v29 }
 0x53d   : > { %3613 = vmatprep.subr.bf16.mxu0 %v11536_v32 }
 0x53f   : > { %3605 = vmatmul.mubr.bf16.vlgmr.msra.gmra.mrb[12].mxu0 %v3248_v34 }
 0x540   : > { %3614 = vmatpush1.bf16.msra.mxu0 %v11534_v33  ;;  %3645 = vmatprep.mubr.bf16.mxu0 %v3249_v43  ;;  %v11551_v43 = vld [vmem:[%s12438_s27 + $0x4ac] ss:$16 sps:$4 sm:$0xff]  }
 0x541   : > { %3615 = vmatprep.subr.bf16.mxu0 %v11539_v35 }
 0x544   : > { %3616 = vmatpush1.bf16.msra.mxu0 %v11537_v36 }
 0x545   : > { %3617 = vmatprep.subr.bf16.mxu0 %v11542_v37 }
 0x548   : > { %3618 = vmatpush1.bf16.msra.mxu0 %v11540_v38 }
 0x549   : > { %3619 = vmatprep.subr.bf16.mxu0 %v11545_v39  ;;  %v11608_v39 = vld [vmem:[%s12445_s20 + $0x90] sm:$0xff]  }
 0x54c   : > { %3620 = vmatpush1.bf16.msra.mxu0 %v11543_v41  ;;  %v11609_v41 = vld [vmem:[%s12445_s20 + $0x98] sm:$0xff]  }
 0x54d   : > { %3621 = vmatprep.subr.bf16.mxu0 %v11548_v44  ;;  %v11610_v44 = vld [vmem:[%s12445_s20 + $0xa0] sm:$0xff]  }
 0x550   : > { %3622 = vmatpush1.bf16.msra.mxu0 %v11546_v40  ;;  %v11611_v40 = vld [vmem:[%s12445_s20 + $0xa8] sm:$0xff]  }
 0x551   : > { %3623 = vmatprep.subr.bf16.mxu0 %v11551_v43  ;;  %v11612_v43 = vld [vmem:[%s12445_s20 + $0xb0] sm:$0xff]  }
 0x554   : > { %3624 = vmatpush1.bf16.msra.mxu0 %v11549_v45  ;;  %v11613_v45 = vld [vmem:[%s12445_s20 + $0xb8] sm:$0xff]  }
 0x555   : > { %3625 = vmatprep.subr.bf16.mxu0 %v11554_v46  ;;  %v11614_v46 = vld [vmem:[%s12445_s20 + $0xc0] sm:$0xff]  }
 0x558   : > { %3626 = vmatpush1.bf16.msra.mxu0 %v11552_v47  ;;  %v11615_v47 = vld [vmem:[%s12445_s20 + $0xc8] sm:$0xff]  }
 0x559   : > { %3627 = vmatprep.subr.bf16.mxu0 %v11557_v48  ;;  %v11616_v48 = vld [vmem:[%s12445_s20 + $0xd0] sm:$0xff]  }
 0x55c   : > { %3628 = vmatpush1.bf16.msra.mxu0 %v11555_v49  ;;  %v11617_v49 = vld [vmem:[%s12445_s20 + $0xd8] sm:$0xff]  }
 0x55d   : > { %3629 = vmatprep.subr.bf16.mxu0 %v11560_v50  ;;  %v11618_v50 = vld [vmem:[%s12445_s20 + $0x120] sm:$0xff]  }
 0x560   : > { %3630 = vmatpush1.bf16.msra.mxu0 %v11558_v51  ;;  %v2680_v51 = vsub.s32 2, %v12591_v11 }
 0x561   : > { %3631 = vmatprep.subr.bf16.mxu0 %v11563_v52  ;;  %v2684_v52 = vsub.s32 3, %v12591_v11 }
 0x564   : > { %3632 = vmatpush1.bf16.msra.mxu0 %v11561_v53  ;;  %v12967_v53 = vrot.slane %v1020_v56, %v2680_v51  ;;  %v11649_v51 = vld [vmem:[%s12445_s20 + $0x1c8] sm:$0xff]  }
 0x565   : > { %3633 = vmatprep.subr.bf16.mxu0 %v11566_v54  ;;  %v12969_v54 = vrot.slane %v1020_v56, %v2684_v52  ;;  %v11650_v52 = vld [vmem:[%s12445_s20 + $0x210] sm:$0xff]  }
 0x568   : > { %3634 = vmatpush1.bf16.msra.mxu0 %v11564_v57 }
 0x569   : > { %3635 = vmatprep.subr.bf16.mxu0 %v11569_v58 }
 0x56c   : > { %3636 = vmatpush1.bf16.msra.mxu0 %v11567_v59 }
 0x56d   : > { %3637 = vmatprep.subr.bf16.mxu0 %v11572_v60 }
 0x570   : > { %3638 = vmatpush1.bf16.msra.mxu0 %v11570_v61 }
 0x571   : > { %3639 = vmatprep.subr.bf16.mxu0 %v11575_v62 }
 0x574   : > { %3640 = vmatpush1.bf16.msra.mxu0 %v11573_v63 }
 0x575   : > { %3641 = vmatprep.subr.bf16.mxu0 %v11578_v1 }
 0x578   : > { %3642 = vmatpush1.bf16.msra.mxu0 %v11576_v2  ;;  %v11619_v2 = vld [vmem:[%s12445_s20 + $0xe0] sm:$0xff]  }
 0x579   : > { %3643 = vmatprep.subr.bf16.mxu0 %v11581_v3 }
 0x57c   : > { %3644 = vmatpush1.bf16.msra.mxu0 %v11579_v4  ;;  %v11620_v4 = vld [vmem:[%s12445_s20 + $0x128] sm:$0xff]  }
 0x57d   : > { %10869 = vmatprep.subr.bf16.mxu0 %v12285_v0 }
 0x57f   : > { %3646 = vmatmul.mubr.bf16.vlgmr.msra.gmra.mrb[16].mxu0 %v3248_v34 }
 0x580   : > { %10870 = vmatpush3.bf16.msra.mxu0 %v11582_v5  ;;  %10885 = vmatprep.mubr.msk.bf16.mxu0 %vm12286_vm0, %v12285_v0 }
 0x581   : > { %10871 = vmatprep.subr.bf16.mxu0 %v12285_v0 }
 0x584   : > { %10872 = vmatpush3.bf16.msra.mxu0 %v11583_v6  ;;  %v11621_v6 = vld [vmem:[%s12445_s20 + $0xe8] sm:$0xff]  }
 0x585   : > { %10873 = vmatprep.subr.bf16.mxu0 %v12285_v0 }
 0x588   : > { %10874 = vmatpush3.bf16.msra.mxu0 %v11584_v7  ;;  %v11622_v7 = vld [vmem:[%s12445_s20 + $0x130] sm:$0xff]  }
 0x589   : > { %10875 = vmatprep.subr.bf16.mxu0 %v12285_v0 }
 0x58c   : > { %10876 = vmatpush3.bf16.msra.mxu0 %v11585_v8  ;;  %v11623_v8 = vld [vmem:[%s12445_s20 + $0xf0] sm:$0xff]  }
 0x58d   : > { %10877 = vmatprep.subr.bf16.mxu0 %v12285_v0 }
 0x590   : > { %10878 = vmatpush3.bf16.msra.mxu0 %v11586_v42  ;;  %v11624_v42 = vld [vmem:[%s12445_s20 + $0x138] sm:$0xff]  }
 0x591   : > { %10879 = vmatprep.subr.bf16.mxu0 %v12285_v0 }
 0x594   : > { %10880 = vmatpush3.bf16.msra.mxu0 %v11587_v9  ;;  %v11625_v9 = vld [vmem:[%s12445_s20 + $0xf8] sm:$0xff]  }
 0x595   : > { %10881 = vmatprep.subr.bf16.mxu0 %v12285_v0 }
 0x598   : > { %10882 = vmatpush3.bf16.msra.mxu0 %v11588_v15  ;;  %v11629_v15 = vld [vmem:[%s12445_s20 + $0x108] sm:$0xff]  }
 0x599   : > { %10883 = vmatprep.subr.bf16.mxu0 %v12285_v0 }
 0x59c   : > { %10884 = vmatpush3.bf16.msra.mxu0 %v11589_v22 }
 0x59d   : > { %10889 = vmatprep.subr.bf16.mxu0 %v12285_v0 }
 0x59f   : > { %10886 = vmatmul.mubr.bf16.vlgmr.msra.gmra.mrb[20].mxu0 %v12917_v24 }
 0x5a0   : > { %10905 = vmatprep.mubr.msk.bf16.mxu0 %vm12286_vm0, %v12285_v0 }
 0x612   : > { %v3606_v27 = vpop.f32.mrb[12].mxu0 }
 0x613   : > { %v11003_v28 = vadd.f32 %v3606_v27, %v12928_v25  ;;  %v3608_v29 = vpop.f32.mrb[13].mxu0  ;;  %v11633_v27 = vld [vmem:[%s12445_s20 + $0x118] sm:$0xff]  }
 0x614   : > { %v11004_v32 = vadd.f32 %v3608_v29, %v12931_v26  ;;  %v3610_v33 = vpop.f32.mrb[14].mxu0  ;;  %v11634_v29 = vld [vmem:[%s12445_s20 + $0x160] sm:$0xff]  }
 0x615   : > { %v3658_v34 = vmax.f32 %v11003_v28, 0.0  ;;  %v3611_v35 = vpop.f32.mrb[15].mxu0 }
 0x616   : > { %v3659_v36 = vmax.f32 %v11004_v32, 0.0  ;;  %v11636_v35 = vld [vmem:[%s12445_s20 + $0x170] sm:$0xff]  }
 0x617   : > { %v12938_v38 = vpack.c.bf16 %v3658_v34, %v3658_v34  ;;  %v11635_v34 = vld [vmem:[%s12445_s20 + $0x168] sm:$0xff]  }
 0x618   : > { %v12935_v37 = vpack.c.bf16 %v3659_v36, %v3659_v36  ;;  %v11637_v36 = vld [vmem:[%s12445_s20 + $0x178] sm:$0xff]  }
 0x619   : > { %v4032_v32 = vshrl.u32 %v12938_v38, 16 }
 0x61a   : > { %3926 = vmatprep.mubr.bf16.mxu1 %v12935_v37  ;;  %v4035_v5 = vshrl.u32 %v12935_v37, 16 }
 0x61b   : > { %3927 = vmatmul.mubr.bf16.vlgmr.msra.gmra.mrb[8].mxu1 %v12938_v38 }
 0x61c   : > { %3935 = vmatpush1.bf16.msra.mxu1 %v11606_v14  ;;  %v11638_v14 = vld [vmem:[%s12445_s20 + $0x180] sm:$0xff]  }
 0x61d   : > { %3936 = vmatprep.subr.bf16.mxu1 %v12287_v55 }
 0x620   : > { %3937 = vmatpush1.bf16.msra.mxu1 %v11607_v17  ;;  %v11639_v17 = vld [vmem:[%s12445_s20 + $0x188] sm:$0xff]  }
 0x621   : > { %3938 = vmatprep.subr.bf16.mxu1 %v12287_v55 }
 0x624   : > { %3939 = vmatpush1.bf16.msra.mxu1 %v11608_v39  ;;  %v11640_v39 = vld [vmem:[%s12445_s20 + $0x190] sm:$0xff]  }
 0x625   : > { %3940 = vmatprep.subr.bf16.mxu1 %v12287_v55 }
 0x628   : > { %3941 = vmatpush1.bf16.msra.mxu1 %v11609_v41  ;;  %v11641_v41 = vld [vmem:[%s12445_s20 + $0x198] sm:$0xff]  }
 0x629   : > { %3942 = vmatprep.subr.bf16.mxu1 %v12287_v55 }
 0x62c   : > { %3943 = vmatpush1.bf16.msra.mxu1 %v11610_v44  ;;  %v11642_v44 = vld [vmem:[%s12445_s20 + $0x1a0] sm:$0xff]  }
 0x62d   : > { %3944 = vmatprep.subr.bf16.mxu1 %v12287_v55 }
 0x630   : > { %3945 = vmatpush1.bf16.msra.mxu1 %v11611_v40  ;;  %v11643_v40 = vld [vmem:[%s12445_s20 + $0x1a8] sm:$0xff]  }
 0x631   : > { %3946 = vmatprep.subr.bf16.mxu1 %v12287_v55 }
 0x634   : > { %3947 = vmatpush1.bf16.msra.mxu1 %v11612_v43  ;;  %v11644_v43 = vld [vmem:[%s12445_s20 + $0x1b0] sm:$0xff]  }
 0x635   : > { %3948 = vmatprep.subr.bf16.mxu1 %v12287_v55 }
 0x638   : > { %3949 = vmatpush1.bf16.msra.mxu1 %v11613_v45  ;;  %v11645_v45 = vld [vmem:[%s12445_s20 + $0x1b8] sm:$0xff]  }
 0x639   : > { %3950 = vmatprep.subr.bf16.mxu1 %v12287_v55 }
 0x63c   : > { %3951 = vmatpush1.bf16.msra.mxu1 %v11614_v46  ;;  %v11646_v46 = vld [vmem:[%s12445_s20 + $0x200] sm:$0xff]  }
 0x63d   : > { %3952 = vmatprep.subr.bf16.mxu1 %v12287_v55 }
 0x640   : > { %3953 = vmatpush1.bf16.msra.mxu1 %v11615_v47  ;;  %v11647_v47 = vld [vmem:[%s12445_s20 + $0x1c0] sm:$0xff]  }
 0x641   : > { %3954 = vmatprep.subr.bf16.mxu1 %v12287_v55 }
 0x644   : > { %3955 = vmatpush1.bf16.msra.mxu1 %v11616_v48 }
 0x645   : > { %3956 = vmatprep.subr.bf16.mxu1 %v12287_v55 }
 0x648   : > { %3957 = vmatpush1.bf16.msra.mxu1 %v11617_v49  ;;  %v11648_v49 = vld [vmem:[%s12445_s20 + $0x208] sm:$0xff]  }
 0x649   : > { %10596 = vmatprep.subr.bf16.mxu1 %v11618_v50  ;;  %v4358_v50 = vrot.slane %v12935_v37, 1  ;;  %v11682_v37 = vld [vmem:[%s12445_s20 + $0x300] sm:$0xff]  }
 0x652   : > { %v3647_v57 = vpop.f32.mrb[16].mxu0 }
 0x653   : > { %v11005_v58 = vadd.f32 %v3647_v57, %v12967_v53  ;;  %v3649_v59 = vpop.f32.mrb[17].mxu0  ;;  %v11651_v57 = vld [vmem:[%s12445_s20 + $0x1d0] sm:$0xff]  }
 0x654   : > { %v11006_v60 = vadd.f32 %v3649_v59, %v12969_v54  ;;  %v3651_v61 = vpop.f32.mrb[18].mxu0  ;;  %v11653_v59 = vld [vmem:[%s12445_s20 + $0x1d8] sm:$0xff]  }
 0x655   : > { %v3660_v62 = vmax.f32 %v11005_v58, 0.0  ;;  %v3652_v63 = vpop.f32.mrb[19].mxu0  ;;  %v11652_v58 = vld [vmem:[%s12445_s20 + $0x218] sm:$0xff]   ;;  %v11655_v61 = vld [vmem:[%s12445_s20 + $0x1e0] sm:$0xff]  }
 0x656   : > { %v3661_v1 = vmax.f32 %v11006_v60, 0.0  ;;  %v11654_v60 = vld [vmem:[%s12445_s20 + $0x220] sm:$0xff]   ;;  %v11657_v63 = vld [vmem:[%s12445_s20 + $0x1e8] sm:$0xff]  }
 0x657   : > { %v12976_v3 = vpack.c.bf16 %v3660_v62, %v3660_v62  ;;  %v11656_v62 = vld [vmem:[%s12445_s20 + $0x228] sm:$0xff]  }
 0x658   : > { %v12973_v11 = vpack.c.bf16 %v3661_v1, %v3661_v1  ;;  %v11658_v1 = vld [vmem:[%s12445_s20 + $0x230] sm:$0xff]  }
 0x659   : > { %v4038_v48 = vshrl.u32 %v12976_v3, 16 }
 0x65a   : > { %9813 = vmatprep.mubr.msk.bf16.mxu1 %vm3890_vm8, %v12973_v11  ;;  %v4040_v33 = vshrl.u32 %v12973_v11, 16 }
 0x65b   : > { %3967 = vmatmul.mubr.bf16.vlgmr.msra.gmra.mrb[12].mxu1 %v12976_v3 }
 0x65c   : > { %10597 = vmatpush3.bf16.msra.mxu1 %v11619_v2  ;;  %4248 = vmatprep.mubr.bf16.mxu1 %v4035_v5  ;;  %v11659_v2 = vld [vmem:[%s12445_s20 + $0x1f0] sm:$0xff]  }
 0x65d   : > { %10598 = vmatprep.subr.bf16.mxu1 %v11620_v4  ;;  %v11660_v4 = vld [vmem:[%s12445_s20 + $0x238] sm:$0xff]  }
 0x660   : > { %10599 = vmatpush3.bf16.msra.mxu1 %v11621_v6  ;;  %v11661_v6 = vld [vmem:[%s12445_s20 + $0x1f8] sm:$0xff]  }
 0x661   : > { %10600 = vmatprep.subr.bf16.mxu1 %v11622_v7  ;;  %v11662_v7 = vld [vmem:[%s12445_s20 + $0x240] sm:$0xff]  }
 0x664   : > { %10601 = vmatpush3.bf16.msra.mxu1 %v11623_v8  ;;  %v4357_v8 = vrot.slane %v12938_v38, 1  ;;  %v11693_v38 = vld [vmem:[%s12445_s20 + $0x338] sm:$0xff]  }
 0x665   : > { %10602 = vmatprep.subr.bf16.mxu1 %v11624_v42  ;;  %v4360_v42 = vrot.slane %v12973_v11, 1  ;;  %v11694_v11 = vld [vmem:[%s12445_s20 + $0x340] sm:$0xff]  }
 0x668   : > { %10603 = vmatpush3.bf16.msra.mxu1 %v11625_v9  ;;  %v11663_v9 = vld [vmem:[%s12445_s20 + $0x248] sm:$0xff]  }
 0x669   : > { %10604 = vmatprep.subr.bf16.mxu1 %v11626_v10  ;;  %v11664_v10 = vld [vmem:[%s12445_s20 + $0x250] sm:$0xff]  }
 0x66c   : > { %10605 = vmatpush3.bf16.msra.mxu1 %v11627_v12  ;;  %v11665_v12 = vld [vmem:[%s12445_s20 + $0x258] sm:$0xff]  }
 0x66d   : > { %10606 = vmatprep.subr.bf16.mxu1 %v11628_v13  ;;  %v11666_v13 = vld [vmem:[%s12445_s20 + $0x260] sm:$0xff]  }
 0x670   : > { %10607 = vmatpush3.bf16.msra.mxu1 %v11629_v15  ;;  %v11667_v15 = vld [vmem:[%s12445_s20 + $0x268] sm:$0xff]  }
 0x671   : > { %10608 = vmatprep.subr.bf16.mxu1 %v11630_v16  ;;  %v11668_v16 = vld [vmem:[%s12445_s20 + $0x270] sm:$0xff]  }
 0x672   : > { %v12997_v22 = vpop.f32.mrb[20].mxu0 }
 0x673   : > { %v10887_v23 = vpop.f32.mrb[21].mxu0 }
 0x674   : > { %10609 = vmatpush3.bf16.msra.mxu1 %v11631_v18  ;;  %v5019_v56 = vpop.f32.mrb[22].mxu0  ;;  %v11669_v18 = vld [vmem:[%s12445_s20 + $0x278] sm:$0xff]   ;;  %v11671_v23 = vld [vmem:[%s12445_s20 + $0x288] sm:$0xff]  }
 0x675   : > { %v10888_v28 = vpop.f32.mrb[23].mxu0  ;;  %10610 = vmatprep.subr.bf16.mxu1 %v11632_v20  ;;  %v11670_v20 = vld [vmem:[%s12445_s20 + $0x280] sm:$0xff]  }
 0x678   : > { %10611 = vmatpush3.bf16.msra.mxu1 %v11633_v27 }
 0x679   : > { %4256 = vmatprep.subr.bf16.mxu1 %v12287_v55 }
 0x67b   : > { %4249 = vmatmul.mubr.bf16.vlgmr.msra.gmra.mrb[16].mxu1 %v4032_v32 }
 0x67c   : > { %4257 = vmatpush1.bf16.msra.mxu1 %v11634_v29  ;;  %9842 = vmatprep.mubr.msk.bf16.mxu1 %vm3890_vm8, %v4040_v33 }
 0x67d   : > { %4258 = vmatprep.subr.bf16.mxu1 %v12287_v55 }
 0x680   : > { %4259 = vmatpush1.bf16.msra.mxu1 %v11635_v34  ;;  %v11672_v34 = vld [vmem:[%s12445_s20 + $0x290] sm:$0xff]  }
 0x681   : > { %4260 = vmatprep.subr.bf16.mxu1 %v12287_v55 }
 0x684   : > { %4261 = vmatpush1.bf16.msra.mxu1 %v11636_v35 }
 0x685   : > { %4262 = vmatprep.subr.bf16.mxu1 %v12287_v55 }
 0x688   : > { %4263 = vmatpush1.bf16.msra.mxu1 %v11637_v36  ;;  %v11673_v36 = vld [vmem:[%s12445_s20 + $0x298] sm:$0xff]  }
 0x689   : > { %4264 = vmatprep.subr.bf16.mxu1 %v12287_v55 }
 0x68c   : > { %4265 = vmatpush1.bf16.msra.mxu1 %v11638_v14  ;;  %v11674_v14 = vld [vmem:[%s12445_s20 + $0x2e0] sm:$0xff]  }
 0x68d   : > { %4266 = vmatprep.subr.bf16.mxu1 %v12287_v55 }
 0x690   : > { %4267 = vmatpush1.bf16.msra.mxu1 %v11639_v17  ;;  %v11675_v17 = vld [vmem:[%s12445_s20 + $0x2a0] sm:$0xff]  }
 0x691   : > { %4268 = vmatprep.subr.bf16.mxu1 %v12287_v55 }
 0x694   : > { %4269 = vmatpush1.bf16.msra.mxu1 %v11640_v39  ;;  %v4359_v39 = vrot.slane %v12976_v3, 1 }
 0x695   : > { %4270 = vmatprep.subr.bf16.mxu1 %v12287_v55 }
 0x698   : > { %4271 = vmatpush1.bf16.msra.mxu1 %v11641_v41  ;;  %v11676_v41 = vld [vmem:[%s12445_s20 + $0x2e8] sm:$0xff]  }
 0x699   : > { %4272 = vmatprep.subr.bf16.mxu1 %v12287_v55 }
 0x69c   : > { %4273 = vmatpush1.bf16.msra.mxu1 %v11642_v44  ;;  %v4673_v44 = vrot.slane %v4035_v5, 1  ;;  %v11683_v5 = vld [vmem:[%s12445_s20 + $0x2c0] sm:$0xff]  }
 0x69d   : > { %4274 = vmatprep.subr.bf16.mxu1 %v12287_v55 }
 0x6a0   : > { %4275 = vmatpush1.bf16.msra.mxu1 %v11643_v40  ;;  %v11677_v40 = vld [vmem:[%s12445_s20 + $0x2a8] sm:$0xff]  }
 0x6a1   : > { %4276 = vmatprep.subr.bf16.mxu1 %v12287_v55 }
 0x6a4   : > { %4277 = vmatpush1.bf16.msra.mxu1 %v11644_v43  ;;  %v11678_v43 = vld [vmem:[%s12445_s20 + $0x2f0] sm:$0xff]  }
 0x6a5   : > { %4278 = vmatprep.subr.bf16.mxu1 %v12287_v55 }
 0x6a8   : > { %4279 = vmatpush1.bf16.msra.mxu1 %v11645_v45  ;;  %v11679_v45 = vld [vmem:[%s12445_s20 + $0x2b0] sm:$0xff]  }
 0x6a9   : > { %10618 = vmatprep.subr.bf16.mxu1 %v11646_v46  ;;  %v11680_v46 = vld [vmem:[%s12445_s20 + $0x2f8] sm:$0xff]  }
 0x6ab   : > { %4289 = vmatmul.mubr.bf16.vlgmr.msra.gmra.mrb[12].mxu1 %v4038_v48 }
 0x6ac   : > { %10619 = vmatpush3.bf16.msra.mxu1 %v11647_v47  ;;  %4567 = vmatprep.mubr.bf16.mxu1 %v4358_v50  ;;  %v11681_v47 = vld [vmem:[%s12445_s20 + $0x2b8] sm:$0xff]   ;;  %v11685_v50 = vld [vmem:[%s12445_s20 + $0x2c8] sm:$0xff]  }
 0x6ad   : > { %10620 = vmatprep.subr.bf16.mxu1 %v11648_v49  ;;  %v11684_v49 = vld [vmem:[%s12445_s20 + $0x308] sm:$0xff]  }
 0x6b0   : > { %10621 = vmatpush3.bf16.msra.mxu1 %v11649_v51  ;;  %v11686_v51 = vld [vmem:[%s12445_s20 + $0x310] sm:$0xff]  }
 0x6b1   : > { %10622 = vmatprep.subr.bf16.mxu1 %v11650_v52  ;;  %v11687_v52 = vld [vmem:[%s12445_s20 + $0x2d0] sm:$0xff]  }
 0x6b4   : > { %10623 = vmatpush3.bf16.msra.mxu1 %v11651_v57  ;;  %v11688_v57 = vld [vmem:[%s12445_s20 + $0x318] sm:$0xff]  }
 0x6b5   : > { %10624 = vmatprep.subr.bf16.mxu1 %v11652_v58  ;;  %v11689_v58 = vld [vmem:[%s12445_s20 + $0x2d8] sm:$0xff]  }
 0x6b8   : > { %10625 = vmatpush3.bf16.msra.mxu1 %v11653_v59  ;;  %v11690_v59 = vld [vmem:[%s12445_s20 + $0x320] sm:$0xff]  }
 0x6b9   : > { %10626 = vmatprep.subr.bf16.mxu1 %v11654_v60  ;;  %v4672_v60 = vrot.slane %v4032_v32, 1  ;;  %v11695_v32 = vld [vmem:[%s12445_s20 + $0x348] sm:$0xff]  }
 0x6bc   : > { %10627 = vmatpush3.bf16.msra.mxu1 %v11655_v61  ;;  %v4675_v61 = vrot.slane %v4040_v33, 1  ;;  %v11696_v33 = vld [vmem:[%s12445_s20 + $0x350] sm:$0xff]  }
 0x6bd   : > { %10628 = vmatprep.subr.bf16.mxu1 %v11656_v62  ;;  %v11691_v62 = vld [vmem:[%s12445_s20 + $0x328] sm:$0xff]  }
 0x6c0   : > { %10629 = vmatpush3.bf16.msra.mxu1 %v11657_v63  ;;  %v11692_v63 = vld [vmem:[%s12445_s20 + $0x330] sm:$0xff]  }
 0x6c1   : > { %10630 = vmatprep.subr.bf16.mxu1 %v11658_v1  ;;  %v11697_v1 = vld [vmem:[%s12445_s20 + $0x358] sm:$0xff]  }
 0x6c4   : > { %10631 = vmatpush3.bf16.msra.mxu1 %v11659_v2  ;;  %v11698_v2 = vld [vmem:[%s12445_s20 + $0x360] sm:$0xff]  }
 0x6c5   : > { %10632 = vmatprep.subr.bf16.mxu1 %v11660_v4  ;;  %v11699_v4 = vld [vmem:[%s12445_s20 + $0x368] sm:$0xff]  }
 0x6c8   : > { %10633 = vmatpush3.bf16.msra.mxu1 %v11661_v6  ;;  %v11700_v6 = vld [vmem:[%s12445_s20 + $0x370] sm:$0xff]  }
 0x6c9   : > { %4575 = vmatprep.subr.bf16.mxu1 %v12287_v55 }
 0x6cb   : > { %4568 = vmatmul.mubr.bf16.vlgmr.msra.gmra.mrb[20].mxu1 %v4357_v8  ;;  %v11702_v8 = vld [vmem:[%s12410_s26] sm:$0xff]  }
 0x6cc   : > { %4576 = vmatpush1.bf16.msra.mxu1 %v11662_v7  ;;  %9871 = vmatprep.mubr.msk.bf16.mxu1 %vm3890_vm8, %v4360_v42  ;;  %v11701_v7 = vld [vmem:[%s12445_s20 + $0x378] sm:$0xff]   ;;  %v4674_v42 = vrot.slane %v4038_v48, 1 }
 0x6cd   : > { %4577 = vmatprep.subr.bf16.mxu1 %v12287_v55 }
 0x6d0   : > { %4578 = vmatpush1.bf16.msra.mxu1 %v11663_v9  ;;  %v11703_v9 = vld [vmem:[%s12410_s26 + $0x8] sm:$0xff]  }
 0x6d1   : > { %4579 = vmatprep.subr.bf16.mxu1 %v12287_v55 }
 0x6d4   : > { %4580 = vmatpush1.bf16.msra.mxu1 %v11664_v10  ;;  %v1021_v10 = vld [vmem:[%s13136_s28] sm:$0x1] }
 0x6d5   : > { %4581 = vmatprep.subr.bf16.mxu1 %v12287_v55 }
 0x6d8   : > { %4582 = vmatpush1.bf16.msra.mxu1 %v11665_v12 }
 0x6d9   : > { %4583 = vmatprep.subr.bf16.mxu1 %v12287_v55 }
 0x6dc   : > { %4584 = vmatpush1.bf16.msra.mxu1 %v11666_v13 }
 0x6dd   : > { %4585 = vmatprep.subr.bf16.mxu1 %v12287_v55 }
 0x6e0   : > { %4586 = vmatpush1.bf16.msra.mxu1 %v11667_v15 }
 0x6e1   : > { %4587 = vmatprep.subr.bf16.mxu1 %v12287_v55 }
 0x6e4   : > { %4588 = vmatpush1.bf16.msra.mxu1 %v11668_v16  ;;  %v11704_v16 = vld [vmem:[%s12410_s26 + $0x10] sm:$0xff]  }
 0x6e5   : > { %4589 = vmatprep.subr.bf16.mxu1 %v12287_v55 }
 0x6e8   : > { %4590 = vmatpush1.bf16.msra.mxu1 %v11669_v18 }
 0x6e9   : > { %4591 = vmatprep.subr.bf16.mxu1 %v12287_v55 }
 0x6ec   : > { %4592 = vmatpush1.bf16.msra.mxu1 %v11670_v20 }
 0x6ed   : > { %4593 = vmatprep.subr.bf16.mxu1 %v12287_v55 }
 0x6ee   : > { %v10590_v56 = vpop.f32.mrb[8].mxu1 }
 0x6ef   : > { %v10591_v27 = vpop.f32.mrb[9].mxu1 }
 0x6f0   : > { %v13074_v28 = vadd.f32 %v10591_v27, %v10590_v56  ;;  %4594 = vmatpush1.bf16.msra.mxu1 %v11671_v23  ;;  %v10593_v29 = vpop.f32.mrb[10].mxu1  ;;  %v11705_v23 = vld [vmem:[%s12410_s26 + $0x18] sm:$0xff]   ;;  %v11706_v56 = vld [vmem:[%s12410_s26 + $0x20] sm:$0xff]   ;;  %v11707_v27 = vld [vmem:[%s12410_s26 + $0x28] ss:$0 sps:$4 sm:$0xff]  }
 0x6f1   : > { %v10594_v35 = vpop.f32.mrb[11].mxu1  ;;  %4595 = vmatprep.subr.bf16.mxu1 %v12287_v55  ;;  %v5114_v29 = vld [vmem:[%s13853_s24 + $0x14] sm:$0xf] }
 0x6f2   : > { %v11007_v12 = vadd.f32 %v13074_v28, %v1021_v10  ;;  %v5113_v28 = vld [vmem:[%s13853_s24 + $0xc] sm:$0xff] }
 0x6f3   : > { %v13161_v35 = vpack.c.bf16 %v5114_v29, %v5113_v28  ;;  %v11733_v28 = vld [vmem:[%s12418_s18 + $0x14] ss:$8 sps:$4 sm:$0xff]   ;;  %v11731_v29 = vld [vmem:[%s12418_s18 + $0x10] ss:$8 sps:$4 sm:$0xff]  }
 0x6f4   : > { %4596 = vmatpush1.bf16.msra.mxu1 %v11672_v34  ;;  %v5164_v34 = vsel %vm1106_vm4, %v11707_v27, 0 }
 0x6f5   : > { %4597 = vmatprep.subr.bf16.mxu1 %v12287_v55 }
 0x6f8   : > { %4598 = vmatpush1.bf16.msra.mxu1 %v11673_v36  ;;  %v11708_v36 = vld [vmem:[%s12410_s26 + $0x2c] sm:$0xff]  }
 0x6f9   : > { %10640 = vmatprep.subr.bf16.mxu1 %v11674_v14  ;;  %v11709_v14 = vld [vmem:[%s12410_s26 + $0x34] sm:$0xff]  }
 0x6fb   : > { %4608 = vmatmul.mubr.bf16.vlgmr.msra.gmra.mrb[12].mxu1 %v4359_v39  ;;  %v11711_v39 = vld [vmem:[%s12410_s26 + $0x44] sm:$0xff]  }
 0x6fc   : > { %10641 = vmatpush3.bf16.msra.mxu1 %v11675_v17  ;;  %4882 = vmatprep.mubr.bf16.mxu1 %v4673_v44  ;;  %v11710_v17 = vld [vmem:[%s12410_s26 + $0x3c] sm:$0xff]   ;;  %v11712_v44 = vld [vmem:[%s12410_s26 + $0x4c] sm:$0xff]  }
 0x6fd   : > { %10642 = vmatprep.subr.bf16.mxu1 %v11676_v41  ;;  %v5222_v41 = vshll.u32 %v13161_v35, 16 }
 0x700   : > { %10643 = vmatpush3.bf16.msra.mxu1 %v11677_v40  ;;  %v11713_v40 = vld [vmem:[%s12410_s26 + $0x54] ss:$0 sps:$4 sm:$0xff]  }
 0x701   : > { %10644 = vmatprep.subr.bf16.mxu1 %v11678_v43  ;;  %v11720_v43 = vld [vmem:[%s13184_s0] sm:$0xff]  }
 0x702   : > { %10890 = vmatpush3.bf16.msra.mxu0 %v11720_v43 }
 0x703   : > { %10891 = vmatprep.subr.bf16.mxu0 %v12285_v0 }
 0x704   : > { %10645 = vmatpush3.bf16.msra.mxu1 %v11679_v45  ;;  %v5220_v45 = vshrl.u32 %v13161_v35, 16 }
 0x705   : > { %10646 = vmatprep.subr.bf16.mxu1 %v11680_v46  ;;  %v5224_v46 = vrot.slane %v5222_v41, 1  ;;  %v11745_v41 = vld [vmem:[%s12418_s18 + $0x54] ss:$8 sps:$4 sm:$0xff]  }
 0x708   : > { %10647 = vmatpush3.bf16.msra.mxu1 %v11681_v47  ;;  %v11721_v47 = vld [vmem:[%s13184_s0 + $0x8] sm:$0xff]  }
 0x709   : > { %10648 = vmatprep.subr.bf16.mxu1 %v11682_v37  ;;  %v5263_v37 = vsel %vm1106_vm4, %v11713_v40, 0  ;;  %10892 = vmatpush3.bf16.msra.mxu0 %v11721_v47  ;;  %v12258_v40 = vld [vmem:[%s12522_s22] ss:$0 sm:$0xff]  ;;  %s13855_s22 = sld [smem:[#allocation7_spill]] }
 0x70a   : > { %10893 = vmatprep.subr.bf16.mxu0 %v12285_v0 }
 0x70c   : > { %10649 = vmatpush3.bf16.msra.mxu1 %v11683_v5  ;;  %v5225_v5 = vor.u32 %v5224_v46, %v5220_v45 }
 0x70d   : > { %10650 = vmatprep.subr.bf16.mxu1 %v11684_v49  ;;  %v11714_v49 = vld [vmem:[%s12410_s26 + $0x58] sm:$0xff]  }
 0x70f   : > { %s13288_s29 = scalar_lea.vmem %s13855_s22, %s13859_s30 }
 0x710   : > { %10651 = vmatpush3.bf16.msra.mxu1 %v11685_v50  ;;  %v11722_v50 = vld [vmem:[%s13184_s0 + $0x10] sm:$0xff]  }
 0x711   : > { %10652 = vmatprep.subr.bf16.mxu1 %v11686_v51  ;;  %v11715_v51 = vld [vmem:[%s12410_s26 + $0x60] sm:$0xff]   ;;  %10894 = vmatpush3.bf16.msra.mxu0 %v11722_v50 }
 0x712   : > { %10895 = vmatprep.subr.bf16.mxu0 %v12285_v0 }
 0x714   : > { %10653 = vmatpush3.bf16.msra.mxu1 %v11687_v52  ;;  %v11723_v52 = vld [vmem:[%s13184_s0 + $0x18] sm:$0xff]  }
 0x715   : > { %10654 = vmatprep.subr.bf16.mxu1 %v11688_v57  ;;  %v11716_v57 = vld [vmem:[%s12410_s26 + $0x68] sm:$0xff]   ;;  %10896 = vmatpush3.bf16.msra.mxu0 %v11723_v52 }
 0x716   : > { %10897 = vmatprep.subr.bf16.mxu0 %v12285_v0  ;;  %v11748_v52 = vld [vmem:[%s12418_s18 + $0x64] ss:$8 sps:$4 sm:$0xff]  }
 0x718   : > { %10655 = vmatpush3.bf16.msra.mxu1 %v11689_v58  ;;  %v11724_v58 = vld [vmem:[%s13184_s0 + $0x20] sm:$0xff]  }
 0x719   : > { %4890 = vmatprep.subr.bf16.mxu1 %v12287_v55  ;;  %10898 = vmatpush3.bf16.msra.mxu0 %v11724_v58  ;;  %v11746_v58 = vld [vmem:[%s12418_s18 + $0x60] ss:$8 sps:$4 sm:$0xff]  }
 0x71a   : > { %10899 = vmatprep.subr.bf16.mxu0 %v12285_v0 }
 0x71b   : > { %4883 = vmatmul.mubr.bf16.vlgmr.msra.gmra.mrb[24].mxu1 %v4672_v60  ;;  %v11725_v60 = vld [vmem:[%s13184_s0 + $0x28] sm:$0xff]  }
 0x71c   : > { %4891 = vmatpush1.bf16.msra.mxu1 %v11690_v59  ;;  %9900 = vmatprep.mubr.msk.bf16.mxu1 %vm3890_vm8, %v4675_v61  ;;  %v11717_v59 = vld [vmem:[%s12410_s26 + $0x70] sm:$0xff]   ;;  %v11718_v61 = vld [vmem:[%s12410_s26 + $0x78] sm:$0xff]  }
 0x71d   : > { %4892 = vmatprep.subr.bf16.mxu1 %v12287_v55  ;;  %10900 = vmatpush3.bf16.msra.mxu0 %v11725_v60  ;;  %v11749_v60 = vld [vmem:[%s12418_s18 + $0x70] ss:$8 sps:$4 sm:$0xff]  }
 0x71e   : > { %10901 = vmatprep.subr.bf16.mxu0 %v12285_v0 }
 0x720   : > { %4893 = vmatpush1.bf16.msra.mxu1 %v11691_v62  ;;  %v11719_v62 = vld [vmem:[%s12410_s26 + $0x80] ss:$0 sps:$4 sm:$0xff]  }
 0x721   : > { %4894 = vmatprep.subr.bf16.mxu1 %v12287_v55 }
 0x724   : > { %4895 = vmatpush1.bf16.msra.mxu1 %v11692_v63  ;;  %v5358_v63 = vsel %vm1106_vm4, %v11719_v62, 0  ;;  %v11752_v62 = vld [vmem:[%s12418_s18 + $0x80] ss:$8 sps:$4 sm:$0xff]  }
 0x725   : > { %4896 = vmatprep.subr.bf16.mxu1 %v12287_v55 }
 0x728   : > { %4897 = vmatpush1.bf16.msra.mxu1 %v11693_v38  ;;  %v5320_v38 = vrot.slane %v13161_v35, 1 }
 0x729   : > { %4898 = vmatprep.subr.bf16.mxu1 %v12287_v55 }
 0x72c   : > { %4899 = vmatpush1.bf16.msra.mxu1 %v11694_v11  ;;  %v11726_v11 = vld [vmem:[%s13184_s0 + $0x30] sm:$0xff]  }
 0x72d   : > { %4900 = vmatprep.subr.bf16.mxu1 %v12287_v55  ;;  %10902 = vmatpush3.bf16.msra.mxu0 %v11726_v11  ;;  %v11755_v11 = vld [vmem:[%s12418_s18 + $0x90] ss:$8 sps:$4 sm:$0xff]  }
 0x72e   : > { %10903 = vmatprep.subr.bf16.mxu0 %v12285_v0 }
 0x730   : > { %4901 = vmatpush1.bf16.msra.mxu1 %v11695_v32 }
 0x731   : > { %4902 = vmatprep.subr.bf16.mxu1 %v12287_v55 }
 0x734   : > { %4903 = vmatpush1.bf16.msra.mxu1 %v11696_v33 }
 0x735   : > { %4904 = vmatprep.subr.bf16.mxu1 %v12287_v55 }
 0x738   : > { %4905 = vmatpush1.bf16.msra.mxu1 %v11697_v1 }
 0x739   : > { %4906 = vmatprep.subr.bf16.mxu1 %v12287_v55 }
 0x73c   : > { %4907 = vmatpush1.bf16.msra.mxu1 %v11698_v2 }
 0x73d   : > { %4908 = vmatprep.subr.bf16.mxu1 %v12287_v55 }
 0x740   : > { %4909 = vmatpush1.bf16.msra.mxu1 %v11699_v4  ;;  %v11727_v4 = vld [vmem:[%s13184_s0 + $0x38] sm:$0xff]  }
 0x741   : > { %4910 = vmatprep.subr.bf16.mxu1 %v12287_v55  ;;  %10904 = vmatpush3.bf16.msra.mxu0 %v11727_v4 }
 0x744   : > { %4911 = vmatpush1.bf16.msra.mxu1 %v11700_v6 }
 0x745   : > { %4912 = vmatprep.subr.bf16.mxu1 %v12287_v55 }
 0x748   : > { %4913 = vmatpush1.bf16.msra.mxu1 %v11701_v7 }
 0x749   : > { %10909 = vmatprep.subr.bf16.mxu1 %v12285_v0 }
 0x74b   : > { %4923 = vmatmul.mubr.bf16.vlgmr.msra.gmra.mrb[12].mxu1 %v4674_v42 }
 0x74c   : > { %10910 = vmatpush3.bf16.msra.mxu1 %v11702_v8  ;;  %10921 = vmatprep.mubr.msk.bf16.mxu1 %vm12286_vm0, %v12285_v0  ;;  %v11730_v8 = vld [vmem:[%s12418_s18 + $0x4] ss:$8 sps:$4 sm:$0xff]  }
 0x74d   : > { %10911 = vmatprep.subr.bf16.mxu1 %v12285_v0  ;;  %5469 = vmatprep.subr.bf16.mxu0 %v11730_v8  ;;  %v11766_v8 = vld [vmem:[%s12418_s18 + $0xc4] ss:$8 sps:$4 sm:$0xff]  }
 0x74e   : > { %v10612_v3 = vpop.f32.mrb[16].mxu1 }
 0x74f   : > { %v10613_v48 = vpop.f32.mrb[17].mxu1 }
 0x750   : > { %v10614_v13 = vadd.f32 %v10613_v48, %v10612_v3  ;;  %v10615_v15 = vpop.f32.mrb[18].mxu1  ;;  %10912 = vmatpush3.bf16.msra.mxu1 %v11703_v9 }
 0x751   : > { %v10616_v18 = vpop.f32.mrb[19].mxu1  ;;  %10913 = vmatprep.subr.bf16.mxu1 %v12285_v0 }
 0x752   : > { %v13146_v20 = vadd.f32 %v11007_v12, %v10614_v13 }
 0x754   : > { %10914 = vmatpush3.bf16.msra.mxu1 %v11704_v16 }
 0x755   : > { %10915 = vmatprep.subr.bf16.mxu1 %v12285_v0 }
 0x758   : > { %10916 = vmatpush3.bf16.msra.mxu1 %v11705_v23 }
 0x759   : > { %10917 = vmatprep.subr.bf16.mxu1 %v12285_v0 }
 0x75c   : > { %10918 = vmatpush3.bf16.msra.mxu1 %v11706_v56  ;;  %v11728_v56 = vld [vmem:[%s12418_s18] ss:$8 sps:$4 sm:$0xff]  }
 0x75d   : > { %10919 = vmatprep.subr.bf16.mxu1 %v12285_v0 }
 0x760   : > { %10920 = vmatpush3.bf16.msra.mxu1 %v5164_v34  ;;  %v11736_v34 = vld [vmem:[%s12418_s18 + $0x24] ss:$8 sps:$4 sm:$0xff]  }
 0x761   : > { %10925 = vmatprep.subr.bf16.mxu1 %v12285_v0 }
 0x763   : > { %10922 = vmatmul.mubr.msk.bf16.vlgmr.msra.gmra.mrb[28].mxu1 %vm1102_vm5, %v13161_v35  ;;  %v11734_v35 = vld [vmem:[%s12418_s18 + $0x20] ss:$8 sps:$4 sm:$0xff]  }
 0x764   : > { %10926 = vmatpush3.bf16.msra.mxu1 %v11708_v36  ;;  %10937 = vmatprep.mubr.msk.bf16.mxu1 %vm12286_vm0, %v12285_v0  ;;  %v11739_v36 = vld [vmem:[%s12418_s18 + $0x34] ss:$8 sps:$4 sm:$0xff]  }
 0x765   : > { %10927 = vmatprep.subr.bf16.mxu1 %v12285_v0 }
 0x768   : > { %10928 = vmatpush3.bf16.msra.mxu1 %v11709_v14  ;;  %v11737_v14 = vld [vmem:[%s12418_s18 + $0x30] ss:$8 sps:$4 sm:$0xff]  }
 0x769   : > { %10929 = vmatprep.subr.bf16.mxu1 %v12285_v0 }
 0x76c   : > { %10930 = vmatpush3.bf16.msra.mxu1 %v11710_v17  ;;  %v11742_v17 = vld [vmem:[%s12418_s18 + $0x44] ss:$8 sps:$4 sm:$0xff]  }
 0x76d   : > { %10931 = vmatprep.subr.bf16.mxu1 %v12285_v0 }
 0x770   : > { %10932 = vmatpush3.bf16.msra.mxu1 %v11711_v39  ;;  %v11740_v39 = vld [vmem:[%s12418_s18 + $0x40] ss:$8 sps:$4 sm:$0xff]  }
 0x771   : > { %10933 = vmatprep.subr.bf16.mxu1 %v12285_v0 }
 0x774   : > { %10934 = vmatpush3.bf16.msra.mxu1 %v11712_v44 }
 0x775   : > { %10935 = vmatprep.subr.bf16.mxu1 %v12285_v0 }
 0x778   : > { %10936 = vmatpush3.bf16.msra.mxu1 %v5263_v37 }
 0x779   : > { %10941 = vmatprep.subr.bf16.mxu1 %v12285_v0 }
 0x77b   : > { %10938 = vmatmul.mubr.msk.bf16.vlgmr.msra.gmra.mrb[28].mxu1 %vm1102_vm5, %v5225_v5 }
 0x77c   : > { %10942 = vmatpush3.bf16.msra.mxu1 %v11714_v49  ;;  %10953 = vmatprep.mubr.msk.bf16.mxu1 %vm12286_vm0, %v12285_v0  ;;  %v11743_v49 = vld [vmem:[%s12418_s18 + $0x50] ss:$8 sps:$4 sm:$0xff]  }
 0x77d   : > { %10943 = vmatprep.subr.bf16.mxu1 %v12285_v0 }
 0x780   : > { %10944 = vmatpush3.bf16.msra.mxu1 %v11715_v51 }
 0x781   : > { %10945 = vmatprep.subr.bf16.mxu1 %v12285_v0 }
 0x784   : > { %10946 = vmatpush3.bf16.msra.mxu1 %v11716_v57 }
 0x785   : > { %10947 = vmatprep.subr.bf16.mxu1 %v12285_v0 }
 0x788   : > { %10948 = vmatpush3.bf16.msra.mxu1 %v11717_v59  ;;  %v11751_v59 = vld [vmem:[%s12418_s18 + $0x74] ss:$8 sps:$4 sm:$0xff]  }
 0x789   : > { %10949 = vmatprep.subr.bf16.mxu1 %v12285_v0 }
 0x78c   : > { %10950 = vmatpush3.bf16.msra.mxu1 %v11718_v61  ;;  %v11754_v61 = vld [vmem:[%s12418_s18 + $0x84] ss:$8 sps:$4 sm:$0xff]  }
 0x78d   : > { %10951 = vmatprep.subr.bf16.mxu1 %v12285_v0 }
 0x790   : > { %10952 = vmatpush3.bf16.msra.mxu1 %v5358_v63 }
 0x793   : > { %10954 = vmatmul.mubr.msk.bf16.vlgmr.msra.gmra.mrb[28].mxu1 %vm1102_vm5, %v5320_v38  ;;  %v11757_v38 = vld [vmem:[%s12418_s18 + $0x94] ss:$8 sps:$4 sm:$0xff]  }
 0x79e   : > { %v10634_v32 = vpop.f32.mrb[20].mxu1 }
 0x79f   : > { %v10635_v33 = vpop.f32.mrb[21].mxu1 }
 0x7a0   : > { %v10636_v1 = vadd.f32 %v10635_v33, %v10634_v32  ;;  %v10637_v2 = vpop.f32.mrb[22].mxu1  ;;  %v11760_v33 = vld [vmem:[%s12418_s18 + $0xa4] ss:$8 sps:$4 sm:$0xff]  }
 0x7a1   : > { %v10638_v6 = vpop.f32.mrb[23].mxu1  ;;  %v11758_v2 = vld [vmem:[%s12418_s18 + $0xa0] ss:$8 sps:$4 sm:$0xff]  }
 0x7a2   : > { %v11009_v7 = vadd.f32 %v13146_v20, %v10636_v1  ;;  %v11763_v6 = vld [vmem:[%s12418_s18 + $0xb4] ss:$8 sps:$4 sm:$0xff]  }
 0x7ee   : > { %v10656_v42 = vpop.f32.mrb[24].mxu1 }
 0x7ef   : > { %v10657_v9 = vpop.f32.mrb[25].mxu1 }
 0x7f0   : > { %v10658_v10 = vadd.f32 %v10657_v9, %v10656_v42  ;;  %v10659_v3 = vpop.f32.mrb[26].mxu1  ;;  %v11764_v42 = vld [vmem:[%s12418_s18 + $0xc0] ss:$8 sps:$4 sm:$0xff]   ;;  %v11769_v9 = vld [vmem:[%s12418_s18 + $0xd4] ss:$8 sps:$4 sm:$0xff]  }
 0x7f1   : > { %v10660_v48 = vpop.f32.mrb[27].mxu1  ;;  %v11775_v3 = vld [vmem:[%s12432_s23 + $0x4] ss:$8 sps:$4 sm:$0xff]  }
 0x7f2   : > { %v11010_v12 = vadd.f32 %v11009_v7, %v10658_v10  ;;  %v11761_v7 = vld [vmem:[%s12418_s18 + $0xb0] ss:$8 sps:$4 sm:$0xff]   ;;  %v11773_v10 = vld [vmem:[%s12432_s23] ss:$8 sps:$4 sm:$0xff]   ;;  %v11778_v48 = vld [vmem:[%s12432_s23 + $0x14] ss:$8 sps:$4 sm:$0xff]   ;;  %5849 = vmatprep.subr.bf16.mxu1 %v11775_v3 }
 0x7f3   : > { %5850 = vmatpush1.bf16.msra.mxu1 %v11773_v10  ;;  %v11889_v10 = vld [vmem:[%s12438_s27 + $0x164] ss:$16 sps:$4 sm:$0xff]   ;;  %v11887_v3 = vld [vmem:[%s12438_s27 + $0x160] ss:$16 sps:$4 sm:$0xff]  }
 0x7f4   : > { %5851 = vmatprep.subr.bf16.mxu1 %v11778_v48  ;;  %v11892_v48 = vld [vmem:[%s12438_s27 + $0x184] ss:$16 sps:$4 sm:$0xff]  }
 0x81e   : > { %v4924_v13 = vpop.f32.mrb[12].mxu1 }
 0x81f   : > { %v11011_v15 = vadd.f32 %v11010_v12, %v4924_v13  ;;  %v4926_v16 = vpop.f32.mrb[13].mxu1  ;;  %v11767_v12 = vld [vmem:[%s12418_s18 + $0xd0] ss:$8 sps:$4 sm:$0xff]   ;;  %v11772_v13 = vld [vmem:[%s12418_s18 + $0xe4] ss:$8 sps:$4 sm:$0xff]  }
 0x820   : > { %v4927_v18 = vpop.f32.mrb[14].mxu1  ;;  %v11781_v16 = vld [vmem:[%s12432_s23 + $0x24] ss:$8 sps:$4 sm:$0xff]  }
 0x821   : > { %v4931_v20 = vmax.f32 %v11011_v15, 0.0  ;;  %v4928_v23 = vpop.f32.mrb[15].mxu1  ;;  %v11776_v15 = vld [vmem:[%s12432_s23 + $0x10] ss:$8 sps:$4 sm:$0xff]   ;;  %v11770_v18 = vld [vmem:[%s12418_s18 + $0xe0] ss:$8 sps:$4 sm:$0xff]  }
 0x822   : > { %5852 = vmatpush1.bf16.msra.mxu1 %v11776_v15  ;;  %v11784_v23 = vld [vmem:[%s12432_s23 + $0x34] ss:$8 sps:$4 sm:$0xff]  }
 0x823   : > { %v4932_v27 = vpack.c.bf16 %v4931_v20, %v4931_v20  ;;  %v11779_v20 = vld [vmem:[%s12432_s23 + $0x20] ss:$8 sps:$4 sm:$0xff]   ;;  %5853 = vmatprep.subr.bf16.mxu1 %v11781_v16 }
 0x825   : > { %10906 = vmatmul.mubr.bf16.vlgmr.msra.gmra.mrb[24].mxu0 %v4932_v27  ;;  %v11782_v27 = vld [vmem:[%s12432_s23 + $0x30] ss:$8 sps:$4 sm:$0xff]  }
 0x826   : > { %5470 = vmatpush1.bf16.msra.mxu0 %v11728_v56  ;;  %5501 = vmatprep.mubr.bf16.mxu0 %v12287_v55 }
 0x827   : > { %5471 = vmatprep.subr.bf16.mxu0 %v11733_v28  ;;  %5854 = vmatpush1.bf16.msra.mxu1 %v11779_v20  ;;  %v11787_v28 = vld [vmem:[%s12432_s23 + $0x44] ss:$8 sps:$4 sm:$0xff]  }
 0x828   : > { %5855 = vmatprep.subr.bf16.mxu1 %v11784_v23 }
 0x82a   : > { %5472 = vmatpush1.bf16.msra.mxu0 %v11731_v29  ;;  %v11785_v29 = vld [vmem:[%s12432_s23 + $0x40] ss:$8 sps:$4 sm:$0xff]  }
 0x82b   : > { %5473 = vmatprep.subr.bf16.mxu0 %v11736_v34  ;;  %5856 = vmatpush1.bf16.msra.mxu1 %v11782_v27  ;;  %v11790_v34 = vld [vmem:[%s12432_s23 + $0x54] ss:$8 sps:$4 sm:$0xff]  }
 0x82c   : > { %5857 = vmatprep.subr.bf16.mxu1 %v11787_v28 }
 0x82e   : > { %5474 = vmatpush1.bf16.msra.mxu0 %v11734_v35  ;;  %v11788_v35 = vld [vmem:[%s12432_s23 + $0x50] ss:$8 sps:$4 sm:$0xff]  }
 0x82f   : > { %5475 = vmatprep.subr.bf16.mxu0 %v11739_v36  ;;  %5858 = vmatpush1.bf16.msra.mxu1 %v11785_v29  ;;  %v11793_v36 = vld [vmem:[%s12432_s23 + $0x64] ss:$8 sps:$4 sm:$0xff]   ;;  %v11893_v29 = vld [vmem:[%s12438_s27 + $0x1a0] ss:$16 sps:$4 sm:$0xff]  }
 0x830   : > { %5859 = vmatprep.subr.bf16.mxu1 %v11790_v34 }
 0x832   : > { %5476 = vmatpush1.bf16.msra.mxu0 %v11737_v14  ;;  %v11791_v14 = vld [vmem:[%s12432_s23 + $0x60] ss:$8 sps:$4 sm:$0xff]  }
 0x833   : > { %5477 = vmatprep.subr.bf16.mxu0 %v11742_v17  ;;  %5860 = vmatpush1.bf16.msra.mxu1 %v11788_v35  ;;  %v11796_v17 = vld [vmem:[%s12432_s23 + $0x74] ss:$8 sps:$4 sm:$0xff]   ;;  %v11800_v35 = vld [vmem:[%s12432_s23 + $0x90] ss:$8 sps:$4 sm:$0xff]  }
 0x834   : > { %5861 = vmatprep.subr.bf16.mxu1 %v11793_v36 }
 0x836   : > { %5478 = vmatpush1.bf16.msra.mxu0 %v11740_v39  ;;  %v11794_v39 = vld [vmem:[%s12432_s23 + $0x70] ss:$8 sps:$4 sm:$0xff]  }
 0x837   : > { %5583 = vmatprep.subr.bf16.mxu0 %v11745_v41  ;;  %5862 = vmatpush1.bf16.msra.mxu1 %v11791_v14  ;;  %v11799_v41 = vld [vmem:[%s12432_s23 + $0x84] ss:$8 sps:$4 sm:$0xff]  }
 0x838   : > { %5863 = vmatprep.subr.bf16.mxu1 %v11796_v17 }
 0x83b   : > { %5864 = vmatpush1.bf16.msra.mxu1 %v11794_v39 }
 0x83c   : > { %5865 = vmatprep.subr.bf16.mxu1 %v11799_v41  ;;  %v11808_v41 = vld [vmem:[%s12432_s23 + $0xb4] ss:$8 sps:$4 sm:$0xff]  }
 0x866   : > { %v5394_v44 = vpop.f32.mrb[28].mxu1 }
 0x867   : > { %v11012_v43 = vadd.f32 %v12258_v40, %v5394_v44  ;;  %v10955_v45 = vpop.f32.mrb[29].mxu1  ;;  %v11797_v44 = vld [vmem:[%s12432_s23 + $0x80] ss:$8 sps:$4 sm:$0xff]  }
 0x868   : > { %v5397_v46 = vpop.f32.mrb[30].mxu1  ;;  %5866 = vmatpush1.bf16.msra.mxu1 %v11797_v44 }
 0x869   : > { %v5403_v47 = vmax.f32 %v11012_v43, 0.0  ;;  %v11013_v37 = vadd.f32 %v12258_v40, %v5397_v46  ;;  %v10956_v5 = vpop.f32.mrb[31].mxu1  ;;  %v11802_v40 = vld [vmem:[%s12432_s23 + $0x94] ss:$8 sps:$4 sm:$0xff]   ;;  %v1054_v43 = vld [vmem:[%s13288_s29] sm:$0x1] }
 0x86a   : > { %6017 = vmatprep.subr.bf16.mxu1 %v11802_v40  ;;  %v11806_v40 = vld [vmem:[%s12432_s23 + $0xb0] ss:$8 sps:$4 sm:$0xff]  }
 0x86b   : > { %v5415_v50 = vpack.c.bf16 %v5403_v47, %v5403_v47  ;;  %v5404_v51 = vmax.f32 %v11013_v37, 0.0 }
 0x86d   : > { %v13238_v57 = vpack.c.bf16 %v5404_v51, %v5403_v47  ;;  %9970 = vmatmul.mubr.msk.bf16.vlgmr.msra.gmra.mrb[28].mxu0 %vm1418_vm6, %v5415_v50  ;;  %v11854_v51 = vld [vmem:[%s12438_s27] ss:$16 sps:$4 sm:$0xff]  }
 0x86e   : > { %5584 = vmatpush1.bf16.msra.mxu0 %v11743_v49  ;;  %5615 = vmatprep.mubr.bf16.mxu0 %v12287_v55 }
 0x86f   : > { %5585 = vmatprep.subr.bf16.mxu0 %v11748_v52  ;;  %v5526_v63 = vshll.u32 %v13238_v57, 16  ;;  %v5524_v1 = vshrl.u32 %v13238_v57, 16  ;;  %v5637_v56 = vrot.slane %v13238_v57, 1  ;;  %v11859_v52 = vld [vmem:[%s12438_s27 + $0x24] ss:$16 sps:$4 sm:$0xff]  }
 0x870   : > { %v11857_v57 = vld [vmem:[%s12438_s27 + $0x20] ss:$16 sps:$4 sm:$0xff]  }
 0x871   : > { %v5528_v32 = vrot.slane %v5526_v63, 1  ;;  %v11866_v63 = vld [vmem:[%s12438_s27 + $0x80] ss:$16 sps:$4 sm:$0xff]  }
 0x872   : > { %5586 = vmatpush1.bf16.msra.mxu0 %v11746_v58  ;;  %v11862_v58 = vld [vmem:[%s12438_s27 + $0x44] ss:$16 sps:$4 sm:$0xff]  }
 0x873   : > { %5587 = vmatprep.subr.bf16.mxu0 %v11751_v59  ;;  %v5529_v4 = vor.u32 %v5528_v32, %v5524_v1  ;;  %v11860_v59 = vld [vmem:[%s12438_s27 + $0x40] ss:$16 sps:$4 sm:$0xff]   ;;  %v11874_v32 = vld [vmem:[%s12438_s27 + $0xc4] ss:$16 sps:$4 sm:$0xff]  }
 0x874   : > { %v11877_v1 = vld [vmem:[%s12438_s27 + $0xe4] ss:$16 sps:$4 sm:$0xff]  }
 0x876   : > { %5588 = vmatpush1.bf16.msra.mxu0 %v11749_v60  ;;  %v11865_v60 = vld [vmem:[%s12438_s27 + $0x64] ss:$16 sps:$4 sm:$0xff]  }
 0x877   : > { %5589 = vmatprep.subr.bf16.mxu0 %v11754_v61  ;;  %v11863_v61 = vld [vmem:[%s12438_s27 + $0x60] ss:$16 sps:$4 sm:$0xff]  }
 0x87a   : > { %5590 = vmatpush1.bf16.msra.mxu0 %v11752_v62  ;;  %v11868_v62 = vld [vmem:[%s12438_s27 + $0x84] ss:$16 sps:$4 sm:$0xff]  }
 0x87b   : > { %5591 = vmatprep.subr.bf16.mxu0 %v11757_v38  ;;  %v11871_v38 = vld [vmem:[%s12438_s27 + $0xa4] ss:$16 sps:$4 sm:$0xff]  }
 0x87e   : > { %5592 = vmatpush1.bf16.msra.mxu0 %v11755_v11  ;;  %v11869_v11 = vld [vmem:[%s12438_s27 + $0xa0] ss:$16 sps:$4 sm:$0xff]  }
 0x87f   : > { %5691 = vmatprep.subr.bf16.mxu0 %v11760_v33  ;;  %v11872_v33 = vld [vmem:[%s12438_s27 + $0xc0] ss:$16 sps:$4 sm:$0xff]  }
 0x881   : > { %9991 = vmatmul.mubr.msk.bf16.vlgmr.msra.gmra.mrb[28].mxu0 %vm1418_vm6, %v5529_v4  ;;  %v11880_v4 = vld [vmem:[%s12438_s27 + $0x104] ss:$16 sps:$4 sm:$0xff]  }
 0x882   : > { %5692 = vmatpush1.bf16.msra.mxu0 %v11758_v2  ;;  %5723 = vmatprep.mubr.bf16.mxu0 %v12287_v55  ;;  %v11875_v2 = vld [vmem:[%s12438_s27 + $0xe0] ss:$16 sps:$4 sm:$0xff]  }
 0x883   : > { %5693 = vmatprep.subr.bf16.mxu0 %v11763_v6  ;;  %v11878_v6 = vld [vmem:[%s12438_s27 + $0x100] ss:$16 sps:$4 sm:$0xff]  }
 0x886   : > { %5694 = vmatpush1.bf16.msra.mxu0 %v11761_v7  ;;  %v11883_v7 = vld [vmem:[%s12438_s27 + $0x124] ss:$16 sps:$4 sm:$0xff]  }
 0x887   : > { %5695 = vmatprep.subr.bf16.mxu0 %v11766_v8  ;;  %v11881_v8 = vld [vmem:[%s12438_s27 + $0x120] ss:$16 sps:$4 sm:$0xff]  }
 0x88a   : > { %5696 = vmatpush1.bf16.msra.mxu0 %v11764_v42  ;;  %v11886_v42 = vld [vmem:[%s12438_s27 + $0x144] ss:$16 sps:$4 sm:$0xff]  }
 0x88b   : > { %5697 = vmatprep.subr.bf16.mxu0 %v11769_v9  ;;  %v11884_v9 = vld [vmem:[%s12438_s27 + $0x140] ss:$16 sps:$4 sm:$0xff]  }
 0x88e   : > { %5698 = vmatpush1.bf16.msra.mxu0 %v11767_v12 }
 0x88f   : > { %5699 = vmatprep.subr.bf16.mxu0 %v11772_v13  ;;  %v11890_v13 = vld [vmem:[%s12438_s27 + $0x180] ss:$16 sps:$4 sm:$0xff]  }
 0x892   : > { %5700 = vmatpush1.bf16.msra.mxu0 %v11770_v18  ;;  %v11895_v18 = vld [vmem:[%s12438_s27 + $0x1a4] ss:$16 sps:$4 sm:$0xff]  }
 0x895   : > { %10012 = vmatmul.mubr.msk.bf16.vlgmr.msra.gmra.mrb[28].mxu0 %vm1418_vm6, %v5637_v56 }
 0x8f8   : > { %v5104_v45 = vpop.f32.mrb[24].mxu0 }
 0x8f9   : > { %v5105_v46 = vadd.f32 %v5104_v45, %v12997_v22  ;;  %v10907_v47 = vpop.f32.mrb[25].mxu0  ;;  %v11856_v22 = vld [vmem:[%s12438_s27 + $0x4] ss:$16 sps:$4 sm:$0xff]   ;;  %v11809_v45 = vld [vmem:[%s12432_s23 + $0xc0] ss:$8 sps:$4 sm:$0xff]  }
 0x8fa   : > { %v5107_v37 = vpop.f32.mrb[26].mxu0  ;;  %6607 = vmatprep.subr.bf16.mxu0 %v11856_v22  ;;  %v11812_v47 = vld [vmem:[%s12432_s23 + $0xd0] ss:$8 sps:$4 sm:$0xff]   ;;  %v11821_v22 = vld [vmem:[%s12432_s23 + $0x100] ss:$8 sps:$4 sm:$0xff]  }
 0x8fb   : > { %v5110_v5 = vadd.f32 %v5105_v46, %v1054_v43  ;;  %v10908_v49 = vpop.f32.mrb[27].mxu0  ;;  %6608 = vmatpush1.bf16.msra.mxu0 %v11854_v51  ;;  %v11811_v43 = vld [vmem:[%s12432_s23 + $0xc4] ss:$8 sps:$4 sm:$0xff]   ;;  %v11814_v46 = vld [vmem:[%s12432_s23 + $0xd4] ss:$8 sps:$4 sm:$0xff]  }
 0x8fc   : > { %6609 = vmatprep.subr.bf16.mxu0 %v11859_v52  ;;  %v11817_v37 = vld [vmem:[%s12432_s23 + $0xe4] ss:$8 sps:$4 sm:$0xff]   ;;  %v11820_v49 = vld [vmem:[%s12432_s23 + $0xf4] ss:$8 sps:$4 sm:$0xff]  }
 0x8fd   : > { %12254 = vtanh.f32 %v5110_v5  ;;  %v11815_v5 = vld [vmem:[%s12432_s23 + $0xe0] ss:$8 sps:$4 sm:$0xff]   ;;  %v11823_v51 = vld [vmem:[%s12432_s23 + $0x104] ss:$8 sps:$4 sm:$0xff]  }
 0x8ff   : > { %6610 = vmatpush1.bf16.msra.mxu0 %v11857_v57  ;;  %v11826_v57 = vld [vmem:[%s12432_s23 + $0x114] ss:$8 sps:$4 sm:$0xff]  }
 0x900   : > { %6611 = vmatprep.subr.bf16.mxu0 %v11862_v58  ;;  %v11824_v58 = vld [vmem:[%s12432_s23 + $0x110] ss:$8 sps:$4 sm:$0xff]  }
 0x903   : > { %6612 = vmatpush1.bf16.msra.mxu0 %v11860_v59 }
 0x904   : > { %6613 = vmatprep.subr.bf16.mxu0 %v11865_v60  ;;  %v11829_v60 = vld [vmem:[%s12432_s23 + $0x124] ss:$8 sps:$4 sm:$0xff]  }
 0x907   : > { %v12255_v50 = vpop.eup %12254  ;;  %6614 = vmatpush1.bf16.msra.mxu0 %v11863_v61 }
 0x908   : > { %5112 = vst [vmem:[%s13296_s21] sm:$0x1] %v12255_v50  ;;  %6615 = vmatprep.subr.bf16.mxu0 %v11868_v62  ;;  %v11818_v50 = vld [vmem:[%s12432_s23 + $0xf0] ss:$8 sps:$4 sm:$0xff]   ;;  %v11827_v62 = vld [vmem:[%s12432_s23 + $0x120] ss:$8 sps:$4 sm:$0xff]  }
 0x90b   : > { %6616 = vmatpush1.bf16.msra.mxu0 %v11866_v63 }
 0x90c   : > { %6617 = vmatprep.subr.bf16.mxu0 %v11871_v38  ;;  %v11832_v38 = vld [vmem:[%s12432_s23 + $0x134] ss:$8 sps:$4 sm:$0xff]  }
 0x90f   : > { %6618 = vmatpush1.bf16.msra.mxu0 %v11869_v11 }
 0x910   : > { %6619 = vmatprep.subr.bf16.mxu0 %v11874_v32  ;;  %v11830_v32 = vld [vmem:[%s12432_s23 + $0x130] ss:$8 sps:$4 sm:$0xff]  }
 0x913   : > { %6620 = vmatpush1.bf16.msra.mxu0 %v11872_v33  ;;  %v11835_v33 = vld [vmem:[%s12432_s23 + $0x144] ss:$8 sps:$4 sm:$0xff]  }
 0x914   : > { %6621 = vmatprep.subr.bf16.mxu0 %v11877_v1  ;;  %v11833_v1 = vld [vmem:[%s12432_s23 + $0x140] ss:$8 sps:$4 sm:$0xff]  }
 0x917   : > { %6622 = vmatpush1.bf16.msra.mxu0 %v11875_v2  ;;  %v11838_v2 = vld [vmem:[%s12432_s23 + $0x154] ss:$8 sps:$4 sm:$0xff]  }
 0x918   : > { %6623 = vmatprep.subr.bf16.mxu0 %v11880_v4  ;;  %v11836_v4 = vld [vmem:[%s12432_s23 + $0x150] ss:$8 sps:$4 sm:$0xff]  }
 0x91b   : > { %6624 = vmatpush1.bf16.msra.mxu0 %v11878_v6  ;;  %v11841_v6 = vld [vmem:[%s12432_s23 + $0x164] ss:$8 sps:$4 sm:$0xff]  }
 0x91c   : > { %6625 = vmatprep.subr.bf16.mxu0 %v11883_v7  ;;  %v11839_v7 = vld [vmem:[%s12432_s23 + $0x160] ss:$8 sps:$4 sm:$0xff]  }
 0x91f   : > { %6626 = vmatpush1.bf16.msra.mxu0 %v11881_v8  ;;  %v11844_v8 = vld [vmem:[%s12432_s23 + $0x174] ss:$8 sps:$4 sm:$0xff]  }
 0x920   : > { %6627 = vmatprep.subr.bf16.mxu0 %v11886_v42  ;;  %v11842_v42 = vld [vmem:[%s12432_s23 + $0x170] ss:$8 sps:$4 sm:$0xff]  }
 0x923   : > { %6628 = vmatpush1.bf16.msra.mxu0 %v11884_v9  ;;  %v11847_v9 = vld [vmem:[%s12432_s23 + $0x184] ss:$8 sps:$4 sm:$0xff]  }
 0x924   : > { %6629 = vmatprep.subr.bf16.mxu0 %v11889_v10  ;;  %v11845_v10 = vld [vmem:[%s12432_s23 + $0x180] ss:$8 sps:$4 sm:$0xff]  }
 0x927   : > { %6630 = vmatpush1.bf16.msra.mxu0 %v11887_v3  ;;  %v11850_v3 = vld [vmem:[%s12432_s23 + $0x194] ss:$8 sps:$4 sm:$0xff]  }
 0x928   : > { %6631 = vmatprep.subr.bf16.mxu0 %v11892_v48  ;;  %v11848_v48 = vld [vmem:[%s12432_s23 + $0x190] ss:$8 sps:$4 sm:$0xff]  }
 0x92b   : > { %6632 = vmatpush1.bf16.msra.mxu0 %v11890_v13  ;;  %v11851_v13 = vld [vmem:[%s12432_s23 + $0x1a0] ss:$8 sps:$4 sm:$0xff]  }
 0x92c   : > { %6633 = vmatprep.subr.bf16.mxu0 %v11895_v18  ;;  %v11896_v18 = vld [vmem:[%s12438_s27 + $0x1c0] ss:$16 sps:$4 sm:$0xff]  }
 0x92f   : > { %6634 = vmatpush1.bf16.msra.mxu0 %v11893_v29 }
 0x968   : > { %v5725_v12 = vpop.f32.mrb[28].mxu0 }
 0x969   : > { %v11014_v15 = vadd.f32 %v5725_v12, %v12608_v19  ;;  %v5727_v16 = vpop.f32.mrb[29].mxu0  ;;  %v11805_v19 = vld [vmem:[%s12432_s23 + $0xa4] ss:$8 sps:$4 sm:$0xff]  }
 0x96a   : > { %v11015_v20 = vadd.f32 %v5727_v16, %v12612_v21  ;;  %v5729_v23 = vpop.f32.mrb[30].mxu0  ;;  %v11803_v21 = vld [vmem:[%s12432_s23 + $0xa0] ss:$8 sps:$4 sm:$0xff]   ;;  %v11853_v12 = vld [vmem:[%s12432_s23 + $0x1a4] ss:$8 sps:$4 sm:$0xff]  }
 0x96b   : > { %v5734_v56 = vmax.f32 %v11014_v15, 0.0  ;;  %v5730_v27 = vpop.f32.mrb[31].mxu0  ;;  %v11898_v16 = vld [vmem:[%s12438_s27 + $0x1c4] ss:$16 sps:$4 sm:$0xff]   ;;  %v11899_v23 = vld [vmem:[%s12438_s27 + $0x1e0] ss:$16 sps:$4 sm:$0xff]  }
 0x96c   : > { %v5735_v28 = vmax.f32 %v11015_v20, 0.0  ;;  %6635 = vmatprep.subr.bf16.mxu0 %v11898_v16  ;;  %v11901_v20 = vld [vmem:[%s12438_s27 + $0x1e4] ss:$16 sps:$4 sm:$0xff]   ;;  %v11959_v16 = vld [vmem:[%s12438_s27 + $0x260] ss:$16 sps:$4 sm:$0xff]  }
 0x96d   : > { %v13330_v36 = vpack.c.bf16 %v5734_v56, %v5734_v56  ;;  %6636 = vmatpush1.bf16.msra.mxu0 %v11896_v18  ;;  %v11904_v56 = vld [vmem:[%s12438_s27 + $0xc] ss:$16 sps:$4 sm:$0xff]   ;;  %v11964_v18 = vld [vmem:[%s12438_s27 + $0x284] ss:$16 sps:$4 sm:$0xff]  }
 0x96e   : > { %v5755_v34 = vpack.c.bf16 %v5735_v28, %v5735_v28  ;;  %6637 = vmatprep.subr.bf16.mxu0 %v11901_v20  ;;  %v11962_v20 = vld [vmem:[%s12438_s27 + $0x280] ss:$16 sps:$4 sm:$0xff]  }
 0x96f   : > { %v5913_v52 = vshll.u32 %v13330_v36, 16  ;;  %v5911_v61 = vshrl.u32 %v13330_v36, 16  ;;  %v6080_v15 = vrot.slane %v13330_v36, 1 }
 0x970   : > { %v5919_v14 = vshll.u32 %v5755_v34, 16  ;;  %10031 = vmatprep.mubr.msk.bf16.mxu1 %vm1812_vm7, %v5755_v34  ;;  %v5917_v17 = vshrl.u32 %v5755_v34, 16  ;;  %v6081_v11 = vrot.slane %v5755_v34, 1 }
 0x971   : > { %5882 = vmatmul.mubr.bf16.vlgmr.msra.gmra.mrb[32].mxu1 %v13330_v36  ;;  %v5915_v59 = vrot.slane %v5913_v52, 1  ;;  %6638 = vmatpush1.bf16.msra.mxu0 %v11899_v23  ;;  %v11926_v52 = vld [vmem:[%s12438_s27 + $0x108] ss:$16 sps:$4 sm:$0xff]   ;;  %v11967_v23 = vld [vmem:[%s12438_s27 + $0x2a4] ss:$16 sps:$4 sm:$0xff]  }
 0x972   : > { %6018 = vmatpush1.bf16.msra.mxu1 %v11800_v35  ;;  %v5921_v39 = vrot.slane %v5919_v14, 1  ;;  %6648 = vmatprep.subr.bf16.mxu0 %v11904_v56  ;;  %v11965_v56 = vld [vmem:[%s12438_s27 + $0x2a0] ss:$16 sps:$4 sm:$0xff]  }
 0x973   : > { %6019 = vmatprep.subr.bf16.mxu1 %v11805_v19  ;;  %v5916_v63 = vor.u32 %v5915_v59, %v5911_v61  ;;  %v11934_v59 = vld [vmem:[%s12438_s27 + $0x14c] ss:$16 sps:$4 sm:$0xff]  }
 0x974   : > { %v5922_v44 = vor.u32 %v5921_v39, %v5917_v17  ;;  %v11902_v17 = vld [vmem:[%s12438_s27 + $0x8] ss:$16 sps:$4 sm:$0xff]   ;;  %v11937_v61 = vld [vmem:[%s12438_s27 + $0x16c] ss:$16 sps:$4 sm:$0xff]  }
 0x976   : > { %6020 = vmatpush1.bf16.msra.mxu1 %v11803_v21  ;;  %10068 = vmatprep.mubr.msk.bf16.mxu1 %vm1812_vm7, %v5922_v44  ;;  %v11908_v44 = vld [vmem:[%s12438_s27 + $0x48] ss:$16 sps:$4 sm:$0xff]  }
 0x977   : > { %6021 = vmatprep.subr.bf16.mxu1 %v11808_v41  ;;  %v11907_v41 = vld [vmem:[%s12438_s27 + $0x2c] ss:$16 sps:$4 sm:$0xff]  }
 0x97a   : > { %6022 = vmatpush1.bf16.msra.mxu1 %v11806_v40  ;;  %v11913_v40 = vld [vmem:[%s12438_s27 + $0x6c] ss:$16 sps:$4 sm:$0xff]  }
 0x97b   : > { %6023 = vmatprep.subr.bf16.mxu1 %v11811_v43  ;;  %v11911_v43 = vld [vmem:[%s12438_s27 + $0x68] ss:$16 sps:$4 sm:$0xff]  }
 0x97e   : > { %6024 = vmatpush1.bf16.msra.mxu1 %v11809_v45  ;;  %v11916_v45 = vld [vmem:[%s12438_s27 + $0x8c] ss:$16 sps:$4 sm:$0xff]  }
 0x97f   : > { %6025 = vmatprep.subr.bf16.mxu1 %v11814_v46  ;;  %v11914_v46 = vld [vmem:[%s12438_s27 + $0x88] ss:$16 sps:$4 sm:$0xff]  }
 0x982   : > { %6026 = vmatpush1.bf16.msra.mxu1 %v11812_v47  ;;  %v11919_v47 = vld [vmem:[%s12438_s27 + $0xac] ss:$16 sps:$4 sm:$0xff]  }
 0x983   : > { %6027 = vmatprep.subr.bf16.mxu1 %v11817_v37  ;;  %v11917_v37 = vld [vmem:[%s12438_s27 + $0xa8] ss:$16 sps:$4 sm:$0xff]  }
 0x986   : > { %6028 = vmatpush1.bf16.msra.mxu1 %v11815_v5  ;;  %v11922_v5 = vld [vmem:[%s12438_s27 + $0xcc] ss:$16 sps:$4 sm:$0xff]  }
 0x987   : > { %6029 = vmatprep.subr.bf16.mxu1 %v11820_v49  ;;  %v11920_v49 = vld [vmem:[%s12438_s27 + $0xc8] ss:$16 sps:$4 sm:$0xff]  }
 0x98a   : > { %6030 = vmatpush1.bf16.msra.mxu1 %v11818_v50  ;;  %v11925_v50 = vld [vmem:[%s12438_s27 + $0xec] ss:$16 sps:$4 sm:$0xff]  }
 0x98b   : > { %6031 = vmatprep.subr.bf16.mxu1 %v11823_v51  ;;  %v11923_v51 = vld [vmem:[%s12438_s27 + $0xe8] ss:$16 sps:$4 sm:$0xff]  }
 0x98e   : > { %6032 = vmatpush1.bf16.msra.mxu1 %v11821_v22  ;;  %v11928_v22 = vld [vmem:[%s12438_s27 + $0x10c] ss:$16 sps:$4 sm:$0xff]  }
 0x98f   : > { %6033 = vmatprep.subr.bf16.mxu1 %v11826_v57  ;;  %v11931_v57 = vld [vmem:[%s12438_s27 + $0x12c] ss:$16 sps:$4 sm:$0xff]  }
 0x992   : > { %6034 = vmatpush1.bf16.msra.mxu1 %v11824_v58  ;;  %v11929_v58 = vld [vmem:[%s12438_s27 + $0x128] ss:$16 sps:$4 sm:$0xff]  }
 0x993   : > { %6176 = vmatprep.subr.bf16.mxu1 %v11829_v60  ;;  %v11932_v60 = vld [vmem:[%s12438_s27 + $0x148] ss:$16 sps:$4 sm:$0xff]  }
 0x995   : > { %6050 = vmatmul.mubr.bf16.vlgmr.msra.gmra.mrb[32].mxu1 %v5916_v63  ;;  %v11940_v63 = vld [vmem:[%s12438_s27 + $0x18c] ss:$16 sps:$4 sm:$0xff]  }
 0x996   : > { %6177 = vmatpush1.bf16.msra.mxu1 %v11827_v62  ;;  %10105 = vmatprep.mubr.msk.bf16.mxu1 %vm1812_vm7, %v6081_v11  ;;  %v11935_v62 = vld [vmem:[%s12438_s27 + $0x168] ss:$16 sps:$4 sm:$0xff]   ;;  %v11943_v11 = vld [vmem:[%s12438_s27 + $0x1ac] ss:$16 sps:$4 sm:$0xff]  }
 0x997   : > { %6178 = vmatprep.subr.bf16.mxu1 %v11832_v38  ;;  %v11938_v38 = vld [vmem:[%s12438_s27 + $0x188] ss:$16 sps:$4 sm:$0xff]  }
 0x99a   : > { %6179 = vmatpush1.bf16.msra.mxu1 %v11830_v32  ;;  %v11941_v32 = vld [vmem:[%s12438_s27 + $0x1a8] ss:$16 sps:$4 sm:$0xff]  }
 0x99b   : > { %6180 = vmatprep.subr.bf16.mxu1 %v11835_v33  ;;  %v11946_v33 = vld [vmem:[%s12438_s27 + $0x1cc] ss:$16 sps:$4 sm:$0xff]  }
 0x99e   : > { %6181 = vmatpush1.bf16.msra.mxu1 %v11833_v1  ;;  %v11944_v1 = vld [vmem:[%s12438_s27 + $0x1c8] ss:$16 sps:$4 sm:$0xff]  }
 0x99f   : > { %6182 = vmatprep.subr.bf16.mxu1 %v11838_v2  ;;  %v11949_v2 = vld [vmem:[%s12438_s27 + $0x1ec] ss:$16 sps:$4 sm:$0xff]  }
 0x9a2   : > { %6183 = vmatpush1.bf16.msra.mxu1 %v11836_v4 }
 0x9a3   : > { %6184 = vmatprep.subr.bf16.mxu1 %v11841_v6  ;;  %v11947_v6 = vld [vmem:[%s12438_s27 + $0x1e8] ss:$16 sps:$4 sm:$0xff]  }
 0x9a6   : > { %6185 = vmatpush1.bf16.msra.mxu1 %v11839_v7  ;;  %v11952_v7 = vld [vmem:[%s12438_s27 + $0x204] ss:$16 sps:$4 sm:$0xff]  }
 0x9a7   : > { %6186 = vmatprep.subr.bf16.mxu1 %v11844_v8 }
 0x9aa   : > { %6187 = vmatpush1.bf16.msra.mxu1 %v11842_v42  ;;  %v11950_v42 = vld [vmem:[%s12438_s27 + $0x200] ss:$16 sps:$4 sm:$0xff]  }
 0x9ab   : > { %6188 = vmatprep.subr.bf16.mxu1 %v11847_v9 }
 0x9ae   : > { %6189 = vmatpush1.bf16.msra.mxu1 %v11845_v10  ;;  %v11955_v10 = vld [vmem:[%s12438_s27 + $0x224] ss:$16 sps:$4 sm:$0xff]  }
 0x9af   : > { %6190 = vmatprep.subr.bf16.mxu1 %v11850_v3 }
 0x9b2   : > { %6191 = vmatpush1.bf16.msra.mxu1 %v11848_v48  ;;  %v11953_v48 = vld [vmem:[%s12438_s27 + $0x220] ss:$16 sps:$4 sm:$0xff]  }
 0x9b3   : > { %6192 = vmatprep.subr.bf16.mxu1 %v11853_v12  ;;  %v11958_v12 = vld [vmem:[%s12438_s27 + $0x244] ss:$16 sps:$4 sm:$0xff]  }
 0x9b6   : > { %6193 = vmatpush1.bf16.msra.mxu1 %v11851_v13  ;;  %v11956_v13 = vld [vmem:[%s12438_s27 + $0x240] ss:$16 sps:$4 sm:$0xff]  }
 0x9b9   : > { %6209 = vmatmul.mubr.bf16.vlgmr.msra.gmra.mrb[32].mxu1 %v6080_v15  ;;  %v11961_v15 = vld [vmem:[%s12438_s27 + $0x264] ss:$16 sps:$4 sm:$0xff]  }
 0xa8c   : > { %v6210_v27 = vpop.f32.mrb[32].mxu1 }
 0xa8d   : > { %v11016_v28 = vadd.f32 %v6210_v27, %v12673_v30  ;;  %v6212_v29 = vpop.f32.mrb[33].mxu1  ;;  %v11905_v30 = vld [vmem:[%s12438_s27 + $0x28] ss:$16 sps:$4 sm:$0xff]   ;;  %v11970_v27 = vld [vmem:[%s12438_s27 + $0x2c4] ss:$16 sps:$4 sm:$0xff]  }
 0xa8e   : > { %v11017_v34 = vadd.f32 %v6212_v29, %v12676_v31  ;;  %v6214_v35 = vpop.f32.mrb[34].mxu1  ;;  %v11910_v31 = vld [vmem:[%s12438_s27 + $0x4c] ss:$16 sps:$4 sm:$0xff]   ;;  %v11973_v29 = vld [vmem:[%s12438_s27 + $0x2e4] ss:$16 sps:$4 sm:$0xff]  }
 0xa8f   : > { %v6219_v36 = vmax.f32 %v11016_v28, 0.0  ;;  %v6215_v19 = vpop.f32.mrb[35].mxu1  ;;  %v11968_v28 = vld [vmem:[%s12438_s27 + $0x2c0] ss:$16 sps:$4 sm:$0xff]   ;;  %v11976_v35 = vld [vmem:[%s12438_s27 + $0x304] ss:$16 sps:$4 sm:$0xff]  }
 0xa90   : > { %v6220_v14 = vmax.f32 %v11017_v34, 0.0  ;;  %v11971_v34 = vld [vmem:[%s12438_s27 + $0x2e0] ss:$16 sps:$4 sm:$0xff]   ;;  %v11979_v19 = vld [vmem:[%s12438_s27 + $0x324] ss:$16 sps:$4 sm:$0xff]  }
 0xa91   : > { %v13383_v39 = vpack.c.bf16 %v6219_v36, %v6219_v36  ;;  %v11974_v36 = vld [vmem:[%s12438_s27 + $0x300] ss:$16 sps:$4 sm:$0xff]  }
 0xa92   : > { %v13380_v21 = vpack.c.bf16 %v6220_v14, %v6220_v14  ;;  %v11977_v14 = vld [vmem:[%s12438_s27 + $0x320] ss:$16 sps:$4 sm:$0xff]  }
 0xa94   : > { %6639 = vmatprep.mubr.bf16.mxu0 %v13380_v21  ;;  %v6767_v4 = vshll.u32 %v13380_v21, 16  ;;  %v6765_v9 = vshrl.u32 %v13380_v21, 16 }
 0xa95   : > { %6640 = vmatmul.mubr.bf16.vlgmr.msra.gmra.mrb[32].mxu0 %v13383_v39 }
 0xa96   : > { %6649 = vmatpush1.bf16.msra.mxu0 %v11902_v17  ;;  %6680 = vmatprep.mubr.bf16.mxu0 %v13380_v21  ;;  %v6769_v8 = vrot.slane %v6767_v4, 1  ;;  %v11982_v17 = vld [vmem:[%s12438_s27 + $0x344] ss:$16 sps:$4 sm:$0xff]   ;;  %v12021_v4 = vld [vmem:[%s12438_s27 + $0x2ec] ss:$16 sps:$4 sm:$0xff]  }
 0xa97   : > { %6650 = vmatprep.subr.bf16.mxu0 %v11907_v41  ;;  %v11980_v41 = vld [vmem:[%s12438_s27 + $0x340] ss:$16 sps:$4 sm:$0xff]  }
 0xa98   : > { %v13423_v3 = vor.u32 %v6769_v8, %v6765_v9  ;;  %v12022_v8 = vld [vmem:[%s12438_s27 + $0x308] ss:$16 sps:$4 sm:$0xff]  }
 0xa99   : > { %v12025_v9 = vld [vmem:[%s12438_s27 + $0x328] ss:$16 sps:$4 sm:$0xff]  }
 0xa9a   : > { %6651 = vmatpush1.bf16.msra.mxu0 %v11905_v30  ;;  %v11985_v30 = vld [vmem:[%s12438_s27 + $0x364] ss:$16 sps:$4 sm:$0xff]  }
 0xa9b   : > { %6652 = vmatprep.subr.bf16.mxu0 %v11910_v31  ;;  %v11983_v31 = vld [vmem:[%s12438_s27 + $0x360] ss:$16 sps:$4 sm:$0xff]  }
 0xa9e   : > { %6653 = vmatpush1.bf16.msra.mxu0 %v11908_v44  ;;  %v11988_v44 = vld [vmem:[%s12438_s27 + $0x384] ss:$16 sps:$4 sm:$0xff]  }
 0xa9f   : > { %6654 = vmatprep.subr.bf16.mxu0 %v11913_v40  ;;  %v11986_v40 = vld [vmem:[%s12438_s27 + $0x380] ss:$16 sps:$4 sm:$0xff]  }
 0xaa2   : > { %6655 = vmatpush1.bf16.msra.mxu0 %v11911_v43  ;;  %v11991_v43 = vld [vmem:[%s12438_s27 + $0x3a4] ss:$16 sps:$4 sm:$0xff]  }
 0xaa3   : > { %6656 = vmatprep.subr.bf16.mxu0 %v11916_v45  ;;  %v11989_v45 = vld [vmem:[%s12438_s27 + $0x3a0] ss:$16 sps:$4 sm:$0xff]  }
 0xaa6   : > { %6657 = vmatpush1.bf16.msra.mxu0 %v11914_v46  ;;  %v11994_v46 = vld [vmem:[%s12438_s27 + $0x3c4] ss:$16 sps:$4 sm:$0xff]  }
 0xaa7   : > { %6658 = vmatprep.subr.bf16.mxu0 %v11919_v47  ;;  %v11992_v47 = vld [vmem:[%s12438_s27 + $0x3c0] ss:$16 sps:$4 sm:$0xff]  }
 0xaaa   : > { %6659 = vmatpush1.bf16.msra.mxu0 %v11917_v37  ;;  %v11997_v37 = vld [vmem:[%s12438_s27 + $0x3e4] ss:$16 sps:$4 sm:$0xff]  }
 0xaab   : > { %6660 = vmatprep.subr.bf16.mxu0 %v11922_v5  ;;  %v6760_v5 = vshll.u32 %v13383_v39, 16 }
 0xaae   : > { %6661 = vmatpush1.bf16.msra.mxu0 %v11920_v49  ;;  %v11995_v49 = vld [vmem:[%s12438_s27 + $0x3e0] ss:$16 sps:$4 sm:$0xff]  }
 0xaaf   : > { %6662 = vmatprep.subr.bf16.mxu0 %v11925_v50  ;;  %v6762_v50 = vrot.slane %v6760_v5, 1  ;;  %v12070_v5 = vld [vmem:[%s12438_s27 + $0x500] ss:$16 sps:$4 sm:$0xff]  }
 0xab2   : > { %6663 = vmatpush1.bf16.msra.mxu0 %v11923_v51  ;;  %v12000_v51 = vld [vmem:[%s12438_s27 + $0x20c] ss:$16 sps:$4 sm:$0xff]  }
 0xab3   : > { %6664 = vmatprep.subr.bf16.mxu0 %v11928_v22  ;;  %v6758_v22 = vshrl.u32 %v13383_v39, 16 }
 0xab6   : > { %6665 = vmatpush1.bf16.msra.mxu0 %v11926_v52  ;;  %v11998_v52 = vld [vmem:[%s12438_s27 + $0x208] ss:$16 sps:$4 sm:$0xff]  }
 0xab7   : > { %6666 = vmatprep.subr.bf16.mxu0 %v11931_v57  ;;  %v13460_v57 = vor.u32 %v6762_v50, %v6758_v22  ;;  %v12142_v50 = vld [vmem:[%s12445_s20 + $0x40] sm:$0xff]   ;;  %v12144_v22 = vld [vmem:[%s12445_s20 + $0x48] sm:$0xff]  }
 0xab8   : > { %10701 = vmatprep.subr.bf16.mxu1 %v12142_v50  ;;  %v12141_v50 = vld [vmem:[%s12438_s27 + $0x5ec] ss:$16 sps:$4 sm:$0xff]  }
 0xaba   : > { %6667 = vmatpush1.bf16.msra.mxu0 %v11929_v58  ;;  %v12003_v58 = vld [vmem:[%s12438_s27 + $0x22c] ss:$16 sps:$4 sm:$0xff]  }
 0xabb   : > { %6668 = vmatprep.subr.bf16.mxu0 %v11934_v59  ;;  %v12001_v59 = vld [vmem:[%s12438_s27 + $0x228] ss:$16 sps:$4 sm:$0xff]  }
 0xabe   : > { %6669 = vmatpush1.bf16.msra.mxu0 %v11932_v60  ;;  %v12006_v60 = vld [vmem:[%s12438_s27 + $0x24c] ss:$16 sps:$4 sm:$0xff]  }
 0xabf   : > { %6670 = vmatprep.subr.bf16.mxu0 %v11937_v61  ;;  %v12004_v61 = vld [vmem:[%s12438_s27 + $0x248] ss:$16 sps:$4 sm:$0xff]  }
 0xac2   : > { %6671 = vmatpush1.bf16.msra.mxu0 %v11935_v62  ;;  %v12009_v62 = vld [vmem:[%s12438_s27 + $0x26c] ss:$16 sps:$4 sm:$0xff]  }
 0xac3   : > { %6672 = vmatprep.subr.bf16.mxu0 %v11940_v63  ;;  %v12007_v63 = vld [vmem:[%s12438_s27 + $0x268] ss:$16 sps:$4 sm:$0xff]  }
 0xac6   : > { %6673 = vmatpush1.bf16.msra.mxu0 %v11938_v38  ;;  %v12012_v38 = vld [vmem:[%s12438_s27 + $0x28c] ss:$16 sps:$4 sm:$0xff]  }
 0xac7   : > { %6674 = vmatprep.subr.bf16.mxu0 %v11943_v11  ;;  %v12010_v11 = vld [vmem:[%s12438_s27 + $0x288] ss:$16 sps:$4 sm:$0xff]  }
 0xaca   : > { %6675 = vmatpush1.bf16.msra.mxu0 %v11941_v32  ;;  %v12015_v32 = vld [vmem:[%s12438_s27 + $0x2ac] ss:$16 sps:$4 sm:$0xff]  }
 0xacb   : > { %6676 = vmatprep.subr.bf16.mxu0 %v11946_v33  ;;  %v12013_v33 = vld [vmem:[%s12438_s27 + $0x2a8] ss:$16 sps:$4 sm:$0xff]  }
 0xace   : > { %6677 = vmatpush1.bf16.msra.mxu0 %v11944_v1  ;;  %v12018_v1 = vld [vmem:[%s12438_s27 + $0x2cc] ss:$16 sps:$4 sm:$0xff]  }
 0xacf   : > { %6678 = vmatprep.subr.bf16.mxu0 %v11949_v2  ;;  %v12016_v2 = vld [vmem:[%s12438_s27 + $0x2c8] ss:$16 sps:$4 sm:$0xff]  }
 0xad2   : > { %6679 = vmatpush1.bf16.msra.mxu0 %v11947_v6  ;;  %v12019_v6 = vld [vmem:[%s12438_s27 + $0x2e8] ss:$16 sps:$4 sm:$0xff]  }
 0xad3   : > { %7093 = vmatprep.subr.bf16.mxu0 %v11952_v7  ;;  %v12024_v7 = vld [vmem:[%s12438_s27 + $0x30c] ss:$16 sps:$4 sm:$0xff]  }
 0xad5   : > { %6681 = vmatmul.mubr.bf16.vlgmr.msra.gmra.mrb[36].mxu0 %v13383_v39 }
 0xad6   : > { %7094 = vmatpush1.bf16.msra.mxu0 %v11950_v42  ;;  %7125 = vmatprep.mubr.bf16.mxu0 %v13423_v3  ;;  %v12027_v42 = vld [vmem:[%s12438_s27 + $0x32c] ss:$16 sps:$4 sm:$0xff]  }
 0xad7   : > { %7095 = vmatprep.subr.bf16.mxu0 %v11955_v10  ;;  %v12030_v10 = vld [vmem:[%s12438_s27 + $0x34c] ss:$16 sps:$4 sm:$0xff]  }
 0xada   : > { %7096 = vmatpush1.bf16.msra.mxu0 %v11953_v48  ;;  %v12033_v48 = vld [vmem:[%s12438_s27 + $0x36c] ss:$16 sps:$4 sm:$0xff]  }
 0xadb   : > { %7097 = vmatprep.subr.bf16.mxu0 %v11958_v12  ;;  %v12031_v12 = vld [vmem:[%s12438_s27 + $0x368] ss:$16 sps:$4 sm:$0xff]  }
 0xade   : > { %7098 = vmatpush1.bf16.msra.mxu0 %v11956_v13  ;;  %v12036_v13 = vld [vmem:[%s12438_s27 + $0x38c] ss:$16 sps:$4 sm:$0xff]  }
 0xadf   : > { %7099 = vmatprep.subr.bf16.mxu0 %v11961_v15  ;;  %v12034_v15 = vld [vmem:[%s12438_s27 + $0x388] ss:$16 sps:$4 sm:$0xff]  }
 0xae2   : > { %7100 = vmatpush1.bf16.msra.mxu0 %v11959_v16  ;;  %v12039_v16 = vld [vmem:[%s12438_s27 + $0x3ac] ss:$16 sps:$4 sm:$0xff]  }
 0xae3   : > { %7101 = vmatprep.subr.bf16.mxu0 %v11964_v18  ;;  %v12037_v18 = vld [vmem:[%s12438_s27 + $0x3a8] ss:$16 sps:$4 sm:$0xff]  }
 0xae6   : > { %7102 = vmatpush1.bf16.msra.mxu0 %v11962_v20  ;;  %v12042_v20 = vld [vmem:[%s12438_s27 + $0x3cc] ss:$16 sps:$4 sm:$0xff]  }
 0xae7   : > { %7103 = vmatprep.subr.bf16.mxu0 %v11967_v23  ;;  %v12040_v23 = vld [vmem:[%s12438_s27 + $0x3c8] ss:$16 sps:$4 sm:$0xff]  }
 0xaea   : > { %7104 = vmatpush1.bf16.msra.mxu0 %v11965_v56  ;;  %v12045_v56 = vld [vmem:[%s12438_s27 + $0x3ec] ss:$16 sps:$4 sm:$0xff]  }
 0xaeb   : > { %7105 = vmatprep.subr.bf16.mxu0 %v11970_v27  ;;  %v12043_v27 = vld [vmem:[%s12438_s27 + $0x3e8] ss:$16 sps:$4 sm:$0xff]  }
 0xaee   : > { %7106 = vmatpush1.bf16.msra.mxu0 %v11968_v28  ;;  %v12048_v28 = vld [vmem:[%s12438_s27 + $0x404] ss:$16 sps:$4 sm:$0xff]  }
 0xaef   : > { %7107 = vmatprep.subr.bf16.mxu0 %v11973_v29  ;;  %v12046_v29 = vld [vmem:[%s12438_s27 + $0x400] ss:$16 sps:$4 sm:$0xff]  }
 0xaf2   : > { %7108 = vmatpush1.bf16.msra.mxu0 %v11971_v34  ;;  %v12051_v34 = vld [vmem:[%s12438_s27 + $0x424] ss:$16 sps:$4 sm:$0xff]  }
 0xaf3   : > { %7109 = vmatprep.subr.bf16.mxu0 %v11976_v35  ;;  %v7246_v35 = vrot.slane %v13380_v21, 1  ;;  %v12106_v21 = vld [vmem:[%s12438_s27 + $0x488] ss:$16 sps:$4 sm:$0xff]  }
 0xaf6   : > { %7110 = vmatpush1.bf16.msra.mxu0 %v11974_v36  ;;  %v12049_v36 = vld [vmem:[%s12438_s27 + $0x420] ss:$16 sps:$4 sm:$0xff]  }
 0xaf7   : > { %7111 = vmatprep.subr.bf16.mxu0 %v11979_v19  ;;  %v12054_v19 = vld [vmem:[%s12438_s27 + $0x444] ss:$16 sps:$4 sm:$0xff]  }
 0xafa   : > { %7112 = vmatpush1.bf16.msra.mxu0 %v11977_v14  ;;  %v12052_v14 = vld [vmem:[%s12438_s27 + $0x440] ss:$16 sps:$4 sm:$0xff]  }
 0xafb   : > { %7113 = vmatprep.subr.bf16.mxu0 %v11982_v17  ;;  %v12057_v17 = vld [vmem:[%s12438_s27 + $0x464] ss:$16 sps:$4 sm:$0xff]  }
 0xafe   : > { %7114 = vmatpush1.bf16.msra.mxu0 %v11980_v41  ;;  %v12055_v41 = vld [vmem:[%s12438_s27 + $0x460] ss:$16 sps:$4 sm:$0xff]  }
 0xaff   : > { %7115 = vmatprep.subr.bf16.mxu0 %v11985_v30  ;;  %v12060_v30 = vld [vmem:[%s12438_s27 + $0x484] ss:$16 sps:$4 sm:$0xff]  }
 0xb02   : > { %7116 = vmatpush1.bf16.msra.mxu0 %v11983_v31  ;;  %v12058_v31 = vld [vmem:[%s12438_s27 + $0x480] ss:$16 sps:$4 sm:$0xff]  }
 0xb03   : > { %7117 = vmatprep.subr.bf16.mxu0 %v11988_v44  ;;  %v12063_v44 = vld [vmem:[%s12438_s27 + $0x4a4] ss:$16 sps:$4 sm:$0xff]  }
 0xb06   : > { %7118 = vmatpush1.bf16.msra.mxu0 %v11986_v40  ;;  %v12061_v40 = vld [vmem:[%s12438_s27 + $0x4a0] ss:$16 sps:$4 sm:$0xff]  }
 0xb07   : > { %7119 = vmatprep.subr.bf16.mxu0 %v11991_v43  ;;  %v12066_v43 = vld [vmem:[%s12438_s27 + $0x4c4] ss:$16 sps:$4 sm:$0xff]  }
 0xb0a   : > { %7120 = vmatpush1.bf16.msra.mxu0 %v11989_v45  ;;  %v12064_v45 = vld [vmem:[%s12438_s27 + $0x4c0] ss:$16 sps:$4 sm:$0xff]  }
 0xb0b   : > { %7121 = vmatprep.subr.bf16.mxu0 %v11994_v46  ;;  %v12069_v46 = vld [vmem:[%s12438_s27 + $0x4e4] ss:$16 sps:$4 sm:$0xff]  }
 0xb0e   : > { %7122 = vmatpush1.bf16.msra.mxu0 %v11992_v47  ;;  %v12067_v47 = vld [vmem:[%s12438_s27 + $0x4e0] ss:$16 sps:$4 sm:$0xff]  }
 0xb0f   : > { %7123 = vmatprep.subr.bf16.mxu0 %v11997_v37  ;;  %v12072_v37 = vld [vmem:[%s12438_s27 + $0x504] ss:$16 sps:$4 sm:$0xff]  }
 0xb12   : > { %7124 = vmatpush1.bf16.msra.mxu0 %v11995_v49  ;;  %v12075_v49 = vld [vmem:[%s12438_s27 + $0x524] ss:$16 sps:$4 sm:$0xff]  }
 0xb13   : > { %7134 = vmatprep.subr.bf16.mxu0 %v12000_v51  ;;  %v12143_v51 = vld [vmem:[%s12445_s20] sm:$0xff]  }
 0xb14   : > { %10702 = vmatpush3.bf16.msra.mxu1 %v12143_v51  ;;  %v12139_v51 = vld [vmem:[%s12438_s27 + $0x5e8] ss:$16 sps:$4 sm:$0xff]  }
 0xb15   : > { %7126 = vmatmul.mubr.bf16.vlgmr.msra.gmra.mrb[32].mxu0 %v13460_v57  ;;  %10703 = vmatprep.subr.bf16.mxu1 %v12144_v22  ;;  %v12259_v22 = vld [vmem:[%s12804_s2] sm:$0xff]  }
 0xb16   : > { %7135 = vmatpush1.bf16.msra.mxu0 %v11998_v52  ;;  %7166 = vmatprep.mubr.bf16.mxu0 %v13423_v3  ;;  %v12028_v3 = vld [vmem:[%s12438_s27 + $0x348] ss:$16 sps:$4 sm:$0xff]   ;;  %v12073_v52 = vld [vmem:[%s12438_s27 + $0x520] ss:$16 sps:$4 sm:$0xff]  }
 0xb17   : > { %7136 = vmatprep.subr.bf16.mxu0 %v12003_v58  ;;  %v12145_v58 = vld [vmem:[%s12445_s20 + $0x8] sm:$0xff]  }
 0xb18   : > { %10704 = vmatpush3.bf16.msra.mxu1 %v12145_v58  ;;  %v12263_v58 = vld [vmem:[%s12804_s2 + $0x20] sm:$0xff]  }
 0xb1a   : > { %7137 = vmatpush1.bf16.msra.mxu0 %v12001_v59  ;;  %v12146_v59 = vld [vmem:[%s12445_s20 + $0x50] sm:$0xff]  }
 0xb1b   : > { %7138 = vmatprep.subr.bf16.mxu0 %v12006_v60  ;;  %v12076_v60 = vld [vmem:[%s12438_s27 + $0x540] ss:$16 sps:$4 sm:$0xff]   ;;  %10705 = vmatprep.subr.bf16.mxu1 %v12146_v59 }
 0xb1c   : > { %v12154_v59 = vld [vmem:[%s12445_s20 + $0x70] sm:$0xff]  }
 0xb1e   : > { %7139 = vmatpush1.bf16.msra.mxu0 %v12004_v61  ;;  %v12081_v61 = vld [vmem:[%s12438_s27 + $0x564] ss:$16 sps:$4 sm:$0xff]  }
 0xb1f   : > { %7140 = vmatprep.subr.bf16.mxu0 %v12009_v62  ;;  %v12147_v62 = vld [vmem:[%s12445_s20 + $0x10] sm:$0xff]  }
 0xb20   : > { %10706 = vmatpush3.bf16.msra.mxu1 %v12147_v62  ;;  %v12156_v62 = vld [vmem:[%s12445_s20 + $0x78] sm:$0xff]  }
 0xb22   : > { %7141 = vmatpush1.bf16.msra.mxu0 %v12007_v63  ;;  %v12148_v63 = vld [vmem:[%s12445_s20 + $0x58] sm:$0xff]  }
 0xb23   : > { %7142 = vmatprep.subr.bf16.mxu0 %v12012_v38  ;;  %v12079_v38 = vld [vmem:[%s12438_s27 + $0x560] ss:$16 sps:$4 sm:$0xff]   ;;  %10707 = vmatprep.subr.bf16.mxu1 %v12148_v63  ;;  %v12157_v63 = vld [vmem:[%s12445_s20 + $0x38] sm:$0xff]  }
 0xb26   : > { %7143 = vmatpush1.bf16.msra.mxu0 %v12010_v11  ;;  %v12084_v11 = vld [vmem:[%s12438_s27 + $0x584] ss:$16 sps:$4 sm:$0xff]  }
 0xb27   : > { %7144 = vmatprep.subr.bf16.mxu0 %v12015_v32  ;;  %v12149_v32 = vld [vmem:[%s12445_s20 + $0x18] sm:$0xff]  }
 0xb28   : > { %10708 = vmatpush3.bf16.msra.mxu1 %v12149_v32  ;;  %v8930_v32 = vshrl.u32 %v12917_v24, 16  ;;  %v12159_v24 = vld [vmem:[%s12445_s20 + $0x88] sm:$0xff]  }
 0xb2a   : > { %7145 = vmatpush1.bf16.msra.mxu0 %v12013_v33  ;;  %v12150_v33 = vld [vmem:[%s12445_s20 + $0x60] sm:$0xff]  }
 0xb2b   : > { %7146 = vmatprep.subr.bf16.mxu0 %v12018_v1  ;;  %v12082_v1 = vld [vmem:[%s12438_s27 + $0x580] ss:$16 sps:$4 sm:$0xff]   ;;  %10709 = vmatprep.subr.bf16.mxu1 %v12150_v33 }
 0xb2e   : > { %7147 = vmatpush1.bf16.msra.mxu0 %v12016_v2  ;;  %v12087_v2 = vld [vmem:[%s12438_s27 + $0x5a4] ss:$16 sps:$4 sm:$0xff]  }
 0xb2f   : > { %7148 = vmatprep.subr.bf16.mxu0 %v12021_v4  ;;  %v12151_v4 = vld [vmem:[%s12445_s20 + $0x20] sm:$0xff]  }
 0xb30   : > { %10710 = vmatpush3.bf16.msra.mxu1 %v12151_v4 }
 0xb32   : > { %7149 = vmatpush1.bf16.msra.mxu0 %v12019_v6  ;;  %v12152_v6 = vld [vmem:[%s12445_s20 + $0x68] sm:$0xff]  }
 0xb33   : > { %7150 = vmatprep.subr.bf16.mxu0 %v12024_v7  ;;  %v12085_v7 = vld [vmem:[%s12438_s27 + $0x5a0] ss:$16 sps:$4 sm:$0xff]   ;;  %10711 = vmatprep.subr.bf16.mxu1 %v12152_v6 }
 0xb36   : > { %7151 = vmatpush1.bf16.msra.mxu0 %v12022_v8  ;;  %v12090_v8 = vld [vmem:[%s12438_s27 + $0x5c4] ss:$16 sps:$4 sm:$0xff]  }
 0xb37   : > { %7152 = vmatprep.subr.bf16.mxu0 %v12027_v42  ;;  %v12153_v42 = vld [vmem:[%s12445_s20 + $0x28] sm:$0xff]  }
 0xb38   : > { %10712 = vmatpush3.bf16.msra.mxu1 %v12153_v42 }
 0xb39   : > { %10713 = vmatprep.subr.bf16.mxu1 %v12154_v59 }
 0xb3a   : > { %7153 = vmatpush1.bf16.msra.mxu0 %v12025_v9  ;;  %v12088_v9 = vld [vmem:[%s12438_s27 + $0x5c0] ss:$16 sps:$4 sm:$0xff]  }
 0xb3b   : > { %7154 = vmatprep.subr.bf16.mxu0 %v12030_v10  ;;  %v12093_v10 = vld [vmem:[%s12438_s27 + $0x5e4] ss:$16 sps:$4 sm:$0xff]  }
 0xb3e   : > { %7155 = vmatpush1.bf16.msra.mxu0 %v12028_v3  ;;  %v12091_v3 = vld [vmem:[%s12438_s27 + $0x5e0] ss:$16 sps:$4 sm:$0xff]  }
 0xb3f   : > { %7156 = vmatprep.subr.bf16.mxu0 %v12033_v48  ;;  %v12096_v48 = vld [vmem:[%s12438_s27 + $0x40c] ss:$16 sps:$4 sm:$0xff]  }
 0xb42   : > { %7157 = vmatpush1.bf16.msra.mxu0 %v12031_v12  ;;  %v12094_v12 = vld [vmem:[%s12438_s27 + $0x408] ss:$16 sps:$4 sm:$0xff]  }
 0xb43   : > { %7158 = vmatprep.subr.bf16.mxu0 %v12036_v13  ;;  %v7245_v13 = vrot.slane %v13383_v39, 1  ;;  %v12262_v39 = vld [vmem:[%s12804_s2 + $0x18] sm:$0xff]  }
 0xb46   : > { %7159 = vmatpush1.bf16.msra.mxu0 %v12034_v15  ;;  %v12099_v15 = vld [vmem:[%s12438_s27 + $0x42c] ss:$16 sps:$4 sm:$0xff]  }
 0xb47   : > { %7160 = vmatprep.subr.bf16.mxu0 %v12039_v16  ;;  %v12097_v16 = vld [vmem:[%s12438_s27 + $0x428] ss:$16 sps:$4 sm:$0xff]  }
 0xb4a   : > { %7161 = vmatpush1.bf16.msra.mxu0 %v12037_v18  ;;  %v12102_v18 = vld [vmem:[%s12438_s27 + $0x44c] ss:$16 sps:$4 sm:$0xff]  }
 0xb4b   : > { %7162 = vmatprep.subr.bf16.mxu0 %v12042_v20  ;;  %v12100_v20 = vld [vmem:[%s12438_s27 + $0x448] ss:$16 sps:$4 sm:$0xff]  }
 0xb4e   : > { %7163 = vmatpush1.bf16.msra.mxu0 %v12040_v23  ;;  %v12105_v23 = vld [vmem:[%s12438_s27 + $0x46c] ss:$16 sps:$4 sm:$0xff]  }
 0xb4f   : > { %7164 = vmatprep.subr.bf16.mxu0 %v12045_v56  ;;  %v12103_v56 = vld [vmem:[%s12438_s27 + $0x468] ss:$16 sps:$4 sm:$0xff]  }
 0xb52   : > { %7165 = vmatpush1.bf16.msra.mxu0 %v12043_v27  ;;  %v12108_v27 = vld [vmem:[%s12438_s27 + $0x48c] ss:$16 sps:$4 sm:$0xff]  }
 0xb53   : > { %7569 = vmatprep.subr.bf16.mxu0 %v12048_v28  ;;  %v12111_v28 = vld [vmem:[%s12438_s27 + $0x4ac] ss:$16 sps:$4 sm:$0xff]  }
 0xb55   : > { %7167 = vmatmul.mubr.bf16.vlgmr.msra.gmra.mrb[36].mxu0 %v13460_v57  ;;  %v12078_v57 = vld [vmem:[%s12438_s27 + $0x544] ss:$16 sps:$4 sm:$0xff]  }
 0xb56   : > { %7570 = vmatpush1.bf16.msra.mxu0 %v12046_v29  ;;  %7601 = vmatprep.mubr.bf16.mxu0 %v7246_v35  ;;  %v12109_v29 = vld [vmem:[%s12438_s27 + $0x4a8] ss:$16 sps:$4 sm:$0xff]  }
 0xb57   : > { %7571 = vmatprep.subr.bf16.mxu0 %v12051_v34  ;;  %v12114_v34 = vld [vmem:[%s12438_s27 + $0x4cc] ss:$16 sps:$4 sm:$0xff]  }
 0xb5a   : > { %7572 = vmatpush1.bf16.msra.mxu0 %v12049_v36  ;;  %v12117_v36 = vld [vmem:[%s12438_s27 + $0x4ec] ss:$16 sps:$4 sm:$0xff]  }
 0xb5b   : > { %7573 = vmatprep.subr.bf16.mxu0 %v12054_v19  ;;  %v12115_v19 = vld [vmem:[%s12438_s27 + $0x4e8] ss:$16 sps:$4 sm:$0xff]  }
 0xb5e   : > { %7574 = vmatpush1.bf16.msra.mxu0 %v12052_v14  ;;  %v12120_v14 = vld [vmem:[%s12438_s27 + $0x50c] ss:$16 sps:$4 sm:$0xff]  }
 0xb5f   : > { %7575 = vmatprep.subr.bf16.mxu0 %v12057_v17  ;;  %v12118_v17 = vld [vmem:[%s12438_s27 + $0x508] ss:$16 sps:$4 sm:$0xff]  }
 0xb62   : > { %7576 = vmatpush1.bf16.msra.mxu0 %v12055_v41  ;;  %v12123_v41 = vld [vmem:[%s12438_s27 + $0x52c] ss:$16 sps:$4 sm:$0xff]  }
 0xb63   : > { %7577 = vmatprep.subr.bf16.mxu0 %v12060_v30  ;;  %v12121_v30 = vld [vmem:[%s12438_s27 + $0x528] ss:$16 sps:$4 sm:$0xff]  }
 0xb66   : > { %7578 = vmatpush1.bf16.msra.mxu0 %v12058_v31  ;;  %v12126_v31 = vld [vmem:[%s12438_s27 + $0x54c] ss:$16 sps:$4 sm:$0xff]  }
 0xb67   : > { %7579 = vmatprep.subr.bf16.mxu0 %v12063_v44  ;;  %v12124_v44 = vld [vmem:[%s12438_s27 + $0x548] ss:$16 sps:$4 sm:$0xff]  }
 0xb6a   : > { %7580 = vmatpush1.bf16.msra.mxu0 %v12061_v40  ;;  %v12129_v40 = vld [vmem:[%s12438_s27 + $0x56c] ss:$16 sps:$4 sm:$0xff]  }
 0xb6b   : > { %7581 = vmatprep.subr.bf16.mxu0 %v12066_v43  ;;  %v12127_v43 = vld [vmem:[%s12438_s27 + $0x568] ss:$16 sps:$4 sm:$0xff]  }
 0xb6e   : > { %7582 = vmatpush1.bf16.msra.mxu0 %v12064_v45  ;;  %v12132_v45 = vld [vmem:[%s12438_s27 + $0x58c] ss:$16 sps:$4 sm:$0xff]  }
 0xb6f   : > { %7583 = vmatprep.subr.bf16.mxu0 %v12069_v46  ;;  %v12130_v46 = vld [vmem:[%s12438_s27 + $0x588] ss:$16 sps:$4 sm:$0xff]  }
 0xb72   : > { %7584 = vmatpush1.bf16.msra.mxu0 %v12067_v47  ;;  %v12135_v47 = vld [vmem:[%s12438_s27 + $0x5ac] ss:$16 sps:$4 sm:$0xff]  }
 0xb73   : > { %7585 = vmatprep.subr.bf16.mxu0 %v12072_v37  ;;  %v12133_v37 = vld [vmem:[%s12438_s27 + $0x5a8] ss:$16 sps:$4 sm:$0xff]  }
 0xb76   : > { %7586 = vmatpush1.bf16.msra.mxu0 %v12070_v5  ;;  %v12138_v5 = vld [vmem:[%s12438_s27 + $0x5cc] ss:$16 sps:$4 sm:$0xff]  }
 0xb77   : > { %7587 = vmatprep.subr.bf16.mxu0 %v12075_v49  ;;  %v12136_v49 = vld [vmem:[%s12438_s27 + $0x5c8] ss:$16 sps:$4 sm:$0xff]  }
 0xb7a   : > { %7588 = vmatpush1.bf16.msra.mxu0 %v12073_v52  ;;  %v12260_v52 = vld [vmem:[%s12804_s2 + $0x8] sm:$0xff]  }
 0xb7b   : > { %7589 = vmatprep.subr.bf16.mxu0 %v12078_v57  ;;  %v12261_v57 = vld [vmem:[%s12804_s2 + $0x10] sm:$0xff]  }
 0xb7e   : > { %7590 = vmatpush1.bf16.msra.mxu0 %v12076_v60  ;;  %v12155_v60 = vld [vmem:[%s12445_s20 + $0x30] sm:$0xff]  }
 0xb7f   : > { %7591 = vmatprep.subr.bf16.mxu0 %v12081_v61  ;;  %v12264_v61 = vld [vmem:[%s12804_s2 + $0x28] sm:$0xff]   ;;  %10714 = vmatpush3.bf16.msra.mxu1 %v12155_v60 }
 0xb80   : > { %10715 = vmatprep.subr.bf16.mxu1 %v12156_v62  ;;  %v12188_v62 = vld [vmem:[%s12445_s20 + $0x170] sm:$0xff]  }
 0xb82   : > { %7592 = vmatpush1.bf16.msra.mxu0 %v12079_v38  ;;  %v12265_v38 = vld [vmem:[%s12804_s2 + $0x30] sm:$0xff]  }
 0xb83   : > { %7593 = vmatprep.subr.bf16.mxu0 %v12084_v11  ;;  %10716 = vmatpush3.bf16.msra.mxu1 %v12157_v63  ;;  %v12266_v11 = vld [vmem:[%s12804_s2 + $0x38] sm:$0xff]  }
 0xb84   : > { %7930 = vmatprep.subr.bf16.mxu1 %v12287_v55  ;;  %v12189_v63 = vld [vmem:[%s12445_s20 + $0x178] sm:$0xff]  }
 0xb86   : > { %7594 = vmatpush1.bf16.msra.mxu0 %v12082_v1 }
 0xb87   : > { %7595 = vmatprep.subr.bf16.mxu0 %v12087_v2 }
 0xb8a   : > { %7596 = vmatpush1.bf16.msra.mxu0 %v12085_v7 }
 0xb8b   : > { %7597 = vmatprep.subr.bf16.mxu0 %v12090_v8 }
 0xb8e   : > { %7598 = vmatpush1.bf16.msra.mxu0 %v12088_v9 }
 0xb8f   : > { %7599 = vmatprep.subr.bf16.mxu0 %v12093_v10  ;;  %v12158_v10 = vld [vmem:[%s12445_s20 + $0x80] sm:$0xff]  }
 0xb92   : > { %7600 = vmatpush1.bf16.msra.mxu0 %v12091_v3 }
 0xb93   : > { %7610 = vmatprep.subr.bf16.mxu0 %v12096_v48  ;;  %v12162_v48 = vld [vmem:[%s12445_s20 + $0xa0] sm:$0xff]  }
 0xb95   : > { %7602 = vmatmul.mubr.bf16.vlgmr.msra.gmra.mrb[32].mxu0 %v7245_v13 }
 0xb96   : > { %7611 = vmatpush1.bf16.msra.mxu0 %v12094_v12  ;;  %7642 = vmatprep.mubr.bf16.mxu0 %v7246_v35  ;;  %v12112_v35 = vld [vmem:[%s12438_s27 + $0x4c8] ss:$16 sps:$4 sm:$0xff]  }
 0xb97   : > { %7612 = vmatprep.subr.bf16.mxu0 %v12099_v15  ;;  %v12163_v12 = vld [vmem:[%s12445_s20 + $0xa8] sm:$0xff]   ;;  %v12165_v15 = vld [vmem:[%s12445_s20 + $0xb8] sm:$0xff]  }
 0xb9a   : > { %7613 = vmatpush1.bf16.msra.mxu0 %v12097_v16  ;;  %v12166_v16 = vld [vmem:[%s12445_s20 + $0xc0] sm:$0xff]  }
 0xb9b   : > { %7614 = vmatprep.subr.bf16.mxu0 %v12102_v18  ;;  %v12167_v18 = vld [vmem:[%s12445_s20 + $0xc8] sm:$0xff]  }
 0xb9e   : > { %7615 = vmatpush1.bf16.msra.mxu0 %v12100_v20  ;;  %v12168_v20 = vld [vmem:[%s12445_s20 + $0xd0] sm:$0xff]  }
 0xb9f   : > { %7616 = vmatprep.subr.bf16.mxu0 %v12105_v23  ;;  %v12169_v23 = vld [vmem:[%s12445_s20 + $0xd8] sm:$0xff]  }
 0xba2   : > { %7617 = vmatpush1.bf16.msra.mxu0 %v12103_v56  ;;  %v12170_v56 = vld [vmem:[%s12445_s20 + $0x120] sm:$0xff]  }
 0xba3   : > { %7618 = vmatprep.subr.bf16.mxu0 %v12108_v27 }
 0xba6   : > { %7619 = vmatpush1.bf16.msra.mxu0 %v12106_v21 }
 0xba7   : > { %7620 = vmatprep.subr.bf16.mxu0 %v12111_v28 }
 0xbaa   : > { %7621 = vmatpush1.bf16.msra.mxu0 %v12109_v29 }
 0xbab   : > { %7622 = vmatprep.subr.bf16.mxu0 %v12114_v34 }
 0xbae   : > { %7623 = vmatpush1.bf16.msra.mxu0 %v12112_v35 }
 0xbaf   : > { %7624 = vmatprep.subr.bf16.mxu0 %v12117_v36 }
 0xbb2   : > { %7625 = vmatpush1.bf16.msra.mxu0 %v12115_v19 }
 0xbb3   : > { %7626 = vmatprep.subr.bf16.mxu0 %v12120_v14 }
 0xbb6   : > { %7627 = vmatpush1.bf16.msra.mxu0 %v12118_v17  ;;  %v12171_v17 = vld [vmem:[%s12445_s20 + $0xe0] sm:$0xff]  }
 0xbb7   : > { %7628 = vmatprep.subr.bf16.mxu0 %v12123_v41 }
 0xbba   : > { %7629 = vmatpush1.bf16.msra.mxu0 %v12121_v30  ;;  %v12172_v30 = vld [vmem:[%s12445_s20 + $0x128] sm:$0xff]  }
 0xbbb   : > { %7630 = vmatprep.subr.bf16.mxu0 %v12126_v31  ;;  %v12174_v31 = vld [vmem:[%s12445_s20 + $0x130] sm:$0xff]  }
 0xbbe   : > { %7631 = vmatpush1.bf16.msra.mxu0 %v12124_v44  ;;  %v12175_v44 = vld [vmem:[%s12445_s20 + $0xf0] sm:$0xff]  }
 0xbbf   : > { %7632 = vmatprep.subr.bf16.mxu0 %v12129_v40  ;;  %v12176_v40 = vld [vmem:[%s12445_s20 + $0x138] sm:$0xff]  }
 0xbc2   : > { %7633 = vmatpush1.bf16.msra.mxu0 %v12127_v43  ;;  %v12177_v43 = vld [vmem:[%s12445_s20 + $0xf8] sm:$0xff]  }
 0xbc3   : > { %7634 = vmatprep.subr.bf16.mxu0 %v12132_v45  ;;  %v12178_v45 = vld [vmem:[%s12445_s20 + $0x140] sm:$0xff]  }
 0xbc6   : > { %7635 = vmatpush1.bf16.msra.mxu0 %v12130_v46  ;;  %v12179_v46 = vld [vmem:[%s12445_s20 + $0x100] sm:$0xff]  }
 0xbc7   : > { %7636 = vmatprep.subr.bf16.mxu0 %v12135_v47  ;;  %v12180_v47 = vld [vmem:[%s12445_s20 + $0x148] sm:$0xff]  }
 0xbca   : > { %7637 = vmatpush1.bf16.msra.mxu0 %v12133_v37  ;;  %v12181_v37 = vld [vmem:[%s12445_s20 + $0x108] sm:$0xff]  }
 0xbcb   : > { %7638 = vmatprep.subr.bf16.mxu0 %v12138_v5  ;;  %v12182_v5 = vld [vmem:[%s12445_s20 + $0x150] sm:$0xff]  }
 0xbce   : > { %7639 = vmatpush1.bf16.msra.mxu0 %v12136_v49  ;;  %v12183_v49 = vld [vmem:[%s12445_s20 + $0x110] sm:$0xff]  }
 0xbcf   : > { %7640 = vmatprep.subr.bf16.mxu0 %v12141_v50  ;;  %v12184_v50 = vld [vmem:[%s12445_s20 + $0x158] sm:$0xff]  }
 0xbd2   : > { %7641 = vmatpush1.bf16.msra.mxu0 %v12139_v51 }
 0xbd3   : > { %10957 = vmatprep.subr.bf16.mxu0 %v12285_v0 }
 0xbd5   : > { %7643 = vmatmul.mubr.bf16.vlgmr.msra.gmra.mrb[36].mxu0 %v7245_v13  ;;  %v12164_v13 = vld [vmem:[%s12445_s20 + $0xb0] sm:$0xff]  }
 0xbd6   : > { %10958 = vmatpush3.bf16.msra.mxu0 %v12259_v22  ;;  %10973 = vmatprep.mubr.msk.bf16.mxu0 %vm12286_vm0, %v12285_v0 }
 0xbd7   : > { %10959 = vmatprep.subr.bf16.mxu0 %v12285_v0 }
 0xbda   : > { %10960 = vmatpush3.bf16.msra.mxu0 %v12260_v52 }
 0xbdb   : > { %10961 = vmatprep.subr.bf16.mxu0 %v12285_v0 }
 0xbde   : > { %10962 = vmatpush3.bf16.msra.mxu0 %v12261_v57  ;;  %v12185_v57 = vld [vmem:[%s12445_s20 + $0x118] sm:$0xff]  }
 0xbdf   : > { %10963 = vmatprep.subr.bf16.mxu0 %v12285_v0 }
 0xbe2   : > { %10964 = vmatpush3.bf16.msra.mxu0 %v12262_v39 }
 0xbe3   : > { %10965 = vmatprep.subr.bf16.mxu0 %v12285_v0 }
 0xbe6   : > { %10966 = vmatpush3.bf16.msra.mxu0 %v12263_v58  ;;  %v12186_v58 = vld [vmem:[%s12445_s20 + $0x160] sm:$0xff]  }
 0xbe7   : > { %10967 = vmatprep.subr.bf16.mxu0 %v12285_v0 }
 0xbea   : > { %10968 = vmatpush3.bf16.msra.mxu0 %v12264_v61  ;;  %v12187_v61 = vld [vmem:[%s12445_s20 + $0x168] sm:$0xff]  }
 0xbeb   : > { %10969 = vmatprep.subr.bf16.mxu0 %v12285_v0 }
 0xbee   : > { %10970 = vmatpush3.bf16.msra.mxu0 %v12265_v38  ;;  %v12190_v38 = vld [vmem:[%s12445_s20 + $0x180] sm:$0xff]  }
 0xbef   : > { %10971 = vmatprep.subr.bf16.mxu0 %v12285_v0 }
 0xbf2   : > { %10972 = vmatpush3.bf16.msra.mxu0 %v12266_v11  ;;  %v12191_v11 = vld [vmem:[%s12445_s20 + $0x188] sm:$0xff]  }
 0xbf5   : > { %10974 = vmatmul.mubr.bf16.vlgmr.msra.gmra.mrb[40].mxu0 %v8930_v32  ;;  %v12192_v32 = vld [vmem:[%s12445_s20 + $0x190] sm:$0xff]  }
 0xc68   : > { %v7603_v33 = vpop.f32.mrb[32].mxu0 }
 0xc69   : > { %v11018_v1 = vadd.f32 %v7603_v33, %v12928_v25  ;;  %v7605_v2 = vpop.f32.mrb[33].mxu0  ;;  %v12160_v25 = vld [vmem:[%s12445_s20 + $0x90] sm:$0xff]   ;;  %v12193_v33 = vld [vmem:[%s12445_s20 + $0x198] sm:$0xff]  }
 0xc6a   : > { %v11019_v4 = vadd.f32 %v7605_v2, %v12931_v26  ;;  %v7607_v6 = vpop.f32.mrb[34].mxu0  ;;  %v12161_v26 = vld [vmem:[%s12445_s20 + $0x98] sm:$0xff]   ;;  %v12195_v2 = vld [vmem:[%s12445_s20 + $0x1a8] sm:$0xff]  }
 0xc6b   : > { %v7655_v7 = vmax.f32 %v11018_v1, 0.0  ;;  %v7608_v8 = vpop.f32.mrb[35].mxu0  ;;  %v12194_v1 = vld [vmem:[%s12445_s20 + $0x1a0] sm:$0xff]   ;;  %v12197_v6 = vld [vmem:[%s12445_s20 + $0x1b8] sm:$0xff]  }
 0xc6c   : > { %v7656_v42 = vmax.f32 %v11019_v4, 0.0  ;;  %v12196_v4 = vld [vmem:[%s12445_s20 + $0x1b0] sm:$0xff]   ;;  %v12199_v8 = vld [vmem:[%s12445_s20 + $0x1c0] sm:$0xff]  }
 0xc6d   : > { %v13610_v3 = vpack.c.bf16 %v7655_v7, %v7655_v7  ;;  %v12198_v7 = vld [vmem:[%s12445_s20 + $0x200] sm:$0xff]  }
 0xc6e   : > { %v13607_v9 = vpack.c.bf16 %v7656_v42, %v7656_v42 }
 0xc6f   : > { %v8028_v59 = vshrl.u32 %v13610_v3, 16 }
 0xc70   : > { %7922 = vmatprep.mubr.bf16.mxu1 %v13607_v9 }
 0xc71   : > { %7923 = vmatmul.mubr.bf16.vlgmr.msra.gmra.mrb[36].mxu1 %v13610_v3 }
 0xc72   : > { %7931 = vmatpush1.bf16.msra.mxu1 %v12158_v10  ;;  %v12200_v10 = vld [vmem:[%s12445_s20 + $0x208] sm:$0xff]  }
 0xc73   : > { %7932 = vmatprep.subr.bf16.mxu1 %v12287_v55 }
 0xc76   : > { %7933 = vmatpush1.bf16.msra.mxu1 %v12159_v24  ;;  %v8354_v24 = vrot.slane %v13607_v9, 1 }
 0xc77   : > { %7934 = vmatprep.subr.bf16.mxu1 %v12287_v55 }
 0xc7a   : > { %7935 = vmatpush1.bf16.msra.mxu1 %v12160_v25  ;;  %v12201_v25 = vld [vmem:[%s12445_s20 + $0x1c8] sm:$0xff]  }
 0xc7b   : > { %7936 = vmatprep.subr.bf16.mxu1 %v12287_v55 }
 0xc7e   : > { %7937 = vmatpush1.bf16.msra.mxu1 %v12161_v26  ;;  %v12202_v26 = vld [vmem:[%s12445_s20 + $0x210] sm:$0xff]  }
 0xc7f   : > { %7938 = vmatprep.subr.bf16.mxu1 %v12287_v55 }
 0xc82   : > { %7939 = vmatpush1.bf16.msra.mxu1 %v12162_v48  ;;  %v12203_v48 = vld [vmem:[%s12445_s20 + $0x1d0] sm:$0xff]  }
 0xc83   : > { %7940 = vmatprep.subr.bf16.mxu1 %v12287_v55 }
 0xc86   : > { %7941 = vmatpush1.bf16.msra.mxu1 %v12163_v12  ;;  %v12204_v12 = vld [vmem:[%s12445_s20 + $0x218] sm:$0xff]  }
 0xc87   : > { %7942 = vmatprep.subr.bf16.mxu1 %v12287_v55 }
 0xc8a   : > { %7943 = vmatpush1.bf16.msra.mxu1 %v12164_v13  ;;  %v12205_v13 = vld [vmem:[%s12445_s20 + $0x1d8] sm:$0xff]  }
 0xc8b   : > { %7944 = vmatprep.subr.bf16.mxu1 %v12287_v55 }
 0xc8e   : > { %7945 = vmatpush1.bf16.msra.mxu1 %v12165_v15  ;;  %v12206_v15 = vld [vmem:[%s12445_s20 + $0x220] sm:$0xff]  }
 0xc8f   : > { %7946 = vmatprep.subr.bf16.mxu1 %v12287_v55 }
 0xc92   : > { %7947 = vmatpush1.bf16.msra.mxu1 %v12166_v16  ;;  %v12207_v16 = vld [vmem:[%s12445_s20 + $0x1e0] sm:$0xff]  }
 0xc93   : > { %7948 = vmatprep.subr.bf16.mxu1 %v12287_v55 }
 0xc96   : > { %7949 = vmatpush1.bf16.msra.mxu1 %v12167_v18  ;;  %v12208_v18 = vld [vmem:[%s12445_s20 + $0x228] sm:$0xff]  }
 0xc97   : > { %7950 = vmatprep.subr.bf16.mxu1 %v12287_v55 }
 0xc9a   : > { %7951 = vmatpush1.bf16.msra.mxu1 %v12168_v20  ;;  %v12209_v20 = vld [vmem:[%s12445_s20 + $0x1e8] sm:$0xff]  }
 0xc9b   : > { %7952 = vmatprep.subr.bf16.mxu1 %v12287_v55 }
 0xc9e   : > { %7953 = vmatpush1.bf16.msra.mxu1 %v12169_v23  ;;  %v12210_v23 = vld [vmem:[%s12445_s20 + $0x230] sm:$0xff]  }
 0xc9f   : > { %10723 = vmatprep.subr.bf16.mxu1 %v12170_v56  ;;  %v12211_v56 = vld [vmem:[%s12445_s20 + $0x1f0] sm:$0xff]  }
 0xca8   : > { %v7644_v27 = vpop.f32.mrb[36].mxu0 }
 0xca9   : > { %v11020_v21 = vadd.f32 %v7644_v27, %v12967_v53  ;;  %v7646_v28 = vpop.f32.mrb[37].mxu0  ;;  %v8031_v53 = vshrl.u32 %v13607_v9, 16  ;;  %v12212_v27 = vld [vmem:[%s12445_s20 + $0x238] sm:$0xff]   ;;  %v12234_v9 = vld [vmem:[%s12445_s20 + $0x300] sm:$0xff]  }
 0xcaa   : > { %v11021_v29 = vadd.f32 %v7646_v28, %v12969_v54  ;;  %v7648_v34 = vpop.f32.mrb[38].mxu0  ;;  %v12173_v54 = vld [vmem:[%s12445_s20 + $0xe8] sm:$0xff]   ;;  %v12214_v28 = vld [vmem:[%s12445_s20 + $0x240] sm:$0xff]  }
 0xcab   : > { %v7657_v35 = vmax.f32 %v11020_v21, 0.0  ;;  %v7649_v36 = vpop.f32.mrb[39].mxu0  ;;  %v12213_v21 = vld [vmem:[%s12445_s20 + $0x1f8] sm:$0xff]  }
 0xcac   : > { %v7658_v19 = vmax.f32 %v11021_v29, 0.0  ;;  %v8353_v29 = vrot.slane %v13610_v3, 1  ;;  %v12216_v36 = vld [vmem:[%s12445_s20 + $0x250] sm:$0xff]   ;;  %v12245_v3 = vld [vmem:[%s12445_s20 + $0x338] sm:$0xff]  }
 0xcad   : > { %v13642_v41 = vpack.c.bf16 %v7657_v35, %v7657_v35  ;;  %v12215_v35 = vld [vmem:[%s12445_s20 + $0x248] sm:$0xff]  }
 0xcae   : > { %v13639_v14 = vpack.c.bf16 %v7658_v19, %v7658_v19  ;;  %v12217_v19 = vld [vmem:[%s12445_s20 + $0x258] sm:$0xff]  }
 0xcaf   : > { %v8034_v42 = vshrl.u32 %v13642_v41, 16 }
 0xcb0   : > { %10454 = vmatprep.mubr.msk.bf16.mxu1 %vm3890_vm8, %v13639_v14  ;;  %v8036_v60 = vshrl.u32 %v13639_v14, 16  ;;  %v8356_v34 = vrot.slane %v13639_v14, 1  ;;  %v12246_v14 = vld [vmem:[%s12445_s20 + $0x340] sm:$0xff]  }
 0xcb1   : > { %7963 = vmatmul.mubr.bf16.vlgmr.msra.gmra.mrb[40].mxu1 %v13642_v41 }
 0xcb2   : > { %10724 = vmatpush3.bf16.msra.mxu1 %v12171_v17  ;;  %8244 = vmatprep.mubr.bf16.mxu1 %v8031_v53  ;;  %v12218_v17 = vld [vmem:[%s12445_s20 + $0x260] sm:$0xff]  }
 0xcb3   : > { %10725 = vmatprep.subr.bf16.mxu1 %v12172_v30  ;;  %v12219_v30 = vld [vmem:[%s12445_s20 + $0x268] sm:$0xff]  }
 0xcb6   : > { %10726 = vmatpush3.bf16.msra.mxu1 %v12173_v54  ;;  %v12220_v54 = vld [vmem:[%s12445_s20 + $0x270] sm:$0xff]  }
 0xcb7   : > { %10727 = vmatprep.subr.bf16.mxu1 %v12174_v31  ;;  %v12221_v31 = vld [vmem:[%s12445_s20 + $0x278] sm:$0xff]  }
 0xcba   : > { %10728 = vmatpush3.bf16.msra.mxu1 %v12175_v44  ;;  %v12222_v44 = vld [vmem:[%s12445_s20 + $0x280] sm:$0xff]  }
 0xcbb   : > { %10729 = vmatprep.subr.bf16.mxu1 %v12176_v40  ;;  %v12223_v40 = vld [vmem:[%s12445_s20 + $0x288] sm:$0xff]  }
 0xcbe   : > { %10730 = vmatpush3.bf16.msra.mxu1 %v12177_v43 }
 0xcbf   : > { %10731 = vmatprep.subr.bf16.mxu1 %v12178_v45 }
 0xcc2   : > { %10732 = vmatpush3.bf16.msra.mxu1 %v12179_v46 }
 0xcc3   : > { %10733 = vmatprep.subr.bf16.mxu1 %v12180_v47 }
 0xcc6   : > { %10734 = vmatpush3.bf16.msra.mxu1 %v12181_v37  ;;  %v12224_v37 = vld [vmem:[%s12445_s20 + $0x290] sm:$0xff]  }
 0xcc7   : > { %10735 = vmatprep.subr.bf16.mxu1 %v12182_v5 }
 0xcc8   : > { %v13663_v51 = vpop.f32.mrb[40].mxu0 }
 0xcc9   : > { %v10975_v22 = vpop.f32.mrb[41].mxu0 }
 0xcca   : > { %10736 = vmatpush3.bf16.msra.mxu1 %v12183_v49  ;;  %v8970_v52 = vpop.f32.mrb[42].mxu0  ;;  %v12225_v49 = vld [vmem:[%s12445_s20 + $0x298] sm:$0xff]   ;;  %v12227_v22 = vld [vmem:[%s12445_s20 + $0x2a0] sm:$0xff]  }
 0xccb   : > { %v10976_v39 = vpop.f32.mrb[43].mxu0  ;;  %10737 = vmatprep.subr.bf16.mxu1 %v12184_v50  ;;  %v12226_v50 = vld [vmem:[%s12445_s20 + $0x2e0] sm:$0xff]   ;;  %v8355_v52 = vrot.slane %v13642_v41, 1 }
 0xccc   : > { %v8669_v39 = vrot.slane %v8031_v53, 1  ;;  %v12235_v53 = vld [vmem:[%s12445_s20 + $0x2c0] sm:$0xff]  }
 0xcce   : > { %10738 = vmatpush3.bf16.msra.mxu1 %v12185_v57  ;;  %v12228_v57 = vld [vmem:[%s12445_s20 + $0x2e8] sm:$0xff]  }
 0xccf   : > { %8252 = vmatprep.subr.bf16.mxu1 %v12287_v55 }
 0xcd1   : > { %8245 = vmatmul.mubr.bf16.vlgmr.msra.gmra.mrb[44].mxu1 %v8028_v59 }
 0xcd2   : > { %8253 = vmatpush1.bf16.msra.mxu1 %v12186_v58  ;;  %10483 = vmatprep.mubr.msk.bf16.mxu1 %vm3890_vm8, %v8036_v60  ;;  %v12229_v58 = vld [vmem:[%s12445_s20 + $0x2a8] sm:$0xff]  }
 0xcd3   : > { %8254 = vmatprep.subr.bf16.mxu1 %v12287_v55 }
 0xcd6   : > { %8255 = vmatpush1.bf16.msra.mxu1 %v12187_v61  ;;  %v12230_v61 = vld [vmem:[%s12445_s20 + $0x2f0] sm:$0xff]  }
 0xcd7   : > { %8256 = vmatprep.subr.bf16.mxu1 %v12287_v55 }
 0xcda   : > { %8257 = vmatpush1.bf16.msra.mxu1 %v12188_v62  ;;  %v12231_v62 = vld [vmem:[%s12445_s20 + $0x2b0] sm:$0xff]  }
 0xcdb   : > { %8258 = vmatprep.subr.bf16.mxu1 %v12287_v55 }
 0xcde   : > { %8259 = vmatpush1.bf16.msra.mxu1 %v12189_v63  ;;  %v12232_v63 = vld [vmem:[%s12445_s20 + $0x2f8] sm:$0xff]  }
 0xcdf   : > { %8260 = vmatprep.subr.bf16.mxu1 %v12287_v55 }
 0xce2   : > { %8261 = vmatpush1.bf16.msra.mxu1 %v12190_v38  ;;  %v12233_v38 = vld [vmem:[%s12445_s20 + $0x2b8] sm:$0xff]  }
 0xce3   : > { %8262 = vmatprep.subr.bf16.mxu1 %v12287_v55 }
 0xce6   : > { %8263 = vmatpush1.bf16.msra.mxu1 %v12191_v11  ;;  %v12236_v11 = vld [vmem:[%s12445_s20 + $0x308] sm:$0xff]  }
 0xce7   : > { %8264 = vmatprep.subr.bf16.mxu1 %v12287_v55 }
 0xcea   : > { %8265 = vmatpush1.bf16.msra.mxu1 %v12192_v32  ;;  %v12237_v32 = vld [vmem:[%s12445_s20 + $0x2c8] sm:$0xff]  }
 0xceb   : > { %8266 = vmatprep.subr.bf16.mxu1 %v12287_v55 }
 0xcee   : > { %8267 = vmatpush1.bf16.msra.mxu1 %v12193_v33  ;;  %v12238_v33 = vld [vmem:[%s12445_s20 + $0x310] sm:$0xff]  }
 0xcef   : > { %8268 = vmatprep.subr.bf16.mxu1 %v12287_v55 }
 0xcf2   : > { %8269 = vmatpush1.bf16.msra.mxu1 %v12194_v1  ;;  %v12239_v1 = vld [vmem:[%s12445_s20 + $0x2d0] sm:$0xff]  }
 0xcf3   : > { %8270 = vmatprep.subr.bf16.mxu1 %v12287_v55 }
 0xcf6   : > { %8271 = vmatpush1.bf16.msra.mxu1 %v12195_v2  ;;  %v12240_v2 = vld [vmem:[%s12445_s20 + $0x318] sm:$0xff]  }
 0xcf7   : > { %8272 = vmatprep.subr.bf16.mxu1 %v12287_v55 }
 0xcfa   : > { %8273 = vmatpush1.bf16.msra.mxu1 %v12196_v4  ;;  %v12241_v4 = vld [vmem:[%s12445_s20 + $0x2d8] sm:$0xff]  }
 0xcfb   : > { %8274 = vmatprep.subr.bf16.mxu1 %v12287_v55 }
 0xcfe   : > { %8275 = vmatpush1.bf16.msra.mxu1 %v12197_v6  ;;  %v12242_v6 = vld [vmem:[%s12445_s20 + $0x320] sm:$0xff]  }
 0xcff   : > { %10745 = vmatprep.subr.bf16.mxu1 %v12198_v7  ;;  %v8668_v7 = vrot.slane %v8028_v59, 1  ;;  %v12247_v59 = vld [vmem:[%s12445_s20 + $0x348] sm:$0xff]  }
 0xd01   : > { %8285 = vmatmul.mubr.bf16.vlgmr.msra.gmra.mrb[40].mxu1 %v8034_v42 }
 0xd02   : > { %10746 = vmatpush3.bf16.msra.mxu1 %v12199_v8  ;;  %8563 = vmatprep.mubr.bf16.mxu1 %v8354_v24  ;;  %v8671_v8 = vrot.slane %v8036_v60, 1  ;;  %v12244_v24 = vld [vmem:[%s12445_s20 + $0x330] sm:$0xff]  }
 0xd03   : > { %10747 = vmatprep.subr.bf16.mxu1 %v12200_v10  ;;  %v12243_v10 = vld [vmem:[%s12445_s20 + $0x328] sm:$0xff]   ;;  %v12248_v60 = vld [vmem:[%s12445_s20 + $0x350] sm:$0xff]  }
 0xd06   : > { %10748 = vmatpush3.bf16.msra.mxu1 %v12201_v25  ;;  %v12249_v25 = vld [vmem:[%s12445_s20 + $0x358] sm:$0xff]  }
 0xd07   : > { %10749 = vmatprep.subr.bf16.mxu1 %v12202_v26  ;;  %v12250_v26 = vld [vmem:[%s12445_s20 + $0x360] sm:$0xff]  }
 0xd0a   : > { %10750 = vmatpush3.bf16.msra.mxu1 %v12203_v48  ;;  %v12251_v48 = vld [vmem:[%s12445_s20 + $0x368] sm:$0xff]  }
 0xd0b   : > { %10751 = vmatprep.subr.bf16.mxu1 %v12204_v12  ;;  %v12252_v12 = vld [vmem:[%s12445_s20 + $0x370] sm:$0xff]  }
 0xd0e   : > { %10752 = vmatpush3.bf16.msra.mxu1 %v12205_v13  ;;  %v12253_v13 = vld [vmem:[%s12445_s20 + $0x378] sm:$0xff]  }
 0xd0f   : > { %10753 = vmatprep.subr.bf16.mxu1 %v12206_v15  ;;  %v8670_v15 = vrot.slane %v8034_v42, 1 }
 0xd12   : > { %10754 = vmatpush3.bf16.msra.mxu1 %v12207_v16  ;;  %v12267_v16 = vld [vmem:[%s13184_s0] sm:$0xff]  }
 0xd13   : > { %10755 = vmatprep.subr.bf16.mxu1 %v12208_v18 }
 0xd16   : > { %10756 = vmatpush3.bf16.msra.mxu1 %v12209_v20 }
 0xd17   : > { %10757 = vmatprep.subr.bf16.mxu1 %v12210_v23 }
 0xd1a   : > { %10758 = vmatpush3.bf16.msra.mxu1 %v12211_v56  ;;  %v12269_v56 = vld [vmem:[%s13184_s0 + $0x8] sm:$0xff]  }
 0xd1b   : > { %10759 = vmatprep.subr.bf16.mxu1 %v12212_v27 }
 0xd1e   : > { %10760 = vmatpush3.bf16.msra.mxu1 %v12213_v21 }
 0xd1f   : > { %8571 = vmatprep.subr.bf16.mxu1 %v12287_v55 }
 0xd21   : > { %8564 = vmatmul.mubr.bf16.vlgmr.msra.gmra.mrb[48].mxu1 %v8353_v29  ;;  %v12271_v29 = vld [vmem:[%s13184_s0 + $0x18] sm:$0xff]  }
 0xd22   : > { %8572 = vmatpush1.bf16.msra.mxu1 %v12214_v28  ;;  %10512 = vmatprep.mubr.msk.bf16.mxu1 %vm3890_vm8, %v8356_v34  ;;  %v12270_v28 = vld [vmem:[%s13184_s0 + $0x10] sm:$0xff]   ;;  %v12272_v34 = vld [vmem:[%s13184_s0 + $0x20] sm:$0xff]  }
 0xd23   : > { %8573 = vmatprep.subr.bf16.mxu1 %v12287_v55 }
 0xd26   : > { %8574 = vmatpush1.bf16.msra.mxu1 %v12215_v35  ;;  %v12273_v35 = vld [vmem:[%s13184_s0 + $0x28] sm:$0xff]  }
 0xd27   : > { %8575 = vmatprep.subr.bf16.mxu1 %v12287_v55 }
 0xd2a   : > { %8576 = vmatpush1.bf16.msra.mxu1 %v12216_v36  ;;  %v12274_v36 = vld [vmem:[%s13184_s0 + $0x30] sm:$0xff]  }
 0xd2b   : > { %8577 = vmatprep.subr.bf16.mxu1 %v12287_v55 }
 0xd2e   : > { %8578 = vmatpush1.bf16.msra.mxu1 %v12217_v19  ;;  %v12275_v19 = vld [vmem:[%s13184_s0 + $0x38] sm:$0xff]  }
 0xd2f   : > { %8579 = vmatprep.subr.bf16.mxu1 %v12287_v55 }
 0xd32   : > { %8580 = vmatpush1.bf16.msra.mxu1 %v12218_v17 }
 0xd33   : > { %8581 = vmatprep.subr.bf16.mxu1 %v12287_v55 }
 0xd36   : > { %8582 = vmatpush1.bf16.msra.mxu1 %v12219_v30 }
 0xd37   : > { %8583 = vmatprep.subr.bf16.mxu1 %v12287_v55 }
 0xd3a   : > { %8584 = vmatpush1.bf16.msra.mxu1 %v12220_v54 }
 0xd3b   : > { %8585 = vmatprep.subr.bf16.mxu1 %v12287_v55 }
 0xd3e   : > { %8586 = vmatpush1.bf16.msra.mxu1 %v12221_v31 }
 0xd3f   : > { %8587 = vmatprep.subr.bf16.mxu1 %v12287_v55 }
 0xd42   : > { %8588 = vmatpush1.bf16.msra.mxu1 %v12222_v44 }
 0xd43   : > { %8589 = vmatprep.subr.bf16.mxu1 %v12287_v55 }
 0xd44   : > { %v10717_v43 = vpop.f32.mrb[36].mxu1 }
 0xd45   : > { %v10718_v45 = vpop.f32.mrb[37].mxu1 }
 0xd46   : > { %v13740_v46 = vadd.f32 %v10718_v45, %v10717_v43  ;;  %8590 = vmatpush1.bf16.msra.mxu1 %v12223_v40  ;;  %v10720_v47 = vpop.f32.mrb[38].mxu1 }
 0xd47   : > { %v10721_v5 = vpop.f32.mrb[39].mxu1  ;;  %8591 = vmatprep.subr.bf16.mxu1 %v12287_v55 }
 0xd4a   : > { %8592 = vmatpush1.bf16.msra.mxu1 %v12224_v37 }
 0xd4b   : > { %8593 = vmatprep.subr.bf16.mxu1 %v12287_v55 }
 0xd4e   : > { %8594 = vmatpush1.bf16.msra.mxu1 %v12225_v49 }
 0xd4f   : > { %10767 = vmatprep.subr.bf16.mxu1 %v12226_v50 }
 0xd51   : > { %8604 = vmatmul.mubr.bf16.vlgmr.msra.gmra.mrb[40].mxu1 %v8355_v52 }
 0xd52   : > { %10768 = vmatpush3.bf16.msra.mxu1 %v12227_v22  ;;  %8878 = vmatprep.mubr.bf16.mxu1 %v8669_v39 }
 0xd53   : > { %10769 = vmatprep.subr.bf16.mxu1 %v12228_v57 }
 0xd56   : > { %10770 = vmatpush3.bf16.msra.mxu1 %v12229_v58 }
 0xd57   : > { %10771 = vmatprep.subr.bf16.mxu1 %v12230_v61 }
 0xd5a   : > { %10772 = vmatpush3.bf16.msra.mxu1 %v12231_v62 }
 0xd5b   : > { %10773 = vmatprep.subr.bf16.mxu1 %v12232_v63 }
 0xd5e   : > { %10774 = vmatpush3.bf16.msra.mxu1 %v12233_v38  ;;  %v12276_v38 = vld [vmem:[%s13288_s29] sm:$0x1] }
 0xd5f   : > { %10775 = vmatprep.subr.bf16.mxu1 %v12234_v9 }
 0xd62   : > { %10776 = vmatpush3.bf16.msra.mxu1 %v12235_v53 }
 0xd63   : > { %10777 = vmatprep.subr.bf16.mxu1 %v12236_v11 }
 0xd66   : > { %10778 = vmatpush3.bf16.msra.mxu1 %v12237_v32 }
 0xd67   : > { %10779 = vmatprep.subr.bf16.mxu1 %v12238_v33 }
 0xd6a   : > { %10780 = vmatpush3.bf16.msra.mxu1 %v12239_v1 }
 0xd6b   : > { %10781 = vmatprep.subr.bf16.mxu1 %v12240_v2 }
 0xd6e   : > { %10782 = vmatpush3.bf16.msra.mxu1 %v12241_v4 }
 0xd6f   : > { %8886 = vmatprep.subr.bf16.mxu1 %v12287_v55 }
 0xd71   : > { %8879 = vmatmul.mubr.bf16.vlgmr.msra.gmra.mrb[52].mxu1 %v8668_v7 }
 0xd72   : > { %8887 = vmatpush1.bf16.msra.mxu1 %v12242_v6  ;;  %10541 = vmatprep.mubr.msk.bf16.mxu1 %vm3890_vm8, %v8671_v8 }
 0xd73   : > { %8888 = vmatprep.subr.bf16.mxu1 %v12287_v55 }
 0xd76   : > { %8889 = vmatpush1.bf16.msra.mxu1 %v12243_v10 }
 0xd77   : > { %8890 = vmatprep.subr.bf16.mxu1 %v12287_v55 }
 0xd7a   : > { %8891 = vmatpush1.bf16.msra.mxu1 %v12244_v24 }
 0xd7b   : > { %8892 = vmatprep.subr.bf16.mxu1 %v12287_v55 }
 0xd7e   : > { %8893 = vmatpush1.bf16.msra.mxu1 %v12245_v3 }
 0xd7f   : > { %8894 = vmatprep.subr.bf16.mxu1 %v12287_v55 }
 0xd82   : > { %8895 = vmatpush1.bf16.msra.mxu1 %v12246_v14 }
 0xd83   : > { %8896 = vmatprep.subr.bf16.mxu1 %v12287_v55 }
 0xd86   : > { %8897 = vmatpush1.bf16.msra.mxu1 %v12247_v59 }
 0xd87   : > { %8898 = vmatprep.subr.bf16.mxu1 %v12287_v55 }
 0xd8a   : > { %8899 = vmatpush1.bf16.msra.mxu1 %v12248_v60 }
 0xd8b   : > { %8900 = vmatprep.subr.bf16.mxu1 %v12287_v55 }
 0xd8e   : > { %8901 = vmatpush1.bf16.msra.mxu1 %v12249_v25 }
 0xd8f   : > { %8902 = vmatprep.subr.bf16.mxu1 %v12287_v55 }
 0xd92   : > { %8903 = vmatpush1.bf16.msra.mxu1 %v12250_v26 }
 0xd93   : > { %8904 = vmatprep.subr.bf16.mxu1 %v12287_v55 }
 0xd96   : > { %8905 = vmatpush1.bf16.msra.mxu1 %v12251_v48 }
 0xd97   : > { %8906 = vmatprep.subr.bf16.mxu1 %v12287_v55 }
 0xd9a   : > { %8907 = vmatpush1.bf16.msra.mxu1 %v12252_v12 }
 0xd9b   : > { %8908 = vmatprep.subr.bf16.mxu1 %v12287_v55  ;;  %v12268_v55 = vld [vmem:[%s13136_s28] sm:$0x1] }
 0xd9c   : > { %v11022_v23 = vadd.f32 %v12268_v55, %v13740_v46 }
 0xd9e   : > { %8909 = vmatpush1.bf16.msra.mxu1 %v12253_v13 }
 0xd9f   : > { %10977 = vmatprep.subr.bf16.mxu1 %v12285_v0 }
 0xda1   : > { %8919 = vmatmul.mubr.bf16.vlgmr.msra.gmra.mrb[40].mxu1 %v8670_v15 }
 0xda2   : > { %10978 = vmatpush3.bf16.msra.mxu1 %v12267_v16  ;;  %10993 = vmatprep.mubr.msk.bf16.mxu1 %vm12286_vm0, %v12285_v0 }
 0xda3   : > { %10979 = vmatprep.subr.bf16.mxu1 %v12285_v0 }
 0xda4   : > { %v10739_v18 = vpop.f32.mrb[44].mxu1 }
 0xda5   : > { %v10740_v20 = vpop.f32.mrb[45].mxu1 }
 0xda6   : > { %v10741_v41 = vadd.f32 %v10740_v20, %v10739_v18  ;;  %v10742_v42 = vpop.f32.mrb[46].mxu1  ;;  %10980 = vmatpush3.bf16.msra.mxu1 %v12269_v56 }
 0xda7   : > { %v10743_v27 = vpop.f32.mrb[47].mxu1  ;;  %10981 = vmatprep.subr.bf16.mxu1 %v12285_v0 }
 0xda8   : > { %v11023_v21 = vadd.f32 %v11022_v23, %v10741_v41 }
 0xdaa   : > { %10982 = vmatpush3.bf16.msra.mxu1 %v12270_v28 }
 0xdab   : > { %10983 = vmatprep.subr.bf16.mxu1 %v12285_v0 }
 0xdae   : > { %10984 = vmatpush3.bf16.msra.mxu1 %v12271_v29 }
 0xdaf   : > { %10985 = vmatprep.subr.bf16.mxu1 %v12285_v0 }
 0xdb2   : > { %10986 = vmatpush3.bf16.msra.mxu1 %v12272_v34 }
 0xdb3   : > { %10987 = vmatprep.subr.bf16.mxu1 %v12285_v0 }
 0xdb6   : > { %10988 = vmatpush3.bf16.msra.mxu1 %v12273_v35 }
 0xdb7   : > { %10989 = vmatprep.subr.bf16.mxu1 %v12285_v0 }
 0xdba   : > { %10990 = vmatpush3.bf16.msra.mxu1 %v12274_v36 }
 0xdbb   : > { %10991 = vmatprep.subr.bf16.mxu1 %v12285_v0 }
 0xdbe   : > { %10992 = vmatpush3.bf16.msra.mxu1 %v12275_v19 }
 0xdf4   : > { %v10761_v17 = vpop.f32.mrb[48].mxu1 }
 0xdf5   : > { %v10762_v30 = vpop.f32.mrb[49].mxu1 }
 0xdf6   : > { %v10763_v54 = vadd.f32 %v10762_v30, %v10761_v17  ;;  %v10764_v31 = vpop.f32.mrb[50].mxu1 }
 0xdf7   : > { %v10765_v44 = vpop.f32.mrb[51].mxu1 }
 0xdf8   : > { %v11024_v40 = vadd.f32 %v11023_v21, %v10763_v54 }
 0xe44   : > { %v10783_v43 = vpop.f32.mrb[52].mxu1 }
 0xe45   : > { %v10784_v45 = vpop.f32.mrb[53].mxu1 }
 0xe46   : > { %v10785_v46 = vadd.f32 %v10784_v45, %v10783_v43  ;;  %v10786_v47 = vpop.f32.mrb[54].mxu1 }
 0xe47   : > { %v10787_v37 = vpop.f32.mrb[55].mxu1 }
 0xe48   : > { %v11025_v5 = vadd.f32 %v11024_v40, %v10785_v46 }
 0xe74   : > { %v8920_v49 = vpop.f32.mrb[40].mxu1 }
 0xe75   : > { %v11026_v50 = vadd.f32 %v11025_v5, %v8920_v49  ;;  %v8922_v22 = vpop.f32.mrb[41].mxu1 }
 0xe76   : > { %v8923_v0 = vpop.f32.mrb[42].mxu1 }
 0xe77   : > { %v8927_v52 = vmax.f32 %v11026_v50, 0.0  ;;  %v8924_v57 = vpop.f32.mrb[43].mxu1 }
 0xe79   : > { %v8928_v39 = vpack.c.bf16 %v8927_v52, %v8927_v52 }
 0xe7b   : > { %10994 = vmatmul.mubr.bf16.vlgmr.msra.gmra.mrb[56].mxu1 %v8928_v39 }
 0xf4e   : > { %v9007_v58 = vpop.f32.mrb[56].mxu1 }
 0xf4f   : > { %v9008_v61 = vadd.f32 %v9007_v58, %v13663_v51  ;;  %v10995_v62 = vpop.f32.mrb[57].mxu1 }
 0xf50   : > { %v9010_v63 = vpop.f32.mrb[58].mxu1 }
 0xf51   : > { %v9013_v9 = vadd.f32 %v12276_v38, %v9008_v61  ;;  %v10996_v53 = vpop.f32.mrb[59].mxu1 }
 0xf53   : > { %12256 = vtanh.f32 %v9013_v9 }
 0xf5d   : > { %v12257_v11 = vpop.eup %12256 }
 0xf5e   : > { %9015 = vst [vmem:[%s13296_s21 + $0x1] sm:$0x1] %v12257_v11 }
 0xf5f PF: > { %s13857_s30 = sld [smem:[#allocation2_spill]] }
 0xf65   : > { %s29_s0 = sadd.s32 1, %s13857_s30  }
 0xf66   : > { %p26_p4 = scmp.ge.s32.totalorder %s29_s0, 4  }
 0xf68   :  { %28 = sbr.rel (!%p26_p4) target bundleno = 7 (0x7), region = 182 }

</bundles_post_ra>
